<compile_context>
chip_gen: v5e
topology: v5e:2x2
jax: 0.10.0
libtpu: 0.0.40
codegen_flags: <defaults>
</compile_context>

<pallas_src>
import functools

import jax
import jax.numpy as jnp
from jax.experimental import pallas as pl
from jax.experimental.pallas import tpu as pltpu


def _round_up(x, m):
    return ((x + m - 1) // m) * m


# ---------------------------------------------------------------------------
# Pallas kernels
# ---------------------------------------------------------------------------

def _conv_im2col_kernel(p_ref, w_ref, b_ref, o_ref):
    """Layer 0: (TILE_M, K) bf16 patches @ (K, 32) bf16 + bias -> ReLU -> bf16.

    The /255 - 0.5 normalization is already folded into w/b (done in glue).
    """
    y = jnp.dot(p_ref[...], w_ref[...], preferred_element_type=jnp.float32)
    y = y + b_ref[...]
    o_ref[...] = jnp.maximum(y, 0.0).astype(o_ref.dtype)


def _conv_s1_kernel(x_ref, w_ref, b_ref, o_ref, *, win, l_out):
    """Stride-1 3x3 conv on a row-major flattened (H*W) activation map.

    x_ref: (1, L_in, Cin) bf16   w_ref: (9*Cin, Cout) bf16
    b_ref: (1, Cout) f32         o_ref: (1, L_out, Cout) bf16
    with L_out = L_in - 2*win - 2.

    Output flat row p = h*win + w equals the true conv output at (h, w) for all
    (h, w) inside the valid (shrinking-by-2) spatial window; the few junk rows
    at row boundaries never feed valid rows of later layers and are dropped at
    the end.  This avoids materializing a 9x-inflated im2col matrix in HBM.
    """
    cin = x_ref.shape[-1]
    acc = None
    for kh in range(3):
        for kw in range(3):
            xs = x_ref[0, pl.ds(kh * win + kw, l_out), :]          # (L_out, Cin)
            wk = w_ref[pl.ds((kh * 3 + kw) * cin, cin), :]          # (Cin, Cout)
            part = jnp.dot(xs, wk, preferred_element_type=jnp.float32)
            acc = part if acc is None else acc + part
    y = acc + b_ref[...]
    o_ref[0] = jnp.maximum(y, 0.0).astype(o_ref.dtype)


def _trunk_kernel(h_ref, w_ref, b_ref, g_ref, beta_ref, o_ref, acc_ref, *, eps):
    """K-tiled trunk: Linear -> LayerNorm(512) -> Tanh, f32 VMEM accumulator."""
    k = pl.program_id(1)

    @pl.when(k == 0)
    def _():
        acc_ref[...] = jnp.zeros_like(acc_ref)

    acc_ref[...] += jnp.dot(h_ref[...], w_ref[...],
                            preferred_element_type=jnp.float32)

    @pl.when(k == pl.num_programs(1) - 1)
    def _():
        y = acc_ref[...] + b_ref[...]
        mean = jnp.mean(y, axis=-1, keepdims=True)
        var = jnp.mean(jnp.square(y - mean), axis=-1, keepdims=True)
        yn = (y - mean) * jax.lax.rsqrt(var + eps)
        o_ref[...] = jnp.tanh(yn * g_ref[...] + beta_ref[...]).astype(o_ref.dtype)


# ---------------------------------------------------------------------------
# pallas_call wrappers
# ---------------------------------------------------------------------------

def _pallas_conv_im2col(patches, w, b, *, tile_m):
    m, k = patches.shape
    cout = w.shape[1]
    return pl.pallas_call(
        _conv_im2col_kernel,
        out_shape=jax.ShapeDtypeStruct((m, cout), jnp.bfloat16),
        grid=(m // tile_m,),
        in_specs=[
            pl.BlockSpec((tile_m, k), lambda i: (i, 0)),
            pl.BlockSpec((k, cout), lambda i: (0, 0)),
            pl.BlockSpec((1, cout), lambda i: (0, 0)),
        ],
        out_specs=pl.BlockSpec((tile_m, cout), lambda i: (i, 0)),
        compiler_params=pltpu.CompilerParams(dimension_semantics=("parallel",)),
        cost_estimate=pl.CostEstimate(
            flops=2 * m * k * cout, transcendentals=0,
            bytes_accessed=(m * k + k * cout + m * cout) * 2),
    )(patches, w, b)


def _pallas_conv_s1(x_flat, w, b, *, win):
    n, l_in, cin = x_flat.shape
    cout = w.shape[1]
    l_out = l_in - 2 * win - 2
    kernel = functools.partial(_conv_s1_kernel, win=win, l_out=l_out)
    return pl.pallas_call(
        kernel,
        out_shape=jax.ShapeDtypeStruct((n, l_out, cout), jnp.bfloat16),
        grid=(n,),
        in_specs=[
            pl.BlockSpec((1, l_in, cin), lambda i: (i, 0, 0)),
            pl.BlockSpec((9 * cin, cout), lambda i: (0, 0)),
            pl.BlockSpec((1, cout), lambda i: (0, 0)),
        ],
        out_specs=pl.BlockSpec((1, l_out, cout), lambda i: (i, 0, 0)),
        compiler_params=pltpu.CompilerParams(dimension_semantics=("parallel",)),
        cost_estimate=pl.CostEstimate(
            flops=2 * n * l_out * 9 * cin * cout, transcendentals=0,
            bytes_accessed=n * (l_in * cin + l_out * cout) * 2 + 9 * cin * cout * 2),
    )(x_flat, w, b)


def _pallas_trunk(h, wt, b, gamma, beta, *, tile_m, tile_k, eps=1e-5):
    m, kdim = h.shape
    d = wt.shape[1]
    kernel = functools.partial(_trunk_kernel, eps=eps)
    return pl.pallas_call(
        kernel,
        out_shape=jax.ShapeDtypeStruct((m, d), jnp.float32),
        grid=(m // tile_m, kdim // tile_k),          # reduction axis last
        in_specs=[
            pl.BlockSpec((tile_m, tile_k), lambda i, k: (i, k)),
            pl.BlockSpec((tile_k, d), lambda i, k: (k, 0)),
            pl.BlockSpec((1, d), lambda i, k: (0, 0)),
            pl.BlockSpec((1, d), lambda i, k: (0, 0)),
            pl.BlockSpec((1, d), lambda i, k: (0, 0)),
        ],
        out_specs=pl.BlockSpec((tile_m, d), lambda i, k: (i, 0)),
        scratch_shapes=[pltpu.VMEM((tile_m, d), jnp.float32)],
        compiler_params=pltpu.CompilerParams(
            dimension_semantics=("parallel", "arbitrary")),
        cost_estimate=pl.CostEstimate(
            flops=2 * m * kdim * d, transcendentals=m * d,
            bytes_accessed=(m * kdim + kdim * d) * 2 + m * d * 4),
    )(h, wt, b, gamma, beta)


# ---------------------------------------------------------------------------
# Glue: im2col (stride-2 layer only), parameter init, forward, reference
# ---------------------------------------------------------------------------

def _im2col_s2(x_nhwc):
    """Stride-2 3x3 im2col: (N,H,W,C) -> (N*Ho*Wo, 9*C), patch idx=(kh*3+kw)*C+ci."""
    n, h, w, c = x_nhwc.shape
    ho = (h - 3) // 2 + 1
    wo = (w - 3) // 2 + 1
    cols = []
    for kh in range(3):
        for kw in range(3):
            sl = x_nhwc[:, kh:kh + 2 * (ho - 1) + 1:2,
                           kw:kw + 2 * (wo - 1) + 1:2, :]
            cols.append(sl)
    patches = jnp.concatenate(cols, axis=-1)
    return patches.reshape(n * ho * wo, 9 * c), (n, ho, wo)


def init_params(obs_shape, key):
    """Synthetic parameters mirroring ProgressiveEncoder.__init__ (single column).

    NOTE: the trunk weight rows are defined in NHWC-flatten order; when
    importing a real PyTorch checkpoint they must be permuted once from the
    NCHW-flatten order (free at conversion time).
    """
    c_in, height, _ = obs_shape
    conv_channels = [c_in, 32, 32, 32, 32]
    frame_size = (height - 3) // 2 + 1 - 6
    repr_dim = 512
    lin_in = 32 * frame_size * frame_size

    keys = jax.random.split(key, 5)
    convs = []
    for i in range(4):
        cin, cout = conv_channels[i], conv_channels[i + 1]
        w = jax.random.normal(keys[i], (3, 3, cin, cout), jnp.float32)
        w = w / jnp.sqrt(9.0 * cin)
        b = jnp.zeros((1, cout), jnp.float32)          # weight_init zeros biases
        convs.append((w, b))

    wt = jax.random.normal(keys[4], (lin_in, repr_dim), jnp.float32)
    wt = wt / jnp.sqrt(float(lin_in))
    bt = jnp.zeros((1, repr_dim), jnp.float32)
    gamma = jnp.ones((1, repr_dim), jnp.float32)        # LayerNorm defaults
    beta = jnp.zeros((1, repr_dim), jnp.float32)
    return {"convs": convs, "trunk": (wt, bt), "ln": (gamma, beta)}


def progressive_encoder_forward(params, obs_nchw, task_id=-1):
    """obs_nchw: (N, C, H, W) float32 in [0, 255]; returns (N, 512) float32."""
    del task_id  # single column -> last/only column
    n, c, h, w = obs_nchw.shape
    h1 = (h - 3) // 2 + 1
    w1 = (w - 3) // 2 + 1
    f = h1 - 6
    cout = 32

    x = jnp.transpose(obs_nchw, (0, 2, 3, 1)).astype(jnp.bfloat16)   # NHWC

    # --- layer 0: stride-2 conv as tiled im2col matmul; /255-0.5 folded into w,b
    w0, b0 = params["convs"][0]
    w0_fold = (w0 / 255.0).reshape(9 * c, cout).astype(jnp.bfloat16)
    b0_fold = b0 - 0.5 * jnp.sum(w0, axis=(0, 1, 2))[None, :]        # (1,32) f32
    patches, _ = _im2col_s2(x)                                       # (M0, 9C) bf16
    m0 = patches.shape[0]
    tile_m = 512 if m0 >= 512 else _round_up(m0, 8)
    m_pad = _round_up(m0, tile_m)
    if m_pad != m0:
        patches = jnp.pad(patches, ((0, m_pad - m0), (0, 0)))
    y0 = _pallas_conv_im2col(patches, w0_fold, b0_fold, tile_m=tile_m)
    xf = y0[:m0].reshape(n, h1 * w1, cout)                           # flat NHWC, bf16

    # --- layers 1..3: stride-1 convs directly on the flattened activation map
    for i in range(1, 4):
        wi, bi = params["convs"][i]
        xf = _pallas_conv_s1(
            xf, wi.reshape(9 * cout, cout).astype(jnp.bfloat16), bi, win=w1)

    # --- extract the valid (f, f) spatial block; flatten in NHWC order
    #     (no NCHW transpose: the trunk weight rows are NHWC-ordered)
    l_last = xf.shape[1]                               # = f*w1 - 6
    xf = jnp.pad(xf, ((0, 0), (0, f * w1 - l_last), (0, 0)))
    feat = xf.reshape(n, f, w1, cout)[:, :, :f, :].reshape(n, f * f * cout)

    # --- trunk: Linear -> LayerNorm -> Tanh, K-tiled streaming weight
    wt, bt = params["trunk"]
    gamma, beta = params["ln"]
    d_in = feat.shape[1]
    tile_k = 2048 if d_in >= 2048 else _round_up(d_in, 128)
    k_pad = _round_up(d_in, tile_k)
    tile_mb = 128 if n >= 128 else _round_up(n, 8)
    m_pad_b = _round_up(n, tile_mb)
    feat_p = jnp.pad(feat, ((0, m_pad_b - n), (0, k_pad - d_in)))
    wt_p = jnp.pad(wt, ((0, k_pad - d_in), (0, 0))).astype(jnp.bfloat16)
    out = _pallas_trunk(feat_p, wt_p, bt, gamma, beta,
                        tile_m=tile_mb, tile_k=tile_k)
    return out[:n]


def _reference_forward(params, obs_nchw):
    """Pure-JAX f32 reference matching the PyTorch module semantics."""
    x = obs_nchw.astype(jnp.float32) / 255.0 - 0.5
    x = jnp.transpose(x, (0, 2, 3, 1))                 # NHWC
    strides = [2, 1, 1, 1]
    for i, (w, b) in enumerate(params["convs"]):
        x = jax.lax.conv_general_dilated(
            x, w, (strides[i], strides[i]), "VALID",
            dimension_numbers=("NHWC", "HWIO", "NHWC")) + b
        x = jnp.maximum(x, 0.0)
    h = x.reshape(x.shape[0], -1)                      # NHWC flatten (matches wt rows)
    wt, bt = params["trunk"]
    g, be = params["ln"]
    y = h @ wt + bt
    mean = y.mean(-1, keepdims=True)
    var = ((y - mean) ** 2).mean(-1, keepdims=True)
    yn = (y - mean) * jax.lax.rsqrt(var + 1e-5)
    return jnp.tanh(yn * g + be)


if __name__ == "__main__":
    key = jax.random.PRNGKey(0)
    obs_shape = (4, 24, 24)                            # (C, H, W); frame_size = 5
    batch = 2

    pkey, okey = jax.random.split(key)
    params = init_params(obs_shape, pkey)
    obs = jax.random.uniform(okey, (batch,) + obs_shape, jnp.float32, 0.0, 255.0)

    fwd = jax.jit(progressive_encoder_forward)
    out = jax.block_until_ready(fwd(params, obs))

    assert out.shape == (batch, 512), out.shape
    assert bool(jnp.all(jnp.isfinite(out)))
    assert bool(jnp.all(jnp.abs(out) <= 1.0 + 1e-5))   # tanh output range

    ref = _reference_forward(params, obs)
    max_err = float(jnp.max(jnp.abs(out - ref)))
    mean_err = float(jnp.mean(jnp.abs(out - ref)))
    assert max_err < 0.25 and mean_err < 0.05, (max_err, mean_err)  # bf16 tolerance

    print("KERNEL_OK")
</pallas_src>

<mosaic_0001>
module attributes {stable_mosaic.version = 11 : i64} {
  func.func @_conv_im2col_kernel(%arg0: i32, %arg1: memref<248x36xbf16, #tpu.memory_space<vmem>>, %arg2: memref<36x32xbf16, #tpu.memory_space<vmem>>, %arg3: memref<1x32xf32, #tpu.memory_space<vmem>>, %arg4: memref<248x32xbf16, #tpu.memory_space<vmem>>) attributes {dimension_semantics = [#tpu.dimension_semantics<parallel>], iteration_bounds = array<i64: 1>, scalar_prefetch = 0 : i64, scratch_operands = 0 : i64, tpu.core_type = #tpu.core_type<tc>, window_params = [{transform_indices = @transform_0, window_bounds = array<i64: 248, 36>}, {pipeline_mode = #tpu.pipeline_mode<synchronous>, transform_indices = @transform_1, window_bounds = array<i64: 36, 32>}, {pipeline_mode = #tpu.pipeline_mode<synchronous>, transform_indices = @transform_2, window_bounds = array<i64: 1, 32>}, {transform_indices = @transform_3, window_bounds = array<i64: 248, 32>}]} {
    %c0 = arith.constant 0 : index
    %c0_0 = arith.constant 0 : index
    %0 = vector.load %arg1[%c0, %c0_0] : memref<248x36xbf16, #tpu.memory_space<vmem>>, vector<248x36xbf16>
    %c0_1 = arith.constant 0 : index
    %c0_2 = arith.constant 0 : index
    %1 = vector.load %arg2[%c0_1, %c0_2] : memref<36x32xbf16, #tpu.memory_space<vmem>>, vector<36x32xbf16>
    %cst = arith.constant dense<0.000000e+00> : vector<248x32xf32>
    %2 = tpu.matmul %0, %1, %cst {dimension_numbers = #tpu.dot_dimension_numbers<[1], [0], [0], [1], [0, 0, 1, 1], [], []>} : vector<248x36xbf16>, vector<36x32xbf16>, vector<248x32xf32> -> vector<248x32xf32>
    %c0_3 = arith.constant 0 : index
    %c0_4 = arith.constant 0 : index
    %3 = vector.load %arg3[%c0_3, %c0_4] : memref<1x32xf32, #tpu.memory_space<vmem>>, vector<1x32xf32>
    %4 = vector.broadcast %3 : vector<1x32xf32> to vector<248x32xf32>
    %5 = arith.addf %2, %4 : vector<248x32xf32>
    %cst_5 = arith.constant 0.000000e+00 : f32
    %6 = vector.broadcast %cst_5 : f32 to vector<248x32xf32>
    %7 = arith.maximumf %5, %6 : vector<248x32xf32>
    %8 = arith.truncf %7 : vector<248x32xf32> to vector<248x32xbf16>
    %c0_6 = arith.constant 0 : index
    %c0_7 = arith.constant 0 : index
    %9 = vector.load %arg4[%c0_6, %c0_7] : memref<248x32xbf16, #tpu.memory_space<vmem>>, vector<248x32xbf16>
    tpu.vector_store %arg4[%c0_6, %c0_7], %8 {strides = array<i32>} : memref<248x32xbf16, #tpu.memory_space<vmem>>, vector<248x32xbf16>,
    return
  }
  func.func @transform_0(%arg0: i32) -> (i32, i32) {
    %c0_i32 = arith.constant 0 : i32
    %c0_i32_0 = arith.constant 0 : i32
    return %arg0, %c0_i32 : i32, i32
  }
  func.func @transform_1(%arg0: i32) -> (i32, i32) {
    %c0_i32 = arith.constant 0 : i32
    %c0_i32_0 = arith.constant 0 : i32
    %c0_i32_1 = arith.constant 0 : i32
    return %c0_i32, %c0_i32_0 : i32, i32
  }
  func.func @transform_2(%arg0: i32) -> (i32, i32) {
    %c0_i32 = arith.constant 0 : i32
    %c0_i32_0 = arith.constant 0 : i32
    %c0_i32_1 = arith.constant 0 : i32
    return %c0_i32, %c0_i32_0 : i32, i32
  }
  func.func @transform_3(%arg0: i32) -> (i32, i32) {
    %c0_i32 = arith.constant 0 : i32
    %c0_i32_0 = arith.constant 0 : i32
    return %arg0, %c0_i32 : i32, i32
  }
}

module attributes {stable_mosaic.version = 11 : i64} {
  func.func @_conv_s1_kernel(%arg0: i32, %arg1: memref<1x121x32xbf16, #tpu.memory_space<vmem>>, %arg2: memref<288x32xbf16, #tpu.memory_space<vmem>>, %arg3: memref<1x32xf32, #tpu.memory_space<vmem>>, %arg4: memref<1x97x32xbf16, #tpu.memory_space<vmem>>) attributes {dimension_semantics = [#tpu.dimension_semantics<parallel>], iteration_bounds = array<i64: 2>, scalar_prefetch = 0 : i64, scratch_operands = 0 : i64, tpu.core_type = #tpu.core_type<tc>, window_params = [{transform_indices = @transform_0, window_bounds = array<i64: 1, 121, 32>}, {pipeline_mode = #tpu.pipeline_mode<synchronous>, transform_indices = @transform_1, window_bounds = array<i64: 288, 32>}, {pipeline_mode = #tpu.pipeline_mode<synchronous>, transform_indices = @transform_2, window_bounds = array<i64: 1, 32>}, {transform_indices = @transform_3, window_bounds = array<i64: 1, 97, 32>}]} {
    %c0 = arith.constant 0 : index
    %c0_0 = arith.constant 0 : index
    %c0_1 = arith.constant 0 : index
    %0 = vector.load %arg1[%c0, %c0_0, %c0_1] : memref<1x121x32xbf16, #tpu.memory_space<vmem>>, vector<1x97x32xbf16>
    %1 = vector.shape_cast %0 : vector<1x97x32xbf16> to vector<97x32xbf16>
    %c0_2 = arith.constant 0 : index
    %c0_3 = arith.constant 0 : index
    %2 = vector.load %arg2[%c0_2, %c0_3] : memref<288x32xbf16, #tpu.memory_space<vmem>>, vector<32x32xbf16>
    %cst = arith.constant dense<0.000000e+00> : vector<97x32xf32>
    %3 = tpu.matmul %1, %2, %cst {dimension_numbers = #tpu.dot_dimension_numbers<[1], [0], [0], [1], [0, 0, 1, 1], [], []>} : vector<97x32xbf16>, vector<32x32xbf16>, vector<97x32xf32> -> vector<97x32xf32>
    %c0_4 = arith.constant 0 : index
    %c1 = arith.constant 1 : index
    %c0_5 = arith.constant 0 : index
    %4 = vector.load %arg1[%c0_4, %c1, %c0_5] : memref<1x121x32xbf16, #tpu.memory_space<vmem>>, vector<1x97x32xbf16>
    %5 = vector.shape_cast %4 : vector<1x97x32xbf16> to vector<97x32xbf16>
    %c32 = arith.constant 32 : index
    %c0_6 = arith.constant 0 : index
    %6 = vector.load %arg2[%c32, %c0_6] : memref<288x32xbf16, #tpu.memory_space<vmem>>, vector<32x32xbf16>
    %cst_7 = arith.constant dense<0.000000e+00> : vector<97x32xf32>
    %7 = tpu.matmul %5, %6, %cst_7 {dimension_numbers = #tpu.dot_dimension_numbers<[1], [0], [0], [1], [0, 0, 1, 1], [], []>} : vector<97x32xbf16>, vector<32x32xbf16>, vector<97x32xf32> -> vector<97x32xf32>
    %8 = arith.addf %3, %7 : vector<97x32xf32>
    %c0_8 = arith.constant 0 : index
    %c2 = arith.constant 2 : index
    %c0_9 = arith.constant 0 : index
    %9 = vector.load %arg1[%c0_8, %c2, %c0_9] : memref<1x121x32xbf16, #tpu.memory_space<vmem>>, vector<1x97x32xbf16>
    %10 = vector.shape_cast %9 : vector<1x97x32xbf16> to vector<97x32xbf16>
    %c64 = arith.constant 64 : index
    %c0_10 = arith.constant 0 : index
    %11 = vector.load %arg2[%c64, %c0_10] : memref<288x32xbf16, #tpu.memory_space<vmem>>, vector<32x32xbf16>
    %cst_11 = arith.constant dense<0.000000e+00> : vector<97x32xf32>
    %12 = tpu.matmul %10, %11, %cst_11 {dimension_numbers = #tpu.dot_dimension_numbers<[1], [0], [0], [1], [0, 0, 1, 1], [], []>} : vector<97x32xbf16>, vector<32x32xbf16>, vector<97x32xf32> -> vector<97x32xf32>
    %13 = arith.addf %8, %12 : vector<97x32xf32>
    %c0_12 = arith.constant 0 : index
    %c11 = arith.constant 11 : index
    %c0_13 = arith.constant 0 : index
    %14 = vector.load %arg1[%c0_12, %c11, %c0_13] : memref<1x121x32xbf16, #tpu.memory_space<vmem>>, vector<1x97x32xbf16>
    %15 = vector.shape_cast %14 : vector<1x97x32xbf16> to vector<97x32xbf16>
    %c96 = arith.constant 96 : index
    %c0_14 = arith.constant 0 : index
    %16 = vector.load %arg2[%c96, %c0_14] : memref<288x32xbf16, #tpu.memory_space<vmem>>, vector<32x32xbf16>
    %cst_15 = arith.constant dense<0.000000e+00> : vector<97x32xf32>
    %17 = tpu.matmul %15, %16, %cst_15 {dimension_numbers = #tpu.dot_dimension_numbers<[1], [0], [0], [1], [0, 0, 1, 1], [], []>} : vector<97x32xbf16>, vector<32x32xbf16>, vector<97x32xf32> -> vector<97x32xf32>
    %18 = arith.addf %13, %17 : vector<97x32xf32>
    %c0_16 = arith.constant 0 : index
    %c12 = arith.constant 12 : index
    %c0_17 = arith.constant 0 : index
    %19 = vector.load %arg1[%c0_16, %c12, %c0_17] : memref<1x121x32xbf16, #tpu.memory_space<vmem>>, vector<1x97x32xbf16>
    %20 = vector.shape_cast %19 : vector<1x97x32xbf16> to vector<97x32xbf16>
    %c128 = arith.constant 128 : index
    %c0_18 = arith.constant 0 : index
    %21 = vector.load %arg2[%c128, %c0_18] : memref<288x32xbf16, #tpu.memory_space<vmem>>, vector<32x32xbf16>
    %cst_19 = arith.constant dense<0.000000e+00> : vector<97x32xf32>
    %22 = tpu.matmul %20, %21, %cst_19 {dimension_numbers = #tpu.dot_dimension_numbers<[1], [0], [0], [1], [0, 0, 1, 1], [], []>} : vector<97x32xbf16>, vector<32x32xbf16>, vector<97x32xf32> -> vector<97x32xf32>
    %23 = arith.addf %18, %22 : vector<97x32xf32>
    %c0_20 = arith.constant 0 : index
    %c13 = arith.constant 13 : index
    %c0_21 = arith.constant 0 : index
    %24 = vector.load %arg1[%c0_20, %c13, %c0_21] : memref<1x121x32xbf16, #tpu.memory_space<vmem>>, vector<1x97x32xbf16>
    %25 = vector.shape_cast %24 : vector<1x97x32xbf16> to vector<97x32xbf16>
    %c160 = arith.constant 160 : index
    %c0_22 = arith.constant 0 : index
    %26 = vector.load %arg2[%c160, %c0_22] : memref<288x32xbf16, #tpu.memory_space<vmem>>, vector<32x32xbf16>
    %cst_23 = arith.constant dense<0.000000e+00> : vector<97x32xf32>
    %27 = tpu.matmul %25, %26, %cst_23 {dimension_numbers = #tpu.dot_dimension_numbers<[1], [0], [0], [1], [0, 0, 1, 1], [], []>} : vector<97x32xbf16>, vector<32x32xbf16>, vector<97x32xf32> -> vector<97x32xf32>
    %28 = arith.addf %23, %27 : vector<97x32xf32>
    %c0_24 = arith.constant 0 : index
    %c22 = arith.constant 22 : index
    %c0_25 = arith.constant 0 : index
    %29 = vector.load %arg1[%c0_24, %c22, %c0_25] : memref<1x121x32xbf16, #tpu.memory_space<vmem>>, vector<1x97x32xbf16>
    %30 = vector.shape_cast %29 : vector<1x97x32xbf16> to vector<97x32xbf16>
    %c192 = arith.constant 192 : index
    %c0_26 = arith.constant 0 : index
    %31 = vector.load %arg2[%c192, %c0_26] : memref<288x32xbf16, #tpu.memory_space<vmem>>, vector<32x32xbf16>
    %cst_27 = arith.constant dense<0.000000e+00> : vector<97x32xf32>
    %32 = tpu.matmul %30, %31, %cst_27 {dimension_numbers = #tpu.dot_dimension_numbers<[1], [0], [0], [1], [0, 0, 1, 1], [], []>} : vector<97x32xbf16>, vector<32x32xbf16>, vector<97x32xf32> -> vector<97x32xf32>
    %33 = arith.addf %28, %32 : vector<97x32xf32>
    %c0_28 = arith.constant 0 : index
    %c23 = arith.constant 23 : index
    %c0_29 = arith.constant 0 : index
    %34 = vector.load %arg1[%c0_28, %c23, %c0_29] : memref<1x121x32xbf16, #tpu.memory_space<vmem>>, vector<1x97x32xbf16>
    %35 = vector.shape_cast %34 : vector<1x97x32xbf16> to vector<97x32xbf16>
    %c224 = arith.constant 224 : index
    %c0_30 = arith.constant 0 : index
    %36 = vector.load %arg2[%c224, %c0_30] : memref<288x32xbf16, #tpu.memory_space<vmem>>, vector<32x32xbf16>
    %cst_31 = arith.constant dense<0.000000e+00> : vector<97x32xf32>
    %37 = tpu.matmul %35, %36, %cst_31 {dimension_numbers = #tpu.dot_dimension_numbers<[1], [0], [0], [1], [0, 0, 1, 1], [], []>} : vector<97x32xbf16>, vector<32x32xbf16>, vector<97x32xf32> -> vector<97x32xf32>
    %38 = arith.addf %33, %37 : vector<97x32xf32>
    %c0_32 = arith.constant 0 : index
    %c24 = arith.constant 24 : index
    %c0_33 = arith.constant 0 : index
    %39 = vector.load %arg1[%c0_32, %c24, %c0_33] : memref<1x121x32xbf16, #tpu.memory_space<vmem>>, vector<1x97x32xbf16>
    %40 = vector.shape_cast %39 : vector<1x97x32xbf16> to vector<97x32xbf16>
    %c256 = arith.constant 256 : index
    %c0_34 = arith.constant 0 : index
    %41 = vector.load %arg2[%c256, %c0_34] : memref<288x32xbf16, #tpu.memory_space<vmem>>, vector<32x32xbf16>
    %cst_35 = arith.constant dense<0.000000e+00> : vector<97x32xf32>
    %42 = tpu.matmul %40, %41, %cst_35 {dimension_numbers = #tpu.dot_dimension_numbers<[1], [0], [0], [1], [0, 0, 1, 1], [], []>} : vector<97x32xbf16>, vector<32x32xbf16>, vector<97x32xf32> -> vector<97x32xf32>
    %43 = arith.addf %38, %42 : vector<97x32xf32>
    %c0_36 = arith.constant 0 : index
    %c0_37 = arith.constant 0 : index
    %44 = vector.load %arg3[%c0_36, %c0_37] : memref<1x32xf32, #tpu.memory_space<vmem>>, vector<1x32xf32>
    %45 = vector.broadcast %44 : vector<1x32xf32> to vector<97x32xf32>
    %46 = arith.addf %43, %45 : vector<97x32xf32>
    %cst_38 = arith.constant 0.000000e+00 : f32
    %47 = vector.broadcast %cst_38 : f32 to vector<97x32xf32>
    %48 = arith.maximumf %46, %47 : vector<97x32xf32>
    %49 = arith.truncf %48 : vector<97x32xf32> to vector<97x32xbf16>
    %c0_39 = arith.constant 0 : index
    %c0_40 = arith.constant 0 : index
    %c0_41 = arith.constant 0 : index
    %50 = vector.load %arg4[%c0_39, %c0_40, %c0_41] : memref<1x97x32xbf16, #tpu.memory_space<vmem>>, vector<1x97x32xbf16>
    %51 = vector.shape_cast %50 : vector<1x97x32xbf16> to vector<97x32xbf16>
    %52 = vector.shape_cast %49 : vector<97x32xbf16> to vector<1x97x32xbf16>
    tpu.vector_store %arg4[%c0_39, %c0_40, %c0_41], %52 {strides = array<i32>} : memref<1x97x32xbf16, #tpu.memory_space<vmem>>, vector<1x97x32xbf16>,
    return
  }
  func.func @transform_0(%arg0: i32) -> (i32, i32, i32) {
    %c0_i32 = arith.constant 0 : i32
    %c0_i32_0 = arith.constant 0 : i32
    %c0_i32_1 = arith.constant 0 : i32
    return %arg0, %c0_i32, %c0_i32_0 : i32, i32, i32
  }
  func.func @transform_1(%arg0: i32) -> (i32, i32) {
    %c0_i32 = arith.constant 0 : i32
    %c0_i32_0 = arith.constant 0 : i32
    %c0_i32_1 = arith.constant 0 : i32
    return %c0_i32, %c0_i32_0 : i32, i32
  }
  func.func @transform_2(%arg0: i32) -> (i32, i32) {
    %c0_i32 = arith.constant 0 : i32
    %c0_i32_0 = arith.constant 0 : i32
    %c0_i32_1 = arith.constant 0 : i32
    return %c0_i32, %c0_i32_0 : i32, i32
  }
  func.func @transform_3(%arg0: i32) -> (i32, i32, i32) {
    %c0_i32 = arith.constant 0 : i32
    %c0_i32_0 = arith.constant 0 : i32
    %c0_i32_1 = arith.constant 0 : i32
    return %arg0, %c0_i32, %c0_i32_0 : i32, i32, i32
  }
}

module attributes {stable_mosaic.version = 11 : i64} {
  func.func @_conv_s1_kernel(%arg0: i32, %arg1: memref<1x97x32xbf16, #tpu.memory_space<vmem>>, %arg2: memref<288x32xbf16, #tpu.memory_space<vmem>>, %arg3: memref<1x32xf32, #tpu.memory_space<vmem>>, %arg4: memref<1x73x32xbf16, #tpu.memory_space<vmem>>) attributes {dimension_semantics = [#tpu.dimension_semantics<parallel>], iteration_bounds = array<i64: 2>, scalar_prefetch = 0 : i64, scratch_operands = 0 : i64, tpu.core_type = #tpu.core_type<tc>, window_params = [{transform_indices = @transform_0, window_bounds = array<i64: 1, 97, 32>}, {pipeline_mode = #tpu.pipeline_mode<synchronous>, transform_indices = @transform_1, window_bounds = array<i64: 288, 32>}, {pipeline_mode = #tpu.pipeline_mode<synchronous>, transform_indices = @transform_2, window_bounds = array<i64: 1, 32>}, {transform_indices = @transform_3, window_bounds = array<i64: 1, 73, 32>}]} {
    %c0 = arith.constant 0 : index
    %c0_0 = arith.constant 0 : index
    %c0_1 = arith.constant 0 : index
    %0 = vector.load %arg1[%c0, %c0_0, %c0_1] : memref<1x97x32xbf16, #tpu.memory_space<vmem>>, vector<1x73x32xbf16>
    %1 = vector.shape_cast %0 : vector<1x73x32xbf16> to vector<73x32xbf16>
    %c0_2 = arith.constant 0 : index
    %c0_3 = arith.constant 0 : index
    %2 = vector.load %arg2[%c0_2, %c0_3] : memref<288x32xbf16, #tpu.memory_space<vmem>>, vector<32x32xbf16>
    %cst = arith.constant dense<0.000000e+00> : vector<73x32xf32>
    %3 = tpu.matmul %1, %2, %cst {dimension_numbers = #tpu.dot_dimension_numbers<[1], [0], [0], [1], [0, 0, 1, 1], [], []>} : vector<73x32xbf16>, vector<32x32xbf16>, vector<73x32xf32> -> vector<73x32xf32>
    %c0_4 = arith.constant 0 : index
    %c1 = arith.constant 1 : index
    %c0_5 = arith.constant 0 : index
    %4 = vector.load %arg1[%c0_4, %c1, %c0_5] : memref<1x97x32xbf16, #tpu.memory_space<vmem>>, vector<1x73x32xbf16>
    %5 = vector.shape_cast %4 : vector<1x73x32xbf16> to vector<73x32xbf16>
    %c32 = arith.constant 32 : index
    %c0_6 = arith.constant 0 : index
    %6 = vector.load %arg2[%c32, %c0_6] : memref<288x32xbf16, #tpu.memory_space<vmem>>, vector<32x32xbf16>
    %cst_7 = arith.constant dense<0.000000e+00> : vector<73x32xf32>
    %7 = tpu.matmul %5, %6, %cst_7 {dimension_numbers = #tpu.dot_dimension_numbers<[1], [0], [0], [1], [0, 0, 1, 1], [], []>} : vector<73x32xbf16>, vector<32x32xbf16>, vector<73x32xf32> -> vector<73x32xf32>
    %8 = arith.addf %3, %7 : vector<73x32xf32>
    %c0_8 = arith.constant 0 : index
    %c2 = arith.constant 2 : index
    %c0_9 = arith.constant 0 : index
    %9 = vector.load %arg1[%c0_8, %c2, %c0_9] : memref<1x97x32xbf16, #tpu.memory_space<vmem>>, vector<1x73x32xbf16>
    %10 = vector.shape_cast %9 : vector<1x73x32xbf16> to vector<73x32xbf16>
    %c64 = arith.constant 64 : index
    %c0_10 = arith.constant 0 : index
    %11 = vector.load %arg2[%c64, %c0_10] : memref<288x32xbf16, #tpu.memory_space<vmem>>, vector<32x32xbf16>
    %cst_11 = arith.constant dense<0.000000e+00> : vector<73x32xf32>
    %12 = tpu.matmul %10, %11, %cst_11 {dimension_numbers = #tpu.dot_dimension_numbers<[1], [0], [0], [1], [0, 0, 1, 1], [], []>} : vector<73x32xbf16>, vector<32x32xbf16>, vector<73x32xf32> -> vector<73x32xf32>
    %13 = arith.addf %8, %12 : vector<73x32xf32>
    %c0_12 = arith.constant 0 : index
    %c11 = arith.constant 11 : index
    %c0_13 = arith.constant 0 : index
    %14 = vector.load %arg1[%c0_12, %c11, %c0_13] : memref<1x97x32xbf16, #tpu.memory_space<vmem>>, vector<1x73x32xbf16>
    %15 = vector.shape_cast %14 : vector<1x73x32xbf16> to vector<73x32xbf16>
    %c96 = arith.constant 96 : index
    %c0_14 = arith.constant 0 : index
    %16 = vector.load %arg2[%c96, %c0_14] : memref<288x32xbf16, #tpu.memory_space<vmem>>, vector<32x32xbf16>
    %cst_15 = arith.constant dense<0.000000e+00> : vector<73x32xf32>
    %17 = tpu.matmul %15, %16, %cst_15 {dimension_numbers = #tpu.dot_dimension_numbers<[1], [0], [0], [1], [0, 0, 1, 1], [], []>} : vector<73x32xbf16>, vector<32x32xbf16>, vector<73x32xf32> -> vector<73x32xf32>
    %18 = arith.addf %13, %17 : vector<73x32xf32>
    %c0_16 = arith.constant 0 : index
    %c12 = arith.constant 12 : index
    %c0_17 = arith.constant 0 : index
    %19 = vector.load %arg1[%c0_16, %c12, %c0_17] : memref<1x97x32xbf16, #tpu.memory_space<vmem>>, vector<1x73x32xbf16>
    %20 = vector.shape_cast %19 : vector<1x73x32xbf16> to vector<73x32xbf16>
    %c128 = arith.constant 128 : index
    %c0_18 = arith.constant 0 : index
    %21 = vector.load %arg2[%c128, %c0_18] : memref<288x32xbf16, #tpu.memory_space<vmem>>, vector<32x32xbf16>
    %cst_19 = arith.constant dense<0.000000e+00> : vector<73x32xf32>
    %22 = tpu.matmul %20, %21, %cst_19 {dimension_numbers = #tpu.dot_dimension_numbers<[1], [0], [0], [1], [0, 0, 1, 1], [], []>} : vector<73x32xbf16>, vector<32x32xbf16>, vector<73x32xf32> -> vector<73x32xf32>
    %23 = arith.addf %18, %22 : vector<73x32xf32>
    %c0_20 = arith.constant 0 : index
    %c13 = arith.constant 13 : index
    %c0_21 = arith.constant 0 : index
    %24 = vector.load %arg1[%c0_20, %c13, %c0_21] : memref<1x97x32xbf16, #tpu.memory_space<vmem>>, vector<1x73x32xbf16>
    %25 = vector.shape_cast %24 : vector<1x73x32xbf16> to vector<73x32xbf16>
    %c160 = arith.constant 160 : index
    %c0_22 = arith.constant 0 : index
    %26 = vector.load %arg2[%c160, %c0_22] : memref<288x32xbf16, #tpu.memory_space<vmem>>, vector<32x32xbf16>
    %cst_23 = arith.constant dense<0.000000e+00> : vector<73x32xf32>
    %27 = tpu.matmul %25, %26, %cst_23 {dimension_numbers = #tpu.dot_dimension_numbers<[1], [0], [0], [1], [0, 0, 1, 1], [], []>} : vector<73x32xbf16>, vector<32x32xbf16>, vector<73x32xf32> -> vector<73x32xf32>
    %28 = arith.addf %23, %27 : vector<73x32xf32>
    %c0_24 = arith.constant 0 : index
    %c22 = arith.constant 22 : index
    %c0_25 = arith.constant 0 : index
    %29 = vector.load %arg1[%c0_24, %c22, %c0_25] : memref<1x97x32xbf16, #tpu.memory_space<vmem>>, vector<1x73x32xbf16>
    %30 = vector.shape_cast %29 : vector<1x73x32xbf16> to vector<73x32xbf16>
    %c192 = arith.constant 192 : index
    %c0_26 = arith.constant 0 : index
    %31 = vector.load %arg2[%c192, %c0_26] : memref<288x32xbf16, #tpu.memory_space<vmem>>, vector<32x32xbf16>
    %cst_27 = arith.constant dense<0.000000e+00> : vector<73x32xf32>
    %32 = tpu.matmul %30, %31, %cst_27 {dimension_numbers = #tpu.dot_dimension_numbers<[1], [0], [0], [1], [0, 0, 1, 1], [], []>} : vector<73x32xbf16>, vector<32x32xbf16>, vector<73x32xf32> -> vector<73x32xf32>
    %33 = arith.addf %28, %32 : vector<73x32xf32>
    %c0_28 = arith.constant 0 : index
    %c23 = arith.constant 23 : index
    %c0_29 = arith.constant 0 : index
    %34 = vector.load %arg1[%c0_28, %c23, %c0_29] : memref<1x97x32xbf16, #tpu.memory_space<vmem>>, vector<1x73x32xbf16>
    %35 = vector.shape_cast %34 : vector<1x73x32xbf16> to vector<73x32xbf16>
    %c224 = arith.constant 224 : index
    %c0_30 = arith.constant 0 : index
    %36 = vector.load %arg2[%c224, %c0_30] : memref<288x32xbf16, #tpu.memory_space<vmem>>, vector<32x32xbf16>
    %cst_31 = arith.constant dense<0.000000e+00> : vector<73x32xf32>
    %37 = tpu.matmul %35, %36, %cst_31 {dimension_numbers = #tpu.dot_dimension_numbers<[1], [0], [0], [1], [0, 0, 1, 1], [], []>} : vector<73x32xbf16>, vector<32x32xbf16>, vector<73x32xf32> -> vector<73x32xf32>
    %38 = arith.addf %33, %37 : vector<73x32xf32>
    %c0_32 = arith.constant 0 : index
    %c24 = arith.constant 24 : index
    %c0_33 = arith.constant 0 : index
    %39 = vector.load %arg1[%c0_32, %c24, %c0_33] : memref<1x97x32xbf16, #tpu.memory_space<vmem>>, vector<1x73x32xbf16>
    %40 = vector.shape_cast %39 : vector<1x73x32xbf16> to vector<73x32xbf16>
    %c256 = arith.constant 256 : index
    %c0_34 = arith.constant 0 : index
    %41 = vector.load %arg2[%c256, %c0_34] : memref<288x32xbf16, #tpu.memory_space<vmem>>, vector<32x32xbf16>
    %cst_35 = arith.constant dense<0.000000e+00> : vector<73x32xf32>
    %42 = tpu.matmul %40, %41, %cst_35 {dimension_numbers = #tpu.dot_dimension_numbers<[1], [0], [0], [1], [0, 0, 1, 1], [], []>} : vector<73x32xbf16>, vector<32x32xbf16>, vector<73x32xf32> -> vector<73x32xf32>
    %43 = arith.addf %38, %42 : vector<73x32xf32>
    %c0_36 = arith.constant 0 : index
    %c0_37 = arith.constant 0 : index
    %44 = vector.load %arg3[%c0_36, %c0_37] : memref<1x32xf32, #tpu.memory_space<vmem>>, vector<1x32xf32>
    %45 = vector.broadcast %44 : vector<1x32xf32> to vector<73x32xf32>
    %46 = arith.addf %43, %45 : vector<73x32xf32>
    %cst_38 = arith.constant 0.000000e+00 : f32
    %47 = vector.broadcast %cst_38 : f32 to vector<73x32xf32>
    %48 = arith.maximumf %46, %47 : vector<73x32xf32>
    %49 = arith.truncf %48 : vector<73x32xf32> to vector<73x32xbf16>
    %c0_39 = arith.constant 0 : index
    %c0_40 = arith.constant 0 : index
    %c0_41 = arith.constant 0 : index
    %50 = vector.load %arg4[%c0_39, %c0_40, %c0_41] : memref<1x73x32xbf16, #tpu.memory_space<vmem>>, vector<1x73x32xbf16>
    %51 = vector.shape_cast %50 : vector<1x73x32xbf16> to vector<73x32xbf16>
    %52 = vector.shape_cast %49 : vector<73x32xbf16> to vector<1x73x32xbf16>
    tpu.vector_store %arg4[%c0_39, %c0_40, %c0_41], %52 {strides = array<i32>} : memref<1x73x32xbf16, #tpu.memory_space<vmem>>, vector<1x73x32xbf16>,
    return
  }
  func.func @transform_0(%arg0: i32) -> (i32, i32, i32) {
    %c0_i32 = arith.constant 0 : i32
    %c0_i32_0 = arith.constant 0 : i32
    %c0_i32_1 = arith.constant 0 : i32
    return %arg0, %c0_i32, %c0_i32_0 : i32, i32, i32
  }
  func.func @transform_1(%arg0: i32) -> (i32, i32) {
    %c0_i32 = arith.constant 0 : i32
    %c0_i32_0 = arith.constant 0 : i32
    %c0_i32_1 = arith.constant 0 : i32
    return %c0_i32, %c0_i32_0 : i32, i32
  }
  func.func @transform_2(%arg0: i32) -> (i32, i32) {
    %c0_i32 = arith.constant 0 : i32
    %c0_i32_0 = arith.constant 0 : i32
    %c0_i32_1 = arith.constant 0 : i32
    return %c0_i32, %c0_i32_0 : i32, i32
  }
  func.func @transform_3(%arg0: i32) -> (i32, i32, i32) {
    %c0_i32 = arith.constant 0 : i32
    %c0_i32_0 = arith.constant 0 : i32
    %c0_i32_1 = arith.constant 0 : i32
    return %arg0, %c0_i32, %c0_i32_0 : i32, i32, i32
  }
}

module attributes {stable_mosaic.version = 11 : i64} {
  func.func @_conv_s1_kernel(%arg0: i32, %arg1: memref<1x73x32xbf16, #tpu.memory_space<vmem>>, %arg2: memref<288x32xbf16, #tpu.memory_space<vmem>>, %arg3: memref<1x32xf32, #tpu.memory_space<vmem>>, %arg4: memref<1x49x32xbf16, #tpu.memory_space<vmem>>) attributes {dimension_semantics = [#tpu.dimension_semantics<parallel>], iteration_bounds = array<i64: 2>, scalar_prefetch = 0 : i64, scratch_operands = 0 : i64, tpu.core_type = #tpu.core_type<tc>, window_params = [{transform_indices = @transform_0, window_bounds = array<i64: 1, 73, 32>}, {pipeline_mode = #tpu.pipeline_mode<synchronous>, transform_indices = @transform_1, window_bounds = array<i64: 288, 32>}, {pipeline_mode = #tpu.pipeline_mode<synchronous>, transform_indices = @transform_2, window_bounds = array<i64: 1, 32>}, {transform_indices = @transform_3, window_bounds = array<i64: 1, 49, 32>}]} {
    %c0 = arith.constant 0 : index
    %c0_0 = arith.constant 0 : index
    %c0_1 = arith.constant 0 : index
    %0 = vector.load %arg1[%c0, %c0_0, %c0_1] : memref<1x73x32xbf16, #tpu.memory_space<vmem>>, vector<1x49x32xbf16>
    %1 = vector.shape_cast %0 : vector<1x49x32xbf16> to vector<49x32xbf16>
    %c0_2 = arith.constant 0 : index
    %c0_3 = arith.constant 0 : index
    %2 = vector.load %arg2[%c0_2, %c0_3] : memref<288x32xbf16, #tpu.memory_space<vmem>>, vector<32x32xbf16>
    %cst = arith.constant dense<0.000000e+00> : vector<49x32xf32>
    %3 = tpu.matmul %1, %2, %cst {dimension_numbers = #tpu.dot_dimension_numbers<[1], [0], [0], [1], [0, 0, 1, 1], [], []>} : vector<49x32xbf16>, vector<32x32xbf16>, vector<49x32xf32> -> vector<49x32xf32>
    %c0_4 = arith.constant 0 : index
    %c1 = arith.constant 1 : index
    %c0_5 = arith.constant 0 : index
    %4 = vector.load %arg1[%c0_4, %c1, %c0_5] : memref<1x73x32xbf16, #tpu.memory_space<vmem>>, vector<1x49x32xbf16>
    %5 = vector.shape_cast %4 : vector<1x49x32xbf16> to vector<49x32xbf16>
    %c32 = arith.constant 32 : index
    %c0_6 = arith.constant 0 : index
    %6 = vector.load %arg2[%c32, %c0_6] : memref<288x32xbf16, #tpu.memory_space<vmem>>, vector<32x32xbf16>
    %cst_7 = arith.constant dense<0.000000e+00> : vector<49x32xf32>
    %7 = tpu.matmul %5, %6, %cst_7 {dimension_numbers = #tpu.dot_dimension_numbers<[1], [0], [0], [1], [0, 0, 1, 1], [], []>} : vector<49x32xbf16>, vector<32x32xbf16>, vector<49x32xf32> -> vector<49x32xf32>
    %8 = arith.addf %3, %7 : vector<49x32xf32>
    %c0_8 = arith.constant 0 : index
    %c2 = arith.constant 2 : index
    %c0_9 = arith.constant 0 : index
    %9 = vector.load %arg1[%c0_8, %c2, %c0_9] : memref<1x73x32xbf16, #tpu.memory_space<vmem>>, vector<1x49x32xbf16>
    %10 = vector.shape_cast %9 : vector<1x49x32xbf16> to vector<49x32xbf16>
    %c64 = arith.constant 64 : index
    %c0_10 = arith.constant 0 : index
    %11 = vector.load %arg2[%c64, %c0_10] : memref<288x32xbf16, #tpu.memory_space<vmem>>, vector<32x32xbf16>
    %cst_11 = arith.constant dense<0.000000e+00> : vector<49x32xf32>
    %12 = tpu.matmul %10, %11, %cst_11 {dimension_numbers = #tpu.dot_dimension_numbers<[1], [0], [0], [1], [0, 0, 1, 1], [], []>} : vector<49x32xbf16>, vector<32x32xbf16>, vector<49x32xf32> -> vector<49x32xf32>
    %13 = arith.addf %8, %12 : vector<49x32xf32>
    %c0_12 = arith.constant 0 : index
    %c11 = arith.constant 11 : index
    %c0_13 = arith.constant 0 : index
    %14 = vector.load %arg1[%c0_12, %c11, %c0_13] : memref<1x73x32xbf16, #tpu.memory_space<vmem>>, vector<1x49x32xbf16>
    %15 = vector.shape_cast %14 : vector<1x49x32xbf16> to vector<49x32xbf16>
    %c96 = arith.constant 96 : index
    %c0_14 = arith.constant 0 : index
    %16 = vector.load %arg2[%c96, %c0_14] : memref<288x32xbf16, #tpu.memory_space<vmem>>, vector<32x32xbf16>
    %cst_15 = arith.constant dense<0.000000e+00> : vector<49x32xf32>
    %17 = tpu.matmul %15, %16, %cst_15 {dimension_numbers = #tpu.dot_dimension_numbers<[1], [0], [0], [1], [0, 0, 1, 1], [], []>} : vector<49x32xbf16>, vector<32x32xbf16>, vector<49x32xf32> -> vector<49x32xf32>
    %18 = arith.addf %13, %17 : vector<49x32xf32>
    %c0_16 = arith.constant 0 : index
    %c12 = arith.constant 12 : index
    %c0_17 = arith.constant 0 : index
    %19 = vector.load %arg1[%c0_16, %c12, %c0_17] : memref<1x73x32xbf16, #tpu.memory_space<vmem>>, vector<1x49x32xbf16>
    %20 = vector.shape_cast %19 : vector<1x49x32xbf16> to vector<49x32xbf16>
    %c128 = arith.constant 128 : index
    %c0_18 = arith.constant 0 : index
    %21 = vector.load %arg2[%c128, %c0_18] : memref<288x32xbf16, #tpu.memory_space<vmem>>, vector<32x32xbf16>
    %cst_19 = arith.constant dense<0.000000e+00> : vector<49x32xf32>
    %22 = tpu.matmul %20, %21, %cst_19 {dimension_numbers = #tpu.dot_dimension_numbers<[1], [0], [0], [1], [0, 0, 1, 1], [], []>} : vector<49x32xbf16>, vector<32x32xbf16>, vector<49x32xf32> -> vector<49x32xf32>
    %23 = arith.addf %18, %22 : vector<49x32xf32>
    %c0_20 = arith.constant 0 : index
    %c13 = arith.constant 13 : index
    %c0_21 = arith.constant 0 : index
    %24 = vector.load %arg1[%c0_20, %c13, %c0_21] : memref<1x73x32xbf16, #tpu.memory_space<vmem>>, vector<1x49x32xbf16>
    %25 = vector.shape_cast %24 : vector<1x49x32xbf16> to vector<49x32xbf16>
    %c160 = arith.constant 160 : index
    %c0_22 = arith.constant 0 : index
    %26 = vector.load %arg2[%c160, %c0_22] : memref<288x32xbf16, #tpu.memory_space<vmem>>, vector<32x32xbf16>
    %cst_23 = arith.constant dense<0.000000e+00> : vector<49x32xf32>
    %27 = tpu.matmul %25, %26, %cst_23 {dimension_numbers = #tpu.dot_dimension_numbers<[1], [0], [0], [1], [0, 0, 1, 1], [], []>} : vector<49x32xbf16>, vector<32x32xbf16>, vector<49x32xf32> -> vector<49x32xf32>
    %28 = arith.addf %23, %27 : vector<49x32xf32>
    %c0_24 = arith.constant 0 : index
    %c22 = arith.constant 22 : index
    %c0_25 = arith.constant 0 : index
    %29 = vector.load %arg1[%c0_24, %c22, %c0_25] : memref<1x73x32xbf16, #tpu.memory_space<vmem>>, vector<1x49x32xbf16>
    %30 = vector.shape_cast %29 : vector<1x49x32xbf16> to vector<49x32xbf16>
    %c192 = arith.constant 192 : index
    %c0_26 = arith.constant 0 : index
    %31 = vector.load %arg2[%c192, %c0_26] : memref<288x32xbf16, #tpu.memory_space<vmem>>, vector<32x32xbf16>
    %cst_27 = arith.constant dense<0.000000e+00> : vector<49x32xf32>
    %32 = tpu.matmul %30, %31, %cst_27 {dimension_numbers = #tpu.dot_dimension_numbers<[1], [0], [0], [1], [0, 0, 1, 1], [], []>} : vector<49x32xbf16>, vector<32x32xbf16>, vector<49x32xf32> -> vector<49x32xf32>
    %33 = arith.addf %28, %32 : vector<49x32xf32>
    %c0_28 = arith.constant 0 : index
    %c23 = arith.constant 23 : index
    %c0_29 = arith.constant 0 : index
    %34 = vector.load %arg1[%c0_28, %c23, %c0_29] : memref<1x73x32xbf16, #tpu.memory_space<vmem>>, vector<1x49x32xbf16>
    %35 = vector.shape_cast %34 : vector<1x49x32xbf16> to vector<49x32xbf16>
    %c224 = arith.constant 224 : index
    %c0_30 = arith.constant 0 : index
    %36 = vector.load %arg2[%c224, %c0_30] : memref<288x32xbf16, #tpu.memory_space<vmem>>, vector<32x32xbf16>
    %cst_31 = arith.constant dense<0.000000e+00> : vector<49x32xf32>
    %37 = tpu.matmul %35, %36, %cst_31 {dimension_numbers = #tpu.dot_dimension_numbers<[1], [0], [0], [1], [0, 0, 1, 1], [], []>} : vector<49x32xbf16>, vector<32x32xbf16>, vector<49x32xf32> -> vector<49x32xf32>
    %38 = arith.addf %33, %37 : vector<49x32xf32>
    %c0_32 = arith.constant 0 : index
    %c24 = arith.constant 24 : index
    %c0_33 = arith.constant 0 : index
    %39 = vector.load %arg1[%c0_32, %c24, %c0_33] : memref<1x73x32xbf16, #tpu.memory_space<vmem>>, vector<1x49x32xbf16>
    %40 = vector.shape_cast %39 : vector<1x49x32xbf16> to vector<49x32xbf16>
    %c256 = arith.constant 256 : index
    %c0_34 = arith.constant 0 : index
    %41 = vector.load %arg2[%c256, %c0_34] : memref<288x32xbf16, #tpu.memory_space<vmem>>, vector<32x32xbf16>
    %cst_35 = arith.constant dense<0.000000e+00> : vector<49x32xf32>
    %42 = tpu.matmul %40, %41, %cst_35 {dimension_numbers = #tpu.dot_dimension_numbers<[1], [0], [0], [1], [0, 0, 1, 1], [], []>} : vector<49x32xbf16>, vector<32x32xbf16>, vector<49x32xf32> -> vector<49x32xf32>
    %43 = arith.addf %38, %42 : vector<49x32xf32>
    %c0_36 = arith.constant 0 : index
    %c0_37 = arith.constant 0 : index
    %44 = vector.load %arg3[%c0_36, %c0_37] : memref<1x32xf32, #tpu.memory_space<vmem>>, vector<1x32xf32>
    %45 = vector.broadcast %44 : vector<1x32xf32> to vector<49x32xf32>
    %46 = arith.addf %43, %45 : vector<49x32xf32>
    %cst_38 = arith.constant 0.000000e+00 : f32
    %47 = vector.broadcast %cst_38 : f32 to vector<49x32xf32>
    %48 = arith.maximumf %46, %47 : vector<49x32xf32>
    %49 = arith.truncf %48 : vector<49x32xf32> to vector<49x32xbf16>
    %c0_39 = arith.constant 0 : index
    %c0_40 = arith.constant 0 : index
    %c0_41 = arith.constant 0 : index
    %50 = vector.load %arg4[%c0_39, %c0_40, %c0_41] : memref<1x49x32xbf16, #tpu.memory_space<vmem>>, vector<1x49x32xbf16>
    %51 = vector.shape_cast %50 : vector<1x49x32xbf16> to vector<49x32xbf16>
    %52 = vector.shape_cast %49 : vector<49x32xbf16> to vector<1x49x32xbf16>
    tpu.vector_store %arg4[%c0_39, %c0_40, %c0_41], %52 {strides = array<i32>} : memref<1x49x32xbf16, #tpu.memory_space<vmem>>, vector<1x49x32xbf16>,
    return
  }
  func.func @transform_0(%arg0: i32) -> (i32, i32, i32) {
    %c0_i32 = arith.constant 0 : i32
    %c0_i32_0 = arith.constant 0 : i32
    %c0_i32_1 = arith.constant 0 : i32
    return %arg0, %c0_i32, %c0_i32_0 : i32, i32, i32
  }
  func.func @transform_1(%arg0: i32) -> (i32, i32) {
    %c0_i32 = arith.constant 0 : i32
    %c0_i32_0 = arith.constant 0 : i32
    %c0_i32_1 = arith.constant 0 : i32
    return %c0_i32, %c0_i32_0 : i32, i32
  }
  func.func @transform_2(%arg0: i32) -> (i32, i32) {
    %c0_i32 = arith.constant 0 : i32
    %c0_i32_0 = arith.constant 0 : i32
    %c0_i32_1 = arith.constant 0 : i32
    return %c0_i32, %c0_i32_0 : i32, i32
  }
  func.func @transform_3(%arg0: i32) -> (i32, i32, i32) {
    %c0_i32 = arith.constant 0 : i32
    %c0_i32_0 = arith.constant 0 : i32
    %c0_i32_1 = arith.constant 0 : i32
    return %arg0, %c0_i32, %c0_i32_0 : i32, i32, i32
  }
}

module attributes {stable_mosaic.version = 11 : i64} {
  func.func @_trunk_kernel(%arg0: i32, %arg1: i32, %arg2: memref<8x896xbf16, #tpu.memory_space<vmem>>, %arg3: memref<896x512xbf16, #tpu.memory_space<vmem>>, %arg4: memref<1x512xf32, #tpu.memory_space<vmem>>, %arg5: memref<1x512xf32, #tpu.memory_space<vmem>>, %arg6: memref<1x512xf32, #tpu.memory_space<vmem>>, %arg7: memref<8x512xf32, #tpu.memory_space<vmem>>, %arg8: memref<8x512xf32, #tpu.memory_space<vmem>>) attributes {dimension_semantics = [#tpu.dimension_semantics<parallel>, #tpu.dimension_semantics<arbitrary>], iteration_bounds = array<i64: 1, 1>, scalar_prefetch = 0 : i64, scratch_operands = 1 : i64, tpu.core_type = #tpu.core_type<tc>, window_params = [{transform_indices = @transform_0, window_bounds = array<i64: 8, 896>}, {transform_indices = @transform_1, window_bounds = array<i64: 896, 512>}, {pipeline_mode = #tpu.pipeline_mode<synchronous>, transform_indices = @transform_2, window_bounds = array<i64: 1, 512>}, {pipeline_mode = #tpu.pipeline_mode<synchronous>, transform_indices = @transform_3, window_bounds = array<i64: 1, 512>}, {pipeline_mode = #tpu.pipeline_mode<synchronous>, transform_indices = @transform_4, window_bounds = array<i64: 1, 512>}, {transform_indices = @transform_5, window_bounds = array<i64: 8, 512>}]} {
    %c0_i32 = arith.constant 0 : i32
    %0 = arith.cmpi eq, %arg1, %c0_i32 : i32
    %1 = arith.extui %0 : i1 to i32
    %c0_i32_0 = arith.constant 0 : i32
    %2 = arith.cmpi ne, %1, %c0_i32_0 : i32
    scf.if %2 {
      %cst_10 = arith.constant 0.000000e+00 : f32
      %12 = vector.broadcast %cst_10 : f32 to vector<8x512xf32>
      %c0_11 = arith.constant 0 : index
      %c0_12 = arith.constant 0 : index
      %13 = vector.load %arg8[%c0_11, %c0_12] : memref<8x512xf32, #tpu.memory_space<vmem>>, vector<8x512xf32>
      tpu.vector_store %arg8[%c0_11, %c0_12], %12 {strides = array<i32>} : memref<8x512xf32, #tpu.memory_space<vmem>>, vector<8x512xf32>,
    } else {
    }
    %c0 = arith.constant 0 : index
    %c0_1 = arith.constant 0 : index
    %3 = vector.load %arg8[%c0, %c0_1] : memref<8x512xf32, #tpu.memory_space<vmem>>, vector<8x512xf32>
    %c0_2 = arith.constant 0 : index
    %c0_3 = arith.constant 0 : index
    %4 = vector.load %arg2[%c0_2, %c0_3] : memref<8x896xbf16, #tpu.memory_space<vmem>>, vector<8x896xbf16>
    %c0_4 = arith.constant 0 : index
    %c0_5 = arith.constant 0 : index
    %5 = vector.load %arg3[%c0_4, %c0_5] : memref<896x512xbf16, #tpu.memory_space<vmem>>, vector<896x512xbf16>
    %cst = arith.constant dense<0.000000e+00> : vector<8x512xf32>
    %6 = tpu.matmul %4, %5, %cst {dimension_numbers = #tpu.dot_dimension_numbers<[1], [0], [0], [1], [0, 0, 1, 1], [], []>} : vector<8x896xbf16>, vector<896x512xbf16>, vector<8x512xf32> -> vector<8x512xf32>
    %7 = arith.addf %3, %6 : vector<8x512xf32>
    %c0_6 = arith.constant 0 : index
    %c0_7 = arith.constant 0 : index
    %8 = vector.load %arg8[%c0_6, %c0_7] : memref<8x512xf32, #tpu.memory_space<vmem>>, vector<8x512xf32>
    tpu.vector_store %arg8[%c0_6, %c0_7], %7 {strides = array<i32>} : memref<8x512xf32, #tpu.memory_space<vmem>>, vector<8x512xf32>,
    %c0_i32_8 = arith.constant 0 : i32
    %9 = arith.cmpi eq, %arg1, %c0_i32_8 : i32
    %10 = arith.extui %9 : i1 to i32
    %c0_i32_9 = arith.constant 0 : i32
    %11 = arith.cmpi ne, %10, %c0_i32_9 : i32
    scf.if %11 {
      %c0_10 = arith.constant 0 : index
      %c0_11 = arith.constant 0 : index
      %12 = vector.load %arg8[%c0_10, %c0_11] : memref<8x512xf32, #tpu.memory_space<vmem>>, vector<8x512xf32>
      %c0_12 = arith.constant 0 : index
      %c0_13 = arith.constant 0 : index
      %13 = vector.load %arg4[%c0_12, %c0_13] : memref<1x512xf32, #tpu.memory_space<vmem>>, vector<1x512xf32>
      %14 = vector.broadcast %13 : vector<1x512xf32> to vector<8x512xf32>
      %15 = arith.addf %12, %14 : vector<8x512xf32>
      %cst_14 = arith.constant dense<0.000000e+00> : vector<8xf32>
      %16 = vector.multi_reduction <add>, %15, %cst_14 [1] : vector<8x512xf32> to vector<8xf32>
      %17 = vector.shape_cast %16 : vector<8xf32> to vector<8x1xf32>
      %cst_15 = arith.constant 5.120000e+02 : f32
      %18 = vector.broadcast %cst_15 : f32 to vector<8x1xf32>
      %19 = arith.divf %17, %18 : vector<8x1xf32>
      %20 = vector.broadcast %19 : vector<8x1xf32> to vector<8x512xf32>
      %21 = arith.subf %15, %20 : vector<8x512xf32>
      %22 = arith.mulf %21, %21 : vector<8x512xf32>
      %cst_16 = arith.constant dense<0.000000e+00> : vector<8xf32>
      %23 = vector.multi_reduction <add>, %22, %cst_16 [1] : vector<8x512xf32> to vector<8xf32>
      %24 = vector.shape_cast %23 : vector<8xf32> to vector<8x1xf32>
      %cst_17 = arith.constant 5.120000e+02 : f32
      %25 = vector.broadcast %cst_17 : f32 to vector<8x1xf32>
      %26 = arith.divf %24, %25 : vector<8x1xf32>
      %27 = vector.broadcast %19 : vector<8x1xf32> to vector<8x512xf32>
      %28 = arith.subf %15, %27 : vector<8x512xf32>
      %cst_18 = arith.constant 9.99999974E-6 : f32
      %29 = vector.broadcast %cst_18 : f32 to vector<8x1xf32>
      %30 = arith.addf %26, %29 : vector<8x1xf32>
      %31 = math.rsqrt %30 : vector<8x1xf32>
      %32 = vector.broadcast %31 : vector<8x1xf32> to vector<8x512xf32>
      %33 = arith.mulf %28, %32 : vector<8x512xf32>
      %c0_19 = arith.constant 0 : index
      %c0_20 = arith.constant 0 : index
      %34 = vector.load %arg5[%c0_19, %c0_20] : memref<1x512xf32, #tpu.memory_space<vmem>>, vector<1x512xf32>
      %35 = vector.broadcast %34 : vector<1x512xf32> to vector<8x512xf32>
      %36 = arith.mulf %33, %35 : vector<8x512xf32>
      %c0_21 = arith.constant 0 : index
      %c0_22 = arith.constant 0 : index
      %37 = vector.load %arg6[%c0_21, %c0_22] : memref<1x512xf32, #tpu.memory_space<vmem>>, vector<1x512xf32>
      %38 = vector.broadcast %37 : vector<1x512xf32> to vector<8x512xf32>
      %39 = arith.addf %36, %38 : vector<8x512xf32>
      %40 = math.tanh %39 : vector<8x512xf32>
      %c0_23 = arith.constant 0 : index
      %c0_24 = arith.constant 0 : index
      %41 = vector.load %arg7[%c0_23, %c0_24] : memref<8x512xf32, #tpu.memory_space<vmem>>, vector<8x512xf32>
      tpu.vector_store %arg7[%c0_23, %c0_24], %40 {strides = array<i32>} : memref<8x512xf32, #tpu.memory_space<vmem>>, vector<8x512xf32>,
    } else {
    }
    return
  }
  func.func @transform_0(%arg0: i32, %arg1: i32) -> (i32, i32) {
    %c0_i32 = arith.constant 0 : i32
    return %arg0, %arg1 : i32, i32
  }
  func.func @transform_1(%arg0: i32, %arg1: i32) -> (i32, i32) {
    %c0_i32 = arith.constant 0 : i32
    %c0_i32_0 = arith.constant 0 : i32
    return %arg1, %c0_i32 : i32, i32
  }
  func.func @transform_2(%arg0: i32, %arg1: i32) -> (i32, i32) {
    %c0_i32 = arith.constant 0 : i32
    %c0_i32_0 = arith.constant 0 : i32
    %c0_i32_1 = arith.constant 0 : i32
    return %c0_i32, %c0_i32_0 : i32, i32
  }
  func.func @transform_3(%arg0: i32, %arg1: i32) -> (i32, i32) {
    %c0_i32 = arith.constant 0 : i32
    %c0_i32_0 = arith.constant 0 : i32
    %c0_i32_1 = arith.constant 0 : i32
    return %c0_i32, %c0_i32_0 : i32, i32
  }
  func.func @transform_4(%arg0: i32, %arg1: i32) -> (i32, i32) {
    %c0_i32 = arith.constant 0 : i32
    %c0_i32_0 = arith.constant 0 : i32
    %c0_i32_1 = arith.constant 0 : i32
    return %c0_i32, %c0_i32_0 : i32, i32
  }
  func.func @transform_5(%arg0: i32, %arg1: i32) -> (i32, i32) {
    %c0_i32 = arith.constant 0 : i32
    %c0_i32_0 = arith.constant 0 : i32
    return %arg0, %c0_i32 : i32, i32
  }
}

</mosaic_0001>

<bundles_post_ra>
// kernel: progressive_encoder_forward.5
= control target key start
LH: loop header
LB: loop body
LE: loop exit
PB: predicated region body
PF: predicated region fallthrough
CT: control target
= control target key end

     0   :  { %vm197_vm0 = vcmask 1041408   ;;  %vm148_vm1 = vcmask 293888   ;;  %vm351_vm2 = vcmask 257024   ;;  %s751_s1 = inlined_call_operand.vmem [shape: bf16[36,32], index: 1, kind: input, shape index: {}]   ;;  %s752_s2 = inlined_call_operand.vmem [shape: f32[1,32], index: 2, kind: input, shape index: {}]   ;;  %s753_s0 = inlined_call_operand.vmem [shape: bf16[248,36], index: 0, kind: input, shape index: {}]   ;;  %s754_s3 = inlined_call_operand.vmem [shape: bf16[248,32], index: 3, kind: output, shape index: {}]  }
   0x1   :  { %v50_v0 = vld [vmem:[%s751_s1 + $0x10] sm:$0x3]  ;;  %v487_v4 = vld [vmem:[%s751_s1 + $0x8] sm:$0xff]  ;;  %v486_v5 = vld [vmem:[%s751_s1] sm:$0xff] }
   0x2   :  { %v142_v1 = vunpack.c.l.b16 %v50_v0  ;;  %v471_v6 = vld [vmem:[%s753_s0] sm:$0xff]  ;;  %v472_v10 = vld [vmem:[%s753_s0 + $0x8] sm:$0xff]  ;;  %v473_v14 = vld [vmem:[%s753_s0 + $0x10] sm:$0xff] }
   0x3   :  { %v475_v7 = vld [vmem:[%s753_s0 + $0x20] sm:$0xff]  ;;  %v476_v11 = vld [vmem:[%s753_s0 + $0x28] sm:$0xff]  ;;  %v477_v15 = vld [vmem:[%s753_s0 + $0x30] sm:$0xff] }
   0x4   :  { %v145_v2 = vpack.c.b16 %v142_v1, %v142_v1  ;;  %v479_v8 = vld [vmem:[%s753_s0 + $0x40] sm:$0xff]  ;;  %v480_v12 = vld [vmem:[%s753_s0 + $0x48] sm:$0xff]  ;;  %v481_v16 = vld [vmem:[%s753_s0 + $0x50] sm:$0xff] }
   0x5   :  { %v483_v9 = vld [vmem:[%s753_s0 + $0x60] sm:$0xff]  ;;  %v484_v13 = vld [vmem:[%s753_s0 + $0x68] sm:$0xff]  ;;  %v485_v17 = vld [vmem:[%s753_s0 + $0x70] sm:$0xff] }
   0x6   :  { %v199_v3 = vsel %vm197_vm0, %v145_v2, 0  ;;  %v45_v18 = vld [vmem:[%s753_s0 + $0x78] sm:$0xf]  ;;  %v594_v24 = vld [vmem:[%s752_s2] ss:$0 sm:$0xff] }
   0x7   :  { %206 = vmatpush.bf16.msra.mxu0 %v199_v3  ;;  %488 = vmatpush.bf16.msra.mxu1 %v199_v3  ;;  %v116_v19 = vunpack.c.l.b16 %v45_v18  ;;  %v474_v20 = vld [vmem:[%s753_s0 + $0x18] sm:$0xff] }
   0x8   :  { %489 = vmatpush.bf16.msra.mxu2 %v199_v3  ;;  %490 = vmatpush.bf16.msra.mxu3 %v199_v3  ;;  %v478_v21 = vld [vmem:[%s753_s0 + $0x38] sm:$0xff] }
   0x9   :  { %v482_v22 = vld [vmem:[%s753_s0 + $0x58] sm:$0xff]  ;;  %v132_v23 = vpack.c.b16 %v116_v19, %v116_v19 }
   0xb   :  { %207 = vmatpush.bf16.msra.mxu0 %v487_v4  ;;  %491 = vmatpush.bf16.msra.mxu1 %v487_v4 }
   0xc   :  { %492 = vmatpush.bf16.msra.mxu2 %v487_v4  ;;  %493 = vmatpush.bf16.msra.mxu3 %v487_v4 }
   0xf   :  { %208 = vmatpush.bf16.msra.mxu0 %v486_v5  ;;  %494 = vmatpush.bf16.msra.mxu1 %v486_v5 }
  0x10   :  { %495 = vmatpush.bf16.msra.mxu2 %v486_v5  ;;  %496 = vmatpush.bf16.msra.mxu3 %v486_v5 }
  0x12   :  { %455 = vmatmul.msk.bf16.vlgmr.msra.gmra.mxu0 %vm148_vm1, %v471_v6  ;;  %459 = vmatmul.msk.bf16.vlgmr.msra.gmra.mxu1 %vm148_vm1, %v475_v7 }
  0x13   :  { %463 = vmatmul.msk.bf16.vlgmr.msra.gmra.mxu2 %vm148_vm1, %v479_v8  ;;  %467 = vmatmul.msk.bf16.vlgmr.msra.gmra.mxu3 %vm148_vm1, %v483_v9 }
  0x22   :  { %456 = vmatmul.msk.bf16.gmra.mxu0 %vm148_vm1, %v472_v10  ;;  %460 = vmatmul.msk.bf16.gmra.mxu1 %vm148_vm1, %v476_v11 }
  0x23   :  { %464 = vmatmul.msk.bf16.gmra.mxu2 %vm148_vm1, %v480_v12  ;;  %468 = vmatmul.msk.bf16.gmra.mxu3 %vm148_vm1, %v484_v13 }
  0x32   :  { %457 = vmatmul.msk.bf16.gmra.mxu0 %vm148_vm1, %v473_v14  ;;  %461 = vmatmul.msk.bf16.gmra.mxu1 %vm148_vm1, %v477_v15 }
  0x33   :  { %465 = vmatmul.msk.bf16.gmra.mxu2 %vm148_vm1, %v481_v16  ;;  %469 = vmatmul.msk.bf16.gmra.mxu3 %vm148_vm1, %v485_v17 }
  0x42   :  { %458 = vmatmul.msk.bf16.gmra.mxu0 %vm148_vm1, %v474_v20  ;;  %462 = vmatmul.msk.bf16.gmra.mxu1 %vm148_vm1, %v478_v21 }
  0x43   :  { %466 = vmatmul.msk.bf16.gmra.mxu2 %vm148_vm1, %v482_v22  ;;  %470 = vmatmul.msk.bf16.gmra.mxu3 %vm148_vm1, %v132_v23 }
  0x8f   :  { %v210_v25 = vpop.f32.mrf.mxu0  ;;  %v230_v26 = vpop.f32.mrf.mxu1 }
  0x90   :  { %v211_v27 = vadd.f32 %v594_v24, %v210_v25  ;;  %v231_v28 = vadd.f32 %v594_v24, %v230_v26 }
  0x92   :  { %v289_v29 = vmax.f32 %v211_v27, 0.0  ;;  %v297_v30 = vmax.f32 %v231_v28, 0.0 }
  0x94   :  { %v320_v31 = vpack.c.bf16 %v289_v29, %v289_v29  ;;  %v328_v32 = vpack.c.bf16 %v297_v30, %v297_v30 }
  0x96   :  { %352 = vst.msk [vmem:[%s754_s3] sm:$0xf] %vm351_vm2, %v320_v31  ;;  %v250_v33 = vpop.f32.mrf.mxu2  ;;  %v270_v34 = vpop.f32.mrf.mxu3 }
  0x97   :  { %360 = vst.msk [vmem:[%s754_s3 + $0x20] sm:$0xf] %vm351_vm2, %v328_v32  ;;  %v251_v35 = vadd.f32 %v594_v24, %v250_v33  ;;  %v271_v36 = vadd.f32 %v594_v24, %v270_v34  ;;  %v212_v37 = vpop.f32.mrf.mxu0  ;;  %v232_v38 = vpop.f32.mrf.mxu1 }
  0x98   :  { %v213_v39 = vadd.f32 %v594_v24, %v212_v37  ;;  %v233_v40 = vadd.f32 %v594_v24, %v232_v38 }
  0x99   :  { %v305_v41 = vmax.f32 %v251_v35, 0.0  ;;  %v313_v42 = vmax.f32 %v271_v36, 0.0 }
  0x9a   :  { %v290_v43 = vmax.f32 %v213_v39, 0.0  ;;  %v298_v44 = vmax.f32 %v233_v40, 0.0 }
  0x9b   :  { %v336_v45 = vpack.c.bf16 %v305_v41, %v305_v41  ;;  %v344_v46 = vpack.c.bf16 %v313_v42, %v313_v42 }
  0x9c   :  { %v321_v47 = vpack.c.bf16 %v290_v43, %v290_v43  ;;  %v329_v48 = vpack.c.bf16 %v298_v44, %v298_v44 }
  0x9d   :  { %368 = vst.msk [vmem:[%s754_s3 + $0x40] sm:$0xf] %vm351_vm2, %v336_v45 }
  0x9e   :  { %376 = vst.msk [vmem:[%s754_s3 + $0x60] sm:$0xf] %vm351_vm2, %v344_v46  ;;  %v252_v49 = vpop.f32.mrf.mxu2  ;;  %v272_v50 = vpop.f32.mrf.mxu3 }
  0x9f   :  { %353 = vst.msk [vmem:[%s754_s3 + $0x4] sm:$0xf] %vm351_vm2, %v321_v47  ;;  %v253_v51 = vadd.f32 %v594_v24, %v252_v49  ;;  %v273_v52 = vadd.f32 %v594_v24, %v272_v50  ;;  %v215_v53 = vpop.f32.mrf.mxu0  ;;  %v235_v54 = vpop.f32.mrf.mxu1 }
  0xa0   :  { %361 = vst.msk [vmem:[%s754_s3 + $0x24] sm:$0xf] %vm351_vm2, %v329_v48  ;;  %v216_v55 = vadd.f32 %v594_v24, %v215_v53  ;;  %v236_v56 = vadd.f32 %v594_v24, %v235_v54 }
  0xa1   :  { %v306_v57 = vmax.f32 %v253_v51, 0.0  ;;  %v314_v58 = vmax.f32 %v273_v52, 0.0 }
  0xa2   :  { %v291_v59 = vmax.f32 %v216_v55, 0.0  ;;  %v299_v60 = vmax.f32 %v236_v56, 0.0 }
  0xa3   :  { %v337_v61 = vpack.c.bf16 %v306_v57, %v306_v57  ;;  %v345_v62 = vpack.c.bf16 %v314_v58, %v314_v58 }
  0xa4   :  { %v322_v63 = vpack.c.bf16 %v291_v59, %v291_v59  ;;  %v330_v0 = vpack.c.bf16 %v299_v60, %v299_v60 }
  0xa5   :  { %369 = vst.msk [vmem:[%s754_s3 + $0x44] sm:$0xf] %vm351_vm2, %v337_v61 }
  0xa6   :  { %377 = vst.msk [vmem:[%s754_s3 + $0x64] sm:$0xf] %vm351_vm2, %v345_v62  ;;  %v255_v1 = vpop.f32.mrf.mxu2  ;;  %v275_v2 = vpop.f32.mrf.mxu3 }
  0xa7   :  { %354 = vst.msk [vmem:[%s754_s3 + $0x8] sm:$0xf] %vm351_vm2, %v322_v63  ;;  %v256_v3 = vadd.f32 %v594_v24, %v255_v1  ;;  %v276_v4 = vadd.f32 %v594_v24, %v275_v2  ;;  %v217_v5 = vpop.f32.mrf.mxu0  ;;  %v237_v6 = vpop.f32.mrf.mxu1 }
  0xa8   :  { %362 = vst.msk [vmem:[%s754_s3 + $0x28] sm:$0xf] %vm351_vm2, %v330_v0  ;;  %v218_v7 = vadd.f32 %v594_v24, %v217_v5  ;;  %v238_v8 = vadd.f32 %v594_v24, %v237_v6 }
  0xa9   :  { %v307_v9 = vmax.f32 %v256_v3, 0.0  ;;  %v315_v10 = vmax.f32 %v276_v4, 0.0 }
  0xaa   :  { %v292_v11 = vmax.f32 %v218_v7, 0.0  ;;  %v300_v12 = vmax.f32 %v238_v8, 0.0 }
  0xab   :  { %v338_v13 = vpack.c.bf16 %v307_v9, %v307_v9  ;;  %v346_v14 = vpack.c.bf16 %v315_v10, %v315_v10 }
  0xac   :  { %v323_v15 = vpack.c.bf16 %v292_v11, %v292_v11  ;;  %v331_v16 = vpack.c.bf16 %v300_v12, %v300_v12 }
  0xad   :  { %370 = vst.msk [vmem:[%s754_s3 + $0x48] sm:$0xf] %vm351_vm2, %v338_v13 }
  0xae   :  { %378 = vst.msk [vmem:[%s754_s3 + $0x68] sm:$0xf] %vm351_vm2, %v346_v14  ;;  %v257_v17 = vpop.f32.mrf.mxu2  ;;  %v277_v18 = vpop.f32.mrf.mxu3 }
  0xaf   :  { %355 = vst.msk [vmem:[%s754_s3 + $0xc] sm:$0xf] %vm351_vm2, %v323_v15  ;;  %v258_v19 = vadd.f32 %v594_v24, %v257_v17  ;;  %v278_v20 = vadd.f32 %v594_v24, %v277_v18  ;;  %v220_v21 = vpop.f32.mrf.mxu0  ;;  %v240_v22 = vpop.f32.mrf.mxu1 }
  0xb0   :  { %363 = vst.msk [vmem:[%s754_s3 + $0x2c] sm:$0xf] %vm351_vm2, %v331_v16  ;;  %v221_v23 = vadd.f32 %v594_v24, %v220_v21  ;;  %v241_v25 = vadd.f32 %v594_v24, %v240_v22 }
  0xb1   :  { %v308_v26 = vmax.f32 %v258_v19, 0.0  ;;  %v316_v27 = vmax.f32 %v278_v20, 0.0 }
  0xb2   :  { %v293_v28 = vmax.f32 %v221_v23, 0.0  ;;  %v301_v29 = vmax.f32 %v241_v25, 0.0 }
  0xb3   :  { %v339_v30 = vpack.c.bf16 %v308_v26, %v308_v26  ;;  %v347_v31 = vpack.c.bf16 %v316_v27, %v316_v27 }
  0xb4   :  { %v324_v32 = vpack.c.bf16 %v293_v28, %v293_v28  ;;  %v332_v33 = vpack.c.bf16 %v301_v29, %v301_v29 }
  0xb5   :  { %371 = vst.msk [vmem:[%s754_s3 + $0x4c] sm:$0xf] %vm351_vm2, %v339_v30 }
  0xb6   :  { %379 = vst.msk [vmem:[%s754_s3 + $0x6c] sm:$0xf] %vm351_vm2, %v347_v31  ;;  %v260_v34 = vpop.f32.mrf.mxu2  ;;  %v280_v35 = vpop.f32.mrf.mxu3 }
  0xb7   :  { %356 = vst.msk [vmem:[%s754_s3 + $0x10] sm:$0xf] %vm351_vm2, %v324_v32  ;;  %v261_v36 = vadd.f32 %v594_v24, %v260_v34  ;;  %v281_v37 = vadd.f32 %v594_v24, %v280_v35  ;;  %v222_v38 = vpop.f32.mrf.mxu0  ;;  %v242_v39 = vpop.f32.mrf.mxu1 }
  0xb8   :  { %364 = vst.msk [vmem:[%s754_s3 + $0x30] sm:$0xf] %vm351_vm2, %v332_v33  ;;  %v223_v40 = vadd.f32 %v594_v24, %v222_v38  ;;  %v243_v41 = vadd.f32 %v594_v24, %v242_v39 }
  0xb9   :  { %v309_v42 = vmax.f32 %v261_v36, 0.0  ;;  %v317_v43 = vmax.f32 %v281_v37, 0.0 }
  0xba   :  { %v294_v44 = vmax.f32 %v223_v40, 0.0  ;;  %v302_v45 = vmax.f32 %v243_v41, 0.0 }
  0xbb   :  { %v340_v46 = vpack.c.bf16 %v309_v42, %v309_v42  ;;  %v348_v47 = vpack.c.bf16 %v317_v43, %v317_v43 }
  0xbc   :  { %v325_v48 = vpack.c.bf16 %v294_v44, %v294_v44  ;;  %v333_v49 = vpack.c.bf16 %v302_v45, %v302_v45 }
  0xbd   :  { %372 = vst.msk [vmem:[%s754_s3 + $0x50] sm:$0xf] %vm351_vm2, %v340_v46 }
  0xbe   :  { %380 = vst.msk [vmem:[%s754_s3 + $0x70] sm:$0xf] %vm351_vm2, %v348_v47  ;;  %v262_v50 = vpop.f32.mrf.mxu2  ;;  %v282_v51 = vpop.f32.mrf.mxu3 }
  0xbf   :  { %357 = vst.msk [vmem:[%s754_s3 + $0x14] sm:$0xf] %vm351_vm2, %v325_v48  ;;  %v263_v52 = vadd.f32 %v594_v24, %v262_v50  ;;  %v283_v53 = vadd.f32 %v594_v24, %v282_v51  ;;  %v225_v54 = vpop.f32.mrf.mxu0  ;;  %v245_v55 = vpop.f32.mrf.mxu1 }
  0xc0   :  { %365 = vst.msk [vmem:[%s754_s3 + $0x34] sm:$0xf] %vm351_vm2, %v333_v49  ;;  %v226_v56 = vadd.f32 %v594_v24, %v225_v54  ;;  %v246_v57 = vadd.f32 %v594_v24, %v245_v55 }
  0xc1   :  { %v310_v58 = vmax.f32 %v263_v52, 0.0  ;;  %v318_v59 = vmax.f32 %v283_v53, 0.0 }
  0xc2   :  { %v295_v60 = vmax.f32 %v226_v56, 0.0  ;;  %v303_v61 = vmax.f32 %v246_v57, 0.0 }
  0xc3   :  { %v341_v62 = vpack.c.bf16 %v310_v58, %v310_v58  ;;  %v349_v63 = vpack.c.bf16 %v318_v59, %v318_v59 }
  0xc4   :  { %v326_v0 = vpack.c.bf16 %v295_v60, %v295_v60  ;;  %v334_v1 = vpack.c.bf16 %v303_v61, %v303_v61 }
  0xc5   :  { %373 = vst.msk [vmem:[%s754_s3 + $0x54] sm:$0xf] %vm351_vm2, %v341_v62 }
  0xc6   :  { %381 = vst.msk [vmem:[%s754_s3 + $0x74] sm:$0xf] %vm351_vm2, %v349_v63  ;;  %v265_v2 = vpop.f32.mrf.mxu2  ;;  %v285_v3 = vpop.f32.mrf.mxu3 }
  0xc7   :  { %358 = vst.msk [vmem:[%s754_s3 + $0x18] sm:$0xf] %vm351_vm2, %v326_v0  ;;  %v266_v4 = vadd.f32 %v594_v24, %v265_v2  ;;  %v286_v5 = vadd.f32 %v594_v24, %v285_v3  ;;  %v227_v6 = vpop.f32.mrf.mxu0  ;;  %v247_v7 = vpop.f32.mrf.mxu1 }
  0xc8   :  { %366 = vst.msk [vmem:[%s754_s3 + $0x38] sm:$0xf] %vm351_vm2, %v334_v1  ;;  %v228_v8 = vadd.f32 %v594_v24, %v227_v6  ;;  %v248_v9 = vadd.f32 %v594_v24, %v247_v7 }
  0xc9   :  { %v311_v10 = vmax.f32 %v266_v4, 0.0  ;;  %v319_v11 = vmax.f32 %v286_v5, 0.0 }
  0xca   :  { %v296_v12 = vmax.f32 %v228_v8, 0.0  ;;  %v304_v13 = vmax.f32 %v248_v9, 0.0 }
  0xcb   :  { %v342_v14 = vpack.c.bf16 %v311_v10, %v311_v10  ;;  %v350_v15 = vpack.c.bf16 %v319_v11, %v319_v11 }
  0xcc   :  { %v327_v16 = vpack.c.bf16 %v296_v12, %v296_v12  ;;  %v335_v17 = vpack.c.bf16 %v304_v13, %v304_v13 }
  0xcd   :  { %374 = vst.msk [vmem:[%s754_s3 + $0x58] sm:$0xf] %vm351_vm2, %v342_v14 }
  0xce   :  { %382 = vst.msk [vmem:[%s754_s3 + $0x78] sm:$0xf] %vm351_vm2, %v350_v15  ;;  %v267_v18 = vpop.f32.mrf.mxu2  ;;  %v287_v19 = vpop.f32.mrf.mxu3 }
  0xcf   :  { %359 = vst.msk [vmem:[%s754_s3 + $0x1c] sm:$0xf] %vm351_vm2, %v327_v16  ;;  %v268_v20 = vadd.f32 %v594_v24, %v267_v18 }
  0xd0   :  { %367 = vst.msk [vmem:[%s754_s3 + $0x3c] sm:$0xf] %vm351_vm2, %v335_v17 }
  0xd1   :  { %v312_v21 = vmax.f32 %v268_v20, 0.0 }
  0xd3   :  { %v343_v22 = vpack.c.bf16 %v312_v21, %v312_v21 }
  0xd5   :  { %375 = vst.msk [vmem:[%s754_s3 + $0x5c] sm:$0xf] %vm351_vm2, %v343_v22 }

// kernel: progressive_encoder_forward.6
= control target key start
LH: loop header
LB: loop body
LE: loop exit
PB: predicated region body
PF: predicated region fallthrough
CT: control target
= control target key end

     0   :  { %s1880_s12 = smov 0   ;;  %s2336_s0 = inlined_call_operand.vmem [shape: bf16[2,121,32], index: 0, kind: input, shape index: {}]   ;;  %s2337_s1 = inlined_call_operand.vmem [shape: bf16[288,32], index: 1, kind: input, shape index: {}]   ;;  %s2338_s2 = inlined_call_operand.vmem [shape: f32[1,32], index: 2, kind: input, shape index: {}]   ;;  %s2339_s3 = inlined_call_operand.vmem [shape: bf16[2,97,32], index: 3, kind: output, shape index: {}]  }
   0x1 LB: > { %s1555_s13 = sadd.s32 4294967295, %s1858_s12   ;;  %p1559_p0 = scmp.ge.s32.totalorder %s1858_s12, 1  ;;  %s1858_s12 = sphi %s1880_s12, %s13_s12  }
   0x2   : > { %p137_p1 = scmp.lt.s32.totalorder %s1858_s12, 3 }
   0x4   : > { %p138_p2 = pnand %p1559_p0, %p137_p1 }
   0x5   : > { %p161_p3 = scmp.lt.s32.totalorder (!%p138_p2), %s1555_s13, 1 }
   0x6   : > { %141 = sbr.rel (%p138_p2) target bundleno = 410 (0x19a), region = 32 }
   0xb   : > { %v1797_v0 = vld [vmem:[%s2337_s1 + $0x18] sm:$0xff]  ;;  %v1796_v1 = vld [vmem:[%s2337_s1 + $0x10] sm:$0xff]  ;;  %s2341_s13 = smov (!%p161_p3, %s1555_s13), 1  ;;  %v1795_v2 = vld [vmem:[%s2337_s1 + $0x8] sm:$0xff]  ;;  %vm226_vm0 = vsmask.f32 7424 }
   0xc   : > { %321 = vmatpush.bf16.msra.mxu0 %v1797_v0  ;;  %1836 = vmatpush.bf16.msra.mxu1 %v1797_v0  ;;  %s1788_s20 = sshll.u32 %s2341_s13, 6  ;;  %v1806_v3 = vld [vmem:[%s2337_s1 + $0x38] sm:$0xff]  ;;  %v1808_v4 = vld [vmem:[%s2337_s1 + $0x48] sm:$0xff]  ;;  %v1794_v6 = vld [vmem:[%s2337_s1] sm:$0xff]  ;;  %vm293_vm1 = vcmask 261120   ;;  %vm439_vm2 = vcmask 1046528  }
   0xd   : > { %1838 = vmatpush.bf16.msra.mxu3 %v1797_v0  ;;  %1837 = vmatpush.bf16.msra.mxu2 %v1797_v0  ;;  %s1906_s25 = scalar_lea.vmem %s2336_s0, %s1788_s20  ;;  %v1799_v5 = vld [vmem:[%s2337_s1 + $0x28] sm:$0xff]  ;;  %v1805_v20 = vld [vmem:[%s2337_s1 + $0x30] sm:$0xff]  ;;  %v1798_v25 = vld [vmem:[%s2337_s1 + $0x20] sm:$0xff]  ;;  %vm756_vm3 = vcmask 1045504   ;;  %vm592_vm4 = vsmask.f32 6400 }
   0xe   : > { %v1918_v7 = vld [vmem:[%s1906_s25] sm:$0xff]   ;;  %v1921_v8 = vld [vmem:[%s1906_s25 + $0x8] sm:$0xff]  ;;  %v1924_v9 = vld [vmem:[%s1906_s25 + $0x10] sm:$0xff]  ;;  %vm1040_vm5 = vcmask 1044480   ;;  %vm863_vm6 = vsmask.f32 5376 }
   0xf   : > { %v228_v10 = vshrl.u32 %v1918_v7, 16  ;;  %v230_v11 = vshll.u32 %v1918_v7, 16  ;;  %v1929_v12 = vld [vmem:[%s1906_s25 + $0x18] sm:$0xff]  ;;  %v1932_v13 = vld [vmem:[%s1906_s25 + $0x28] sm:$0xff]  ;;  %v184_v14 = vld [vmem:[%s1906_s25 + $0x30] sm:$0x1] }
  0x10   : > { %322 = vmatpush.bf16.msra.mxu0 %v1796_v1  ;;  %1839 = vmatpush.bf16.msra.mxu1 %v1796_v1  ;;  %v235_v15 = vshll.u32 %v1921_v8, 16  ;;  %v243_v16 = vshll.u32 %v1924_v9, 16  ;;  %v247_v17 = vshrl.u32 %v1924_v9, 16  ;;  %v218_v18 = vunpack.c.l.b16 %v184_v14  ;;  %v1939_v19 = vld [vmem:[%s1906_s25 + $0x20] sm:$0xff]  ;;  %v1818_v43 = vld [vmem:[%s2337_s1 + $0x68] sm:$0xff]  ;;  %v1820_v46 = vld [vmem:[%s2337_s1 + $0x78] sm:$0xff] }
  0x11   : > { %1841 = vmatpush.bf16.msra.mxu3 %v1796_v1  ;;  %1840 = vmatpush.bf16.msra.mxu2 %v1796_v1  ;;  %v232_v21 = vrot.slane %v230_v11, 1  ;;  %v251_v22 = vshll.u32 %v1929_v12, 16  ;;  %v267_v23 = vshll.u32 %v1932_v13, 16  ;;  %v271_v24 = vshrl.u32 %v1932_v13, 16  ;;  %v1807_v26 = vld [vmem:[%s2337_s1 + $0x40] sm:$0xff]  ;;  %v1810_v47 = vld [vmem:[%s2337_s1 + $0x58] sm:$0xff] }
  0x12   : > { %v237_v27 = vrot.slane %v235_v15, 1  ;;  %v245_v28 = vrot.slane %v243_v16, 1  ;;  %v1953_v29 = vpack.c.b16 %v218_v18, %v218_v18  ;;  %v259_v30 = vshll.u32 %v1939_v19, 16  ;;  %v1828_v48 = vld [vmem:[%s2337_s1 + $0x88] sm:$0xff]  ;;  %v1833_v50 = vld [vmem:[%s1906_s25] sm:$0xf0] }
  0x13   : > { %v233_v31 = vor.u32 %v232_v21, %v228_v10  ;;  %v253_v32 = vrot.slane %v251_v22, 1  ;;  %v269_v33 = vrot.slane %v267_v23, 1  ;;  %v263_v34 = vshrl.u32 %v1939_v19, 16  ;;  %v1834_v51 = vld [vmem:[%s1906_s25] sm:$0xe]  ;;  %s1842_s4 = smul.u32 52, %s2341_s13 }
  0x14   : > { %390 = vmatpush.bf16.msrb.mxu1 %v1795_v2  ;;  %809 = vmatpush.bf16.msrb.mxu0 %v1808_v4  ;;  %v249_v35 = vor.u32 %v247_v17, %v245_v28  ;;  %v275_v36 = vshll.u32 %v1953_v29, 16  ;;  %v261_v37 = vrot.slane %v259_v30, 1  ;;  %v239_v49 = vshrl.u32 %v1921_v8, 16  ;;  %v542_v55 = vld [vmem:[%s1906_s25 + $0x4] sm:$0xe]  ;;  %v2013_v30 = vld [vmem:[%s1906_s25 + $0x14] sm:$0xff] }
  0x15   : > { %694 = vmatpush.bf16.msrb.mxu3 %v1806_v3  ;;  %492 = vmatpush.bf16.msrb.mxu2 %v1799_v5  ;;  %v238_v38 = vsel %vm226_vm0, %v233_v31, %v237_v27  ;;  %v273_v39 = vor.u32 %v271_v24, %v269_v33  ;;  %v255_v52 = vshrl.u32 %v1929_v12, 16  ;;  %v1835_v53 = vor.u32 %v1834_v51, %v1833_v50  ;;  %v543_v56 = vld [vmem:[%s1906_s25 + $0x8] sm:$0xf]  ;;  %v744_v0 = vld [vmem:[%s1906_s25 + $0x4] sm:$0xc]  ;;  %v1992_v3 = vld [vmem:[%s1906_s25 + $0xc] sm:$0xff]  ;;  %s2282_s7 = scalar_lea.vmem %s2339_s3, %s1842_s4 }
  0x16   : > { %1591 = vmatmul.msk.bf16.vlgmr.msra.gmra.mxu0 %vm293_vm1, %v238_v38  ;;  %v254_v40 = vsel %vm226_vm0, %v249_v35, %v253_v32  ;;  %v277_v41 = vrot.slane %v275_v36, 1  ;;  %v265_v42 = vor.u32 %v263_v34, %v261_v37  ;;  %v241_v54 = vor.u32 %v239_v49, %v237_v27 }
  0x17   : > { %1593 = vmatmul.msk.bf16.vlgmr.msra.gmra.mxu1 %vm293_vm1, %v254_v40  ;;  %v257_v57 = vor.u32 %v255_v52, %v253_v32  ;;  %v440_v58 = vrot.slane %v1835_v53, 1  ;;  %v441_v59 = vrot.slane %v1921_v8, 1  ;;  %v572_v60 = vunpack.c.l.b16 %v542_v55  ;;  %v2032_v40 = vld [vmem:[%s1906_s25 + $0x1c] sm:$0xff]  ;;  %v2060_v53 = vld [vmem:[%s1906_s25 + $0x24] sm:$0xff] }
  0x18   : > { %391 = vmatpush.bf16.msrb.mxu1 %v1794_v6  ;;  %810 = vmatpush.bf16.msrb.mxu0 %v1807_v26  ;;  %v278_v44 = vsel %vm226_vm0, %v273_v39, %v277_v41  ;;  %v270_v45 = vsel %vm226_vm0, %v265_v42, %v269_v33  ;;  %v573_v61 = vunpack.c.l.b16 %v543_v56  ;;  %v246_v62 = vsel %vm226_vm0, %v241_v54, %v245_v28  ;;  %v1817_v41 = vld [vmem:[%s2337_s1 + $0x60] sm:$0xff]  ;;  %v1819_v42 = vld [vmem:[%s2337_s1 + $0x70] sm:$0xff] }
  0x19   : > { %695 = vmatpush.bf16.msrb.mxu3 %v1805_v20  ;;  %493 = vmatpush.bf16.msrb.mxu2 %v1798_v25  ;;  %v262_v63 = vsel %vm226_vm0, %v257_v57, %v261_v37  ;;  %v279_v1 = vshrl.u32 %v1953_v29, 16  ;;  %v442_v2 = vsel %vm439_vm2, %v440_v58, %v441_v59  ;;  %v752_v5 = vunpack.c.l.b16 %v744_v0  ;;  %v1827_v54 = vld [vmem:[%s2337_s1 + $0x80] sm:$0xff]  ;;  %v2082_v0 = vld [vmem:[%s1906_s25 + $0x2c] sm:$0xff] }
  0x1a   : > { %1596 = vmatmul.msk.bf16.vlgmr.msra.gmra.mxu3 %vm293_vm1, %v278_v44  ;;  %1595 = vmatmul.msk.bf16.vlgmr.msra.gmra.mxu2 %vm293_vm1, %v270_v45  ;;  %v585_v4 = vpack.c.b16 %v573_v61, %v572_v60  ;;  %v602_v11 = vshrl.u32 %v1992_v3, 16  ;;  %v605_v14 = vshll.u32 %v1992_v3, 16  ;;  %v758_v22 = vrot.slane %v1992_v3, 2 }
  0x1b   : > { %v1999_v15 = vpack.c.b16 %v573_v61, %v752_v5  ;;  %v443_v25 = vrot.slane %v1924_v9, 1  ;;  %v611_v31 = vshrl.u32 %v2013_v30, 16  ;;  %v614_v32 = vshll.u32 %v2013_v30, 16 }
  0x1c   : > { %940 = vmatpush.bf16.msra.mxu1 %v1810_v47  ;;  %1388 = vmatpush.bf16.msra.mxu0 %v1828_v48  ;;  %v594_v6 = vshrl.u32 %v585_v4, 16  ;;  %v597_v10 = vshll.u32 %v585_v4, 16  ;;  %v604_v18 = vrot.slane %v602_v11, 1  ;;  %v607_v20 = vrot.slane %v605_v14, 2 }
  0x1d   : > { %1093 = vmatpush.bf16.msra.mxu2 %v1818_v43  ;;  %1249 = vmatpush.bf16.msra.mxu3 %v1820_v46  ;;  %v757_v21 = vrot.slane %v1999_v15, 2  ;;  %v444_v28 = vsel %vm439_vm2, %v441_v59, %v443_v25  ;;  %v613_v33 = vrot.slane %v611_v31, 1  ;;  %v616_v34 = vrot.slane %v614_v32, 2  ;;  %v1809_v43 = vld [vmem:[%s2337_s1 + $0x50] sm:$0xff] }
  0x1e   : > { %v596_v16 = vrot.slane %v594_v6, 1  ;;  %v599_v17 = vrot.slane %v597_v10, 2  ;;  %v608_v24 = vor.u32 %v607_v20, %v604_v18  ;;  %v760_v35 = vrot.slane %v2013_v30, 2 }
  0x1f   : > { %v759_v26 = vsel %vm756_vm3, %v757_v21, %v758_v22  ;;  %v617_v36 = vor.u32 %v616_v34, %v613_v33  ;;  %v445_v37 = vrot.slane %v1929_v12, 1  ;;  %v620_v44 = vshrl.u32 %v2032_v40, 16 }
  0x20   : > { %v600_v23 = vor.u32 %v599_v17, %v596_v16  ;;  %941 = vmatpush.bf16.msra.mxu1 %v1809_v43  ;;  %v762_v47 = vrot.slane %v2032_v40, 2  ;;  %v447_v49 = vrot.slane %v1939_v19, 1  ;;  %v629_v55 = vshrl.u32 %v2060_v53, 16  ;;  %1389 = vmatpush.bf16.msra.mxu0 %v1827_v54  ;;  %v554_v17 = vld [vmem:[%s1906_s25 + $0x34] sm:$0x3] }
  0x21   : > { %v618_v38 = vsel %vm592_vm4, %v608_v24, %v617_v36  ;;  %v446_v39 = vsel %vm439_vm2, %v443_v25, %v445_v37  ;;  %1094 = vmatpush.bf16.msra.mxu2 %v1817_v41  ;;  %1250 = vmatpush.bf16.msra.mxu3 %v1819_v42  ;;  %v622_v45 = vrot.slane %v620_v44, 1  ;;  %v632_v56 = vshll.u32 %v2060_v53, 16  ;;  %v1811_v41 = vld [vmem:[%s1906_s25 + $0x8] sm:$0xf0]  ;;  %v1812_v42 = vld [vmem:[%s1906_s25 + $0x10] sm:$0xff] }
  0x22   : > { %v609_v27 = vsel %vm592_vm4, %v600_v23, %v608_v24  ;;  %v763_v50 = vsel %vm756_vm3, %v760_v35, %v762_v47  ;;  %v448_v52 = vsel %vm439_vm2, %v445_v37, %v447_v49  ;;  %v631_v57 = vrot.slane %v629_v55, 1  ;;  %v745_v23 = vld [vmem:[%s1906_s25 + $0x34] sm:$0x7] }
  0x23   : > { %v764_v58 = vrot.slane %v2060_v53, 2  ;;  %v449_v60 = vrot.slane %v1932_v13, 1  ;;  %v641_v4 = vshll.u32 %v2082_v0, 16  ;;  %v584_v21 = vunpack.c.l.b16 %v554_v17 }
  0x24   : > { %v1157_v54 = vshrl.u32 %v1812_v42, 16  ;;  %vm1147_vm7 = vsmask.f32 4352  ;;  %vm1481_vm8 = vcmask 257024   ;;  %vm1494_vm9 = vcmask 253952  }
  0x25   : > { %v765_v61 = vsel %vm756_vm3, %v762_v47, %v764_v58  ;;  %v643_v10 = vrot.slane %v641_v4, 2  ;;  %vm1495_vm10 = vsmask.f32 256 }
  0x26   : > { %1592 = vmatmul.msk.bf16.gmra.mxu0 %vm293_vm1, %v246_v62  ;;  %vm1496_vm11 = vmand %vm1494_vm9, %vm1495_vm10 }
  0x27   : > { %1594 = vmatmul.msk.bf16.gmra.mxu1 %vm293_vm1, %v262_v63  ;;  %v450_v63 = vsel %vm439_vm2, %v447_v49, %v449_v60 }
  0x2a   : > { %1597 = vmatmul.msk.bf16.gmra.mxu3 %vm293_vm1, %v279_v1  ;;  %1621 = vmatmul.msk.bf16.vlgmr.msrb.gmra.mxu2 %vm293_vm1, %v442_v2  ;;  %v428_v1 = vld [vmem:[%s1906_s25 + $0x30] sm:$0x3]  ;;  %v638_v2 = vshrl.u32 %v2082_v0, 16 }
  0x2b   : > { %v436_v5 = vunpack.c.l.b16 %v428_v1 }
  0x2c   : > { %v640_v6 = vrot.slane %v638_v2, 1 }
  0x2d   : > { %v438_v16 = vpack.c.b16 %v436_v5, %v436_v5  ;;  %v1159_v5 = vrot.slane %v1157_v54, 3 }
  0x2e   : > { %v644_v18 = vor.u32 %v643_v10, %v640_v6  ;;  %v1813_v10 = vld [vmem:[%s1906_s25 + $0x18] sm:$0xff] }
  0x2f   : > { %v451_v20 = vrot.slane %v438_v16, 1 }
  0x31   : > { %v452_v25 = vsel %vm439_vm2, %v449_v60, %v451_v20 }
  0x36   : > { %1671 = vmatmul.msk.bf16.vlgmr.msrb.gmra.mxu0 %vm293_vm1, %v759_v26  ;;  %v591_v26 = vpack.c.b16 %v584_v21, %v584_v21  ;;  %v1044_v21 = vrot.slane %v1813_v10, 3 }
  0x37   : > { %1606 = vmatmul.msk.bf16.vlgmr.msrb.gmra.mxu1 %vm293_vm1, %v1918_v7  ;;  %v761_v7 = vsel %vm756_vm3, %v758_v22, %v760_v35 }
  0x38   : > { %v650_v33 = vshll.u32 %v591_v26, 16 }
  0x3a   : > { %1656 = vmatmul.msk.bf16.vlgmr.msrb.gmra.mxu3 %vm293_vm1, %v609_v27  ;;  %1622 = vmatmul.msk.bf16.gmra.mxu2 %vm293_vm1, %v444_v28  ;;  %v753_v27 = vunpack.c.l.b16 %v745_v23  ;;  %v647_v28 = vshrl.u32 %v591_v26, 16  ;;  %v1166_v26 = vshrl.u32 %v1813_v10, 16 }
  0x3c   : > { %v2106_v34 = vpack.c.b16 %v753_v27, %v753_v27  ;;  %v649_v35 = vrot.slane %v647_v28, 1  ;;  %v1169_v27 = vshll.u32 %v1813_v10, 16 }
  0x3e   : > { %v768_v37 = vrot.slane %v2106_v34, 2 }
  0x46   : > { %1672 = vmatmul.msk.bf16.gmra.mxu0 %vm293_vm1, %v761_v7 }
  0x47   : > { %1607 = vmatmul.msk.bf16.gmra.mxu1 %vm293_vm1, %v1921_v8  ;;  %v623_v8 = vshll.u32 %v2032_v40, 16 }
  0x49   : > { %v625_v46 = vrot.slane %v623_v8, 2 }
  0x4a   : > { %1657 = vmatmul.msk.bf16.gmra.mxu3 %vm293_vm1, %v618_v38  ;;  %1623 = vmatmul.msk.bf16.gmra.mxu2 %vm293_vm1, %v446_v39  ;;  %v1695_v39 = vld [vmem:[%s1906_s25 + $0x8] sm:$0x8] }
  0x4b   : > { %v626_v48 = vor.u32 %v625_v46, %v622_v45  ;;  %v1696_v43 = vor.u32 %v1811_v41, %v1695_v39  ;;  %v1042_v46 = vrot.slane %v1812_v42, 3  ;;  %v1814_v39 = vld [vmem:[%s1906_s25 + $0x20] sm:$0xff] }
  0x4c   : > { %v1175_v54 = vshrl.u32 %v1814_v39, 16 }
  0x4d   : > { %v627_v51 = vsel %vm592_vm4, %v617_v36, %v626_v48  ;;  %v652_v36 = vrot.slane %v650_v33, 2  ;;  %v1041_v45 = vrot.slane %v1696_v43, 3 }
  0x4f   : > { %v653_v7 = vor.u32 %v652_v36, %v649_v35  ;;  %v1043_v49 = vsel %vm1040_vm5, %v1041_v45, %v1042_v46  ;;  %v876_v36 = vrot.slane %v611_v31, 2  ;;  %v1046_v45 = vrot.slane %v1814_v39, 3 }
  0x51   : > { %v1047_v30 = vsel %vm1040_vm5, %v1044_v21, %v1046_v45 }
  0x56   : > { %1673 = vmatmul.msk.bf16.gmra.mxu0 %vm293_vm1, %v763_v50  ;;  %v868_v50 = vshll.u32 %v1999_v15, 16 }
  0x57   : > { %1608 = vmatmul.msk.bf16.gmra.mxu1 %vm293_vm1, %v1924_v9  ;;  %v634_v9 = vrot.slane %v632_v56, 2 }
  0x58   : > { %v870_v60 = vrot.slane %v868_v50, 3 }
  0x59   : > { %v635_v59 = vor.u32 %v634_v9, %v631_v57  ;;  %v1160_v57 = vshll.u32 %v1812_v42, 16 }
  0x5a   : > { %1658 = vmatmul.msk.bf16.gmra.mxu3 %vm293_vm1, %v627_v51  ;;  %1624 = vmatmul.msk.bf16.gmra.mxu2 %vm293_vm1, %v448_v52  ;;  %v1149_v51 = vshrl.u32 %v1696_v43, 16  ;;  %v1152_v52 = vshll.u32 %v1696_v43, 16  ;;  %v1822_v43 = vld [vmem:[%s1906_s25 + $0x14] sm:$0xff] }
  0x5b   : > { %v636_v62 = vsel %vm592_vm4, %v626_v48, %v635_v59  ;;  %v645_v24 = vsel %vm592_vm4, %v635_v59, %v644_v18  ;;  %v1162_v6 = vrot.slane %v1160_v57, 4  ;;  %v1178_v57 = vshll.u32 %v1814_v39, 16 }
  0x5c   : > { %v1154_v1 = vrot.slane %v1152_v52, 4 }
  0x5d   : > { %v1180_v10 = vrot.slane %v1178_v57, 4 }
  0x66   : > { %1674 = vmatmul.msk.bf16.gmra.mxu0 %vm293_vm1, %v765_v61  ;;  %v873_v61 = vrot.slane %v605_v14, 3 }
  0x67   : > { %1609 = vmatmul.msk.bf16.gmra.mxu1 %vm293_vm1, %v1929_v12  ;;  %v766_v12 = vrot.slane %v2082_v0, 2 }
  0x69   : > { %v767_v22 = vsel %vm756_vm3, %v764_v58, %v766_v12  ;;  %v769_v38 = vsel %vm756_vm3, %v766_v12, %v768_v37 }
  0x6a   : > { %1659 = vmatmul.msk.bf16.gmra.mxu3 %vm293_vm1, %v636_v62  ;;  %1625 = vmatmul.msk.bf16.gmra.mxu2 %vm293_vm1, %v450_v63  ;;  %v1151_v63 = vrot.slane %v1149_v51, 3 }
  0x6c   : > { %v1155_v17 = vor.u32 %v1154_v1, %v1151_v63 }
  0x76   : > { %1675 = vmatmul.msk.bf16.gmra.mxu0 %vm293_vm1, %v767_v22 }
  0x77   : > { %1610 = vmatmul.msk.bf16.gmra.mxu1 %vm293_vm1, %v1939_v19  ;;  %v654_v19 = vsel %vm592_vm4, %v644_v18, %v653_v7  ;;  %v1163_v18 = vor.u32 %v1162_v6, %v1159_v5  ;;  %v1177_v6 = vrot.slane %v1175_v54, 3  ;;  %v1824_v54 = vld [vmem:[%s1906_s25 + $0x24] sm:$0xff] }
  0x7a   : > { %1660 = vmatmul.msk.bf16.gmra.mxu3 %vm293_vm1, %v645_v24  ;;  %1626 = vmatmul.msk.bf16.gmra.mxu2 %vm293_vm1, %v452_v25  ;;  %v1164_v24 = vsel %vm1147_vm7, %v1155_v17, %v1163_v18  ;;  %v1045_v25 = vsel %vm1040_vm5, %v1042_v46, %v1044_v21  ;;  %v1823_v21 = vld [vmem:[%s1906_s25 + $0x1c] sm:$0xff] }
  0x86   : > { %1676 = vmatmul.msk.bf16.gmra.mxu0 %vm293_vm1, %v769_v38  ;;  %v1168_v38 = vrot.slane %v1166_v26, 3 }
  0x87   : > { %1611 = vmatmul.msk.bf16.gmra.mxu1 %vm293_vm1, %v1932_v13  ;;  %v865_v13 = vshrl.u32 %v1999_v15, 16  ;;  %v872_v15 = vrot.slane %v602_v11, 2 }
  0x89   : > { %v874_v12 = vor.u32 %v873_v61, %v872_v15  ;;  %v880_v15 = vrot.slane %v620_v44, 2  ;;  %v881_v61 = vrot.slane %v623_v8, 3 }
  0x8a   : > { %1661 = vmatmul.msk.bf16.gmra.mxu3 %vm293_vm1, %v654_v19  ;;  %1627 = vmatmul.msk.bf16.gmra.mxu2 %vm293_vm1, %v451_v20  ;;  %v1821_v20 = vld [vmem:[%s1906_s25 + $0xc] sm:$0xff]  ;;  %v1171_v19 = vrot.slane %v1169_v27, 4 }
  0x8c   : > { %v1172_v42 = vor.u32 %v1171_v19, %v1168_v38 }
  0x8e   : > { %v1173_v31 = vsel %vm1147_vm7, %v1163_v18, %v1172_v42  ;;  %v882_v18 = vor.u32 %v881_v61, %v880_v15 }
  0x93   : > { %v2119_v47 = vpop.f32.mrf.mxu0 }
  0x94   : > { %v2121_v48 = vpop.f32.mrf.mxu1 }
  0x96   : > { %1677 = vmatmul.msk.bf16.gmra.mxu0 %vm293_vm1, %v768_v37  ;;  %v877_v37 = vrot.slane %v614_v32, 3 }
  0x97   : > { %1612 = vmatmul.msk.bf16.gmra.mxu1 %vm293_vm1, %v1953_v29  ;;  %v867_v29 = vrot.slane %v865_v13, 2 }
  0x98   : > { %v878_v41 = vor.u32 %v877_v37, %v876_v36 }
  0x99   : > { %v871_v16 = vor.u32 %v870_v60, %v867_v29 }
  0x9a   : > { %1662 = vmatmul.msk.bf16.gmra.mxu3 %vm293_vm1, %v649_v35  ;;  %1725 = vmatmul.msk.bf16.vlgmr.msra.gmra.mxu2 %vm293_vm1, %v1043_v49  ;;  %v879_v50 = vsel %vm863_vm6, %v874_v12, %v878_v41  ;;  %v883_v40 = vsel %vm863_vm6, %v878_v41, %v882_v18 }
  0x9b   : > { %v2131_v9 = vpop.f32.mrf.mxu0  ;;  %v875_v14 = vsel %vm863_vm6, %v871_v16, %v874_v12  ;;  %v1815_v16 = vld [vmem:[%s1906_s25 + $0x28] sm:$0xff] }
  0x9c   : > { %v2135_v59 = vpop.f32.mrf.mxu1  ;;  %v1184_v38 = vshrl.u32 %v1815_v16, 16  ;;  %v1187_v19 = vshll.u32 %v1815_v16, 16 }
  0x9d   : > { %v2133_v58 = vpop.f32.mrf.mxu3  ;;  %v2141_v62 = vpop.f32.mrf.mxu2 }
  0xa3   : > { %v2145_v22 = vpop.f32.mrf.mxu0 }
  0xa4   : > { %v2149_v3 = vpop.f32.mrf.mxu1 }
  0xa5   : > { %v2147_v11 = vpop.f32.mrf.mxu3  ;;  %v2152_v23 = vpop.f32.mrf.mxu2 }
  0xa6   : > { %1779 = vmatmul.msk.bf16.vlgmr.msra.gmra.mxu0 %vm293_vm1, %v1821_v20  ;;  %v1181_v20 = vor.u32 %v1180_v10, %v1177_v6 }
  0xa7   : > { %1686 = vmatmul.msk.bf16.vlgmr.msra.gmra.mxu1 %vm293_vm1, %v875_v14  ;;  %v1048_v14 = vrot.slane %v1815_v16, 3 }
  0xa8   : > { %v1182_v27 = vsel %vm1147_vm7, %v1172_v42, %v1181_v20  ;;  %v884_v42 = vrot.slane %v629_v55, 2 }
  0xa9   : > { %v1049_v36 = vsel %vm1040_vm5, %v1046_v45, %v1048_v14 }
  0xaa   : > { %1740 = vmatmul.msk.bf16.vlgmr.msra.gmra.mxu3 %vm293_vm1, %v1164_v24  ;;  %1726 = vmatmul.msk.bf16.gmra.mxu2 %vm293_vm1, %v1045_v25 }
  0xab   : > { %v2160_v28 = vpop.f32.mrf.mxu0 }
  0xac   : > { %v2164_v35 = vpop.f32.mrf.mxu1 }
  0xad   : > { %v2162_v33 = vpop.f32.mrf.mxu3  ;;  %v495_v7 = vpop.f32.mrf.mxu2 }
  0xb3   : > { %v812_v46 = vpop.f32.mrf.mxu0 }
  0xb4   : > { %v393_v13 = vpop.f32.mrf.mxu1 }
  0xb5   : > { %v356_v49 = vpop.f32.mrf.mxu3  ;;  %v394_v51 = vadd.f32 %v393_v13, %v2119_v47  ;;  %v497_v52 = vpop.f32.mrf.mxu2  ;;  %v1186_v13 = vrot.slane %v1184_v38, 3 }
  0xb6   : > { %1780 = vmatmul.msk.bf16.gmra.mxu0 %vm293_vm1, %v1822_v43  ;;  %v885_v43 = vrot.slane %v632_v56, 3 }
  0xb7   : > { %1687 = vmatmul.msk.bf16.gmra.mxu1 %vm293_vm1, %v879_v50  ;;  %v529_v32 = vadd.f32 %v495_v7, %v394_v51  ;;  %v1189_v50 = vrot.slane %v1187_v19, 4  ;;  %v1816_v51 = vld [vmem:[%s1906_s25 + $0x30] sm:$0xff] }
  0xb8   : > { %v1050_v57 = vrot.slane %v1816_v51, 3  ;;  %v1193_v6 = vshrl.u32 %v1816_v51, 16  ;;  %v1196_v10 = vshll.u32 %v1816_v51, 16 }
  0xba   : > { %1741 = vmatmul.msk.bf16.gmra.mxu3 %vm293_vm1, %v1173_v31  ;;  %1727 = vmatmul.msk.bf16.gmra.mxu2 %vm293_vm1, %v1047_v30  ;;  %v886_v30 = vor.u32 %v885_v43, %v884_v42  ;;  %v1051_v61 = vsel %vm1040_vm5, %v1048_v14, %v1050_v57 }
  0xbb   : > { %v814_v29 = vpop.f32.mrf.mxu0 }
  0xbc   : > { %v395_v60 = vpop.f32.mrf.mxu1  ;;  %v887_v53 = vsel %vm863_vm6, %v882_v18, %v886_v30 }
  0xbd   : > { %v697_v47 = vpop.f32.mrf.mxu3  ;;  %v396_v1 = vadd.f32 %v395_v60, %v2131_v9  ;;  %v500_v5 = vpop.f32.mrf.mxu2 }
  0xbe   : > { %v731_v63 = vadd.f32 %v697_v47, %v529_v32  ;;  %v1190_v32 = vor.u32 %v1189_v50, %v1186_v13 }
  0xbf   : > { %v530_v12 = vadd.f32 %v497_v52, %v396_v1  ;;  %v1002_v1 = vld [vmem:[%s1906_s25 + $0x38] sm:$0xf] }
  0xc0   : > { %v2186_v17 = vadd.f32 %v812_v46, %v731_v63  ;;  %v1191_v15 = vsel %vm1147_vm7, %v1181_v20, %v1190_v32  ;;  %v888_v20 = vrot.slane %v638_v2, 2 }
  0xc3   : > { %v817_v24 = vpop.f32.mrf.mxu0 }
  0xc4   : > { %v398_v44 = vpop.f32.mrf.mxu1 }
  0xc5   : > { %v699_v25 = vpop.f32.mrf.mxu3  ;;  %v399_v26 = vadd.f32 %v398_v44, %v2145_v22  ;;  %v502_v9 = vpop.f32.mrf.mxu2  ;;  %v1195_v44 = vrot.slane %v1193_v6, 3 }
  0xc6   : > { %v732_v8 = vadd.f32 %v699_v25, %v530_v12  ;;  %1781 = vmatmul.msk.bf16.gmra.mxu0 %vm293_vm1, %v1823_v21  ;;  %v889_v21 = vrot.slane %v641_v4, 3 }
  0xc7   : > { %1688 = vmatmul.msk.bf16.gmra.mxu1 %vm293_vm1, %v883_v40  ;;  %v531_v37 = vadd.f32 %v500_v5, %v399_v26  ;;  %v1198_v40 = vrot.slane %v1196_v10, 4 }
  0xc8   : > { %v2195_v7 = vadd.f32 %v814_v29, %v732_v8 }
  0xca   : > { %1742 = vmatmul.msk.bf16.gmra.mxu3 %vm293_vm1, %v1182_v27  ;;  %1728 = vmatmul.msk.bf16.gmra.mxu2 %vm293_vm1, %v1049_v36  ;;  %v890_v27 = vor.u32 %v889_v21, %v888_v20  ;;  %v1199_v36 = vor.u32 %v1198_v40, %v1195_v44  ;;  %v1311_v20 = vld [vmem:[%s1906_s25 + $0x3c] sm:$0x1] }
  0xcb   : > { %v819_v22 = vpop.f32.mrf.mxu0  ;;  %v1341_v44 = vunpack.c.l.b16 %v1311_v20 }
  0xcc   : > { %v400_v41 = vpop.f32.mrf.mxu1  ;;  %v891_v0 = vsel %vm863_vm6, %v886_v30, %v890_v27 }
  0xcd   : > { %v702_v39 = vpop.f32.mrf.mxu3  ;;  %v401_v46 = vadd.f32 %v400_v41, %v2160_v28  ;;  %v505_v49 = vpop.f32.mrf.mxu2  ;;  %v1200_v41 = vsel %vm1147_vm7, %v1190_v32, %v1199_v36 }
  0xce   : > { %v733_v45 = vadd.f32 %v702_v39, %v531_v37  ;;  %v1825_v37 = vld [vmem:[%s1906_s25 + $0x2c] sm:$0xff] }
  0xcf   : > { %v532_v52 = vadd.f32 %v502_v9, %v401_v46  ;;  %v893_v46 = vshrl.u32 %v2106_v34, 16 }
  0xd0   : > { %v2205_v31 = vadd.f32 %v817_v24, %v733_v45 }
  0xd1   : > { %v895_v30 = vrot.slane %v893_v46, 2 }
  0xd3   : > { %v822_v29 = vpop.f32.mrf.mxu0 }
  0xd4   : > { %v403_v47 = vpop.f32.mrf.mxu1 }
  0xd5   : > { %v704_v55 = vpop.f32.mrf.mxu3  ;;  %v404_v28 = vadd.f32 %v403_v47, %v2121_v48  ;;  %v507_v60 = vpop.f32.mrf.mxu2  ;;  %v1032_v48 = vunpack.c.l.b16 %v1002_v1 }
  0xd6   : > { %v734_v56 = vadd.f32 %v704_v55, %v532_v52  ;;  %1782 = vmatmul.msk.bf16.gmra.mxu0 %vm293_vm1, %v1824_v54 }
  0xd7   : > { %1689 = vmatmul.msk.bf16.gmra.mxu1 %vm293_vm1, %v887_v53  ;;  %v533_v63 = vadd.f32 %v505_v49, %v404_v28  ;;  %v1039_v8 = vpack.c.b16 %v1032_v48, %v1032_v48  ;;  %v896_v49 = vshll.u32 %v2106_v34, 16 }
  0xd8   : > { %v2215_v5 = vadd.f32 %v819_v22, %v734_v56 }
  0xd9   : > { %v1052_v38 = vrot.slane %v1039_v8, 3  ;;  %v1205_v13 = vshll.u32 %v1039_v8, 16  ;;  %v898_v32 = vrot.slane %v896_v49, 3 }
  0xda   : > { %1743 = vmatmul.msk.bf16.gmra.mxu3 %vm293_vm1, %v1191_v15  ;;  %1729 = vmatmul.msk.bf16.gmra.mxu2 %vm293_vm1, %v1051_v61 }
  0xdb   : > { %v824_v16 = vpop.f32.mrf.mxu0  ;;  %v1053_v42 = vsel %vm1040_vm5, %v1050_v57, %v1052_v38  ;;  %v1207_v47 = vrot.slane %v1205_v13, 4  ;;  %v899_v56 = vor.u32 %v898_v32, %v895_v30 }
  0xdc   : > { %v405_v18 = vpop.f32.mrf.mxu1 }
  0xdd   : > { %v707_v12 = vpop.f32.mrf.mxu3  ;;  %v406_v24 = vadd.f32 %v405_v18, %v2135_v59  ;;  %v510_v25 = vpop.f32.mrf.mxu2  ;;  %v900_v1 = vsel %vm863_vm6, %v890_v27, %v899_v56 }
  0xde   : > { %v735_v14 = vadd.f32 %v707_v12, %v533_v63 }
  0xdf   : > { %v534_v26 = vadd.f32 %v507_v60, %v406_v24  ;;  %v1826_v60 = vld [vmem:[%s1906_s25 + $0x34] sm:$0xff] }
  0xe0   : > { %v2224_v9 = vadd.f32 %v822_v29, %v735_v14 }
  0xe3   : > { %v827_v19 = vpop.f32.mrf.mxu0 }
  0xe4   : > { %v408_v2 = vpop.f32.mrf.mxu1 }
  0xe5   : > { %v709_v22 = vpop.f32.mrf.mxu3  ;;  %v409_v39 = vadd.f32 %v408_v2, %v2149_v3  ;;  %v512_v59 = vpop.f32.mrf.mxu2  ;;  %v1202_v3 = vshrl.u32 %v1039_v8, 16 }
  0xe6   : > { %v736_v4 = vadd.f32 %v709_v22, %v534_v26  ;;  %1783 = vmatmul.msk.bf16.gmra.mxu0 %vm293_vm1, %v1825_v37  ;;  %v1348_v26 = vpack.c.b16 %v1341_v44, %v1341_v44 }
  0xe7   : > { %1690 = vmatmul.msk.bf16.gmra.mxu1 %vm293_vm1, %v891_v0  ;;  %v535_v43 = vadd.f32 %v510_v25, %v409_v39  ;;  %v1204_v55 = vrot.slane %v1202_v3, 3 }
  0xe8   : > { %v2233_v45 = vadd.f32 %v824_v16, %v736_v4 }
  0xe9   : > { %v1208_v28 = vor.u32 %v1207_v47, %v1204_v55 }
  0xea   : > { %1744 = vmatmul.msk.bf16.gmra.mxu3 %vm293_vm1, %v1200_v41  ;;  %1730 = vmatmul.msk.bf16.gmra.mxu2 %vm293_vm1, %v1053_v42 }
  0xeb   : > { %v829_v50 = vpop.f32.mrf.mxu0 }
  0xec   : > { %v410_v52 = vpop.f32.mrf.mxu1 }
  0xed   : > { %v712_v51 = vpop.f32.mrf.mxu3  ;;  %v411_v57 = vadd.f32 %v410_v52, %v2164_v35  ;;  %v515_v29 = vpop.f32.mrf.mxu2  ;;  %v1209_v35 = vsel %vm1147_vm7, %v1199_v36, %v1208_v28 }
  0xee   : > { %v737_v54 = vadd.f32 %v712_v51, %v535_v43 }
  0xef   : > { %v536_v53 = vadd.f32 %v512_v59, %v411_v57 }
  0xf0   : > { %v2240_v34 = vadd.f32 %v827_v19, %v737_v54 }
  0xf3   : > { %v832_v15 = vpop.f32.mrf.mxu0 }
  0xf4   : > { %v413_v63 = vpop.f32.mrf.mxu1 }
  0xf5   : > { %v714_v61 = vpop.f32.mrf.mxu3  ;;  %v414_v10 = vadd.f32 %v413_v63, %v2141_v62  ;;  %v517_v48 = vpop.f32.mrf.mxu2 }
  0xf6   : > { %v738_v6 = vadd.f32 %v714_v61, %v536_v53  ;;  %1784 = vmatmul.msk.bf16.gmra.mxu0 %vm293_vm1, %v1826_v60 }
  0xf7   : > { %1691 = vmatmul.msk.bf16.gmra.mxu1 %vm293_vm1, %v900_v1  ;;  %v537_v16 = vadd.f32 %v515_v29, %v414_v10 }
  0xf8   : > { %v2248_v12 = vadd.f32 %v829_v50, %v738_v6  ;;  %v2274_v6 = vld [vmem:[%s2338_s2] ss:$0 sm:$0xff] }
  0xfa   : > { %1745 = vmatmul.msk.bf16.gmra.mxu3 %vm293_vm1, %v1209_v35  ;;  %1731 = vmatmul.msk.bf16.gmra.mxu2 %vm293_vm1, %v1052_v38 }
  0xfb   : > { %v834_v18 = vpop.f32.mrf.mxu0 }
  0xfc   : > { %v415_v14 = vpop.f32.mrf.mxu1 }
  0xfd   : > { %v717_v21 = vpop.f32.mrf.mxu3  ;;  %v416_v62 = vadd.f32 %v415_v14, %v2152_v23  ;;  %v520_v25 = vpop.f32.mrf.mxu2 }
  0xfe   : > { %v739_v24 = vadd.f32 %v717_v21, %v537_v16 }
  0xff   : > { %v538_v40 = vadd.f32 %v517_v48, %v416_v62 }
 0x100   : > { %v2254_v8 = vadd.f32 %v832_v15, %v739_v24 }
 0x103   : > { %v837_v27 = vpop.f32.mrf.mxu0 }
 0x104   : > { %v418_v37 = vpop.f32.mrf.mxu1 }
 0x105   : > { %v719_v36 = vpop.f32.mrf.mxu3  ;;  %v419_v22 = vadd.f32 %v418_v37, %v2133_v58  ;;  %v522_v38 = vpop.f32.mrf.mxu2 }
 0x106   : > { %v740_v19 = vadd.f32 %v719_v36, %v538_v40  ;;  %1785 = vmatmul.msk.bf16.gmra.mxu0 %vm293_vm1, %v1348_v26 }
 0x107   : > { %1692 = vmatmul.msk.bf16.gmra.mxu1 %vm293_vm1, %v895_v30  ;;  %v539_v2 = vadd.f32 %v520_v25, %v419_v22 }
 0x108   : > { %v2259_v0 = vadd.f32 %v834_v18, %v740_v19 }
 0x10a   : > { %1746 = vmatmul.msk.bf16.gmra.mxu3 %vm293_vm1, %v1204_v55 }
 0x10b   : > { %v839_v23 = vpop.f32.mrf.mxu0 }
 0x10c   : > { %v420_v39 = vpop.f32.mrf.mxu1 }
 0x10d   : > { %v722_v4 = vpop.f32.mrf.mxu3  ;;  %v421_v41 = vadd.f32 %v420_v39, %v2147_v11  ;;  %v525_v42 = vpop.f32.mrf.mxu2 }
 0x10e   : > { %v741_v59 = vadd.f32 %v722_v4, %v539_v2 }
 0x10f   : > { %v540_v43 = vadd.f32 %v522_v38, %v421_v41 }
 0x110   : > { %v2263_v46 = vadd.f32 %v837_v27, %v741_v59 }
 0x113   : > { %v842_v58 = vpop.f32.mrf.mxu0 }
 0x114   : > { %v423_v3 = vpop.f32.mrf.mxu1 }
 0x115   : > { %v724_v49 = vpop.f32.mrf.mxu3  ;;  %v424_v50 = vadd.f32 %v423_v3, %v2162_v33  ;;  %v527_v51 = vpop.f32.mrf.mxu2 }
 0x116   : > { %v742_v13 = vadd.f32 %v724_v49, %v540_v43 }
 0x117   : > { %v541_v52 = vadd.f32 %v525_v42, %v424_v50 }
 0x118   : > { %v2266_v30 = vadd.f32 %v839_v23, %v742_v13 }
 0x11b   : > { %v844_v32 = vpop.f32.mrf.mxu0 }
 0x11c   : > { %v425_v57 = vpop.f32.mrf.mxu1 }
 0x11d   : > { %v727_v54 = vpop.f32.mrf.mxu3  ;;  %v1096_v55 = vpop.f32.mrf.mxu2 }
 0x11e   : > { %v743_v29 = vadd.f32 %v727_v54, %v541_v52 }
 0x120   : > { %v2268_v11 = vadd.f32 %v842_v58, %v743_v29 }
 0x123   : > { %v1391_v47 = vpop.f32.mrf.mxu0 }
 0x124   : > { %v943_v56 = vpop.f32.mrf.mxu1 }
 0x125   : > { %v729_v53 = vpop.f32.mrf.mxu3  ;;  %v1098_v28 = vpop.f32.mrf.mxu2  ;;  %v977_v60 = vadd.f32 %v943_v56, %v2186_v17 }
 0x127   : > { %v1130_v15 = vadd.f32 %v1096_v55, %v977_v60 }
 0x12b   : > { %v1393_v33 = vpop.f32.mrf.mxu0 }
 0x12c   : > { %v945_v63 = vpop.f32.mrf.mxu1 }
 0x12d   : > { %v1252_v61 = vpop.f32.mrf.mxu3  ;;  %v1101_v10 = vpop.f32.mrf.mxu2  ;;  %v978_v35 = vadd.f32 %v945_v63, %v2195_v7 }
 0x12e   : > { %v1286_v1 = vadd.f32 %v1252_v61, %v1130_v15 }
 0x12f   : > { %v1131_v20 = vadd.f32 %v1098_v28, %v978_v35 }
 0x130   : > { %v1425_v48 = vadd.f32 %v1391_v47, %v1286_v1 }
 0x132   : > { %v1442_v16 = vadd.f32 %v2274_v6, %v1425_v48 }
 0x133   : > { %v1396_v17 = vpop.f32.mrf.mxu0 }
 0x134   : > { %v1455_v18 = vmax.f32 %v1442_v16, 0.0  ;;  %v948_v14 = vpop.f32.mrf.mxu1 }
 0x135   : > { %v1254_v21 = vpop.f32.mrf.mxu3  ;;  %v1103_v25 = vpop.f32.mrf.mxu2  ;;  %v979_v44 = vadd.f32 %v948_v14, %v2205_v31 }
 0x136   : > { %v1468_v24 = vpack.c.bf16 %v1455_v18, %v1455_v18  ;;  %v1287_v62 = vadd.f32 %v1254_v21, %v1131_v20 }
 0x137   : > { %v1132_v27 = vadd.f32 %v1101_v10, %v979_v44 }
 0x138   : > { %1482 = vst.msk [vmem:[%s2282_s7] sm:$0xf] %vm1481_vm8, %v1468_v24  ;;  %v1426_v7 = vadd.f32 %v1393_v33, %v1287_v62 }
 0x13a   : > { %v1443_v40 = vadd.f32 %v2274_v6, %v1426_v7 }
 0x13b   : > { %v1398_v36 = vpop.f32.mrf.mxu0 }
 0x13c   : > { %v1456_v26 = vmax.f32 %v1443_v40, 0.0  ;;  %v950_v19 = vpop.f32.mrf.mxu1 }
 0x13d   : > { %v1257_v37 = vpop.f32.mrf.mxu3  ;;  %v1106_v2 = vpop.f32.mrf.mxu2  ;;  %v980_v4 = vadd.f32 %v950_v19, %v2215_v5 }
 0x13e   : > { %v1469_v22 = vpack.c.bf16 %v1456_v26, %v1456_v26  ;;  %v1288_v38 = vadd.f32 %v1257_v37, %v1132_v27 }
 0x13f   : > { %v1133_v31 = vadd.f32 %v1103_v25, %v980_v4 }
 0x140   : > { %1483 = vst.msk [vmem:[%s2282_s7 + $0x4] sm:$0xf] %vm1481_vm8, %v1469_v22  ;;  %v1427_v23 = vadd.f32 %v1396_v17, %v1288_v38 }
 0x142   : > { %v1444_v39 = vadd.f32 %v2274_v6, %v1427_v23 }
 0x143   : > { %v1401_v41 = vpop.f32.mrf.mxu0 }
 0x144   : > { %v1457_v59 = vmax.f32 %v1444_v39, 0.0  ;;  %v953_v43 = vpop.f32.mrf.mxu1 }
 0x145   : > { %v1259_v42 = vpop.f32.mrf.mxu3  ;;  %v1108_v3 = vpop.f32.mrf.mxu2  ;;  %v981_v50 = vadd.f32 %v953_v43, %v2224_v9 }
 0x146   : > { %v1470_v58 = vpack.c.bf16 %v1457_v59, %v1457_v59  ;;  %v1289_v49 = vadd.f32 %v1259_v42, %v1133_v31 }
 0x147   : > { %v1134_v5 = vadd.f32 %v1106_v2, %v981_v50 }
 0x148   : > { %1484 = vst.msk [vmem:[%s2282_s7 + $0x8] sm:$0xf] %vm1481_vm8, %v1470_v58  ;;  %v1428_v13 = vadd.f32 %v1398_v36, %v1289_v49 }
 0x14a   : > { %v1445_v51 = vadd.f32 %v2274_v6, %v1428_v13 }
 0x14b   : > { %v1403_v32 = vpop.f32.mrf.mxu0 }
 0x14c   : > { %v1458_v52 = vmax.f32 %v1445_v51, 0.0  ;;  %v955_v57 = vpop.f32.mrf.mxu1 }
 0x14d   : > { %v1262_v54 = vpop.f32.mrf.mxu3  ;;  %v1111_v47 = vpop.f32.mrf.mxu2  ;;  %v982_v56 = vadd.f32 %v955_v57, %v2233_v45 }
 0x14e   : > { %v1471_v29 = vpack.c.bf16 %v1458_v52, %v1458_v52  ;;  %v1290_v55 = vadd.f32 %v1262_v54, %v1134_v5 }
 0x14f   : > { %v1135_v9 = vadd.f32 %v1108_v3, %v982_v56 }
 0x150   : > { %1485 = vst.msk [vmem:[%s2282_s7 + $0xc] sm:$0xf] %vm1481_vm8, %v1471_v29  ;;  %v1429_v53 = vadd.f32 %v1401_v41, %v1290_v55 }
 0x152   : > { %v1446_v28 = vadd.f32 %v2274_v6, %v1429_v53 }
 0x153   : > { %v1406_v15 = vpop.f32.mrf.mxu0 }
 0x154   : > { %v1459_v60 = vmax.f32 %v1446_v28, 0.0  ;;  %v958_v61 = vpop.f32.mrf.mxu1 }
 0x155   : > { %v1264_v33 = vpop.f32.mrf.mxu3  ;;  %v1113_v10 = vpop.f32.mrf.mxu2  ;;  %v983_v35 = vadd.f32 %v958_v61, %v2240_v34 }
 0x156   : > { %v1472_v63 = vpack.c.bf16 %v1459_v60, %v1459_v60  ;;  %v1291_v1 = vadd.f32 %v1264_v33, %v1135_v9 }
 0x157   : > { %v1136_v45 = vadd.f32 %v1111_v47, %v983_v35 }
 0x158   : > { %1486 = vst.msk [vmem:[%s2282_s7 + $0x10] sm:$0xf] %vm1481_vm8, %v1472_v63  ;;  %v1430_v48 = vadd.f32 %v1403_v32, %v1291_v1 }
 0x15a   : > { %v1447_v16 = vadd.f32 %v2274_v6, %v1430_v48 }
 0x15b   : > { %v1408_v20 = vpop.f32.mrf.mxu0 }
 0x15c   : > { %v1460_v18 = vmax.f32 %v1447_v16, 0.0  ;;  %v960_v21 = vpop.f32.mrf.mxu1 }
 0x15d   : > { %v1267_v17 = vpop.f32.mrf.mxu3  ;;  %v1116_v62 = vpop.f32.mrf.mxu2  ;;  %v984_v7 = vadd.f32 %v960_v21, %v2248_v12 }
 0x15e   : > { %v1473_v14 = vpack.c.bf16 %v1460_v18, %v1460_v18  ;;  %v1292_v24 = vadd.f32 %v1267_v17, %v1136_v45 }
 0x15f   : > { %v1137_v34 = vadd.f32 %v1113_v10, %v984_v7 }
 0x160   : > { %1487 = vst.msk [vmem:[%s2282_s7 + $0x14] sm:$0xf] %vm1481_vm8, %v1473_v14  ;;  %v1431_v25 = vadd.f32 %v1406_v15, %v1292_v24 }
 0x162   : > { %v1448_v44 = vadd.f32 %v2274_v6, %v1431_v25 }
 0x163   : > { %v1411_v26 = vpop.f32.mrf.mxu0 }
 0x164   : > { %v1461_v40 = vmax.f32 %v1448_v44, 0.0  ;;  %v963_v36 = vpop.f32.mrf.mxu1 }
 0x165   : > { %v1269_v27 = vpop.f32.mrf.mxu3  ;;  %v1118_v22 = vpop.f32.mrf.mxu2  ;;  %v985_v2 = vadd.f32 %v963_v36, %v2254_v8 }
 0x166   : > { %v1474_v37 = vpack.c.bf16 %v1461_v40, %v1461_v40  ;;  %v1293_v19 = vadd.f32 %v1269_v27, %v1137_v34 }
 0x167   : > { %v1138_v12 = vadd.f32 %v1116_v62, %v985_v2 }
 0x168   : > { %1488 = vst.msk [vmem:[%s2282_s7 + $0x18] sm:$0xf] %vm1481_vm8, %v1474_v37  ;;  %v1432_v38 = vadd.f32 %v1408_v20, %v1293_v19 }
 0x16a   : > { %v1449_v23 = vadd.f32 %v2274_v6, %v1432_v38 }
 0x16b   : > { %v1413_v39 = vpop.f32.mrf.mxu0 }
 0x16c   : > { %v1462_v4 = vmax.f32 %v1449_v23, 0.0  ;;  %v965_v31 = vpop.f32.mrf.mxu1 }
 0x16d   : > { %v1272_v59 = vpop.f32.mrf.mxu3  ;;  %v1121_v43 = vpop.f32.mrf.mxu2  ;;  %v986_v49 = vadd.f32 %v965_v31, %v2259_v0 }
 0x16e   : > { %v1475_v41 = vpack.c.bf16 %v1462_v4, %v1462_v4  ;;  %v1294_v42 = vadd.f32 %v1272_v59, %v1138_v12 }
 0x16f   : > { %v1139_v8 = vadd.f32 %v1118_v22, %v986_v49 }
 0x170   : > { %1489 = vst.msk [vmem:[%s2282_s7 + $0x1c] sm:$0xf] %vm1481_vm8, %v1475_v41  ;;  %v1433_v58 = vadd.f32 %v1411_v26, %v1294_v42 }
 0x172   : > { %v1450_v3 = vadd.f32 %v2274_v6, %v1433_v58 }
 0x173   : > { %v1416_v50 = vpop.f32.mrf.mxu0 }
 0x174   : > { %v1463_v13 = vmax.f32 %v1450_v3, 0.0  ;;  %v968_v52 = vpop.f32.mrf.mxu1 }
 0x175   : > { %v1274_v51 = vpop.f32.mrf.mxu3  ;;  %v1123_v54 = vpop.f32.mrf.mxu2  ;;  %v987_v29 = vadd.f32 %v968_v52, %v2263_v46 }
 0x176   : > { %v1476_v5 = vpack.c.bf16 %v1463_v13, %v1463_v13  ;;  %v1295_v32 = vadd.f32 %v1274_v51, %v1139_v8 }
 0x177   : > { %v1140_v0 = vadd.f32 %v1121_v43, %v987_v29 }
 0x178   : > { %1490 = vst.msk [vmem:[%s2282_s7 + $0x20] sm:$0xf] %vm1481_vm8, %v1476_v5  ;;  %v1434_v57 = vadd.f32 %v1413_v39, %v1295_v32 }
 0x17a   : > { %v1451_v55 = vadd.f32 %v2274_v6, %v1434_v57 }
 0x17b   : > { %v1418_v53 = vpop.f32.mrf.mxu0 }
 0x17c   : > { %v1464_v47 = vmax.f32 %v1451_v55, 0.0  ;;  %v970_v28 = vpop.f32.mrf.mxu1 }
 0x17d   : > { %v1277_v56 = vpop.f32.mrf.mxu3  ;;  %v1126_v15 = vpop.f32.mrf.mxu2  ;;  %v988_v61 = vadd.f32 %v970_v28, %v2266_v30 }
 0x17e   : > { %v1477_v60 = vpack.c.bf16 %v1464_v47, %v1464_v47  ;;  %v1296_v9 = vadd.f32 %v1277_v56, %v1140_v0 }
 0x17f   : > { %v1141_v46 = vadd.f32 %v1123_v54, %v988_v61 }
 0x180   : > { %1491 = vst.msk [vmem:[%s2282_s7 + $0x24] sm:$0xf] %vm1481_vm8, %v1477_v60  ;;  %v1435_v33 = vadd.f32 %v1416_v50, %v1296_v9 }
 0x182   : > { %v1452_v63 = vadd.f32 %v2274_v6, %v1435_v33 }
 0x183   : > { %v1421_v10 = vpop.f32.mrf.mxu0 }
 0x184   : > { %v1465_v1 = vmax.f32 %v1452_v63, 0.0  ;;  %v973_v35 = vpop.f32.mrf.mxu1 }
 0x185   : > { %v1279_v48 = vpop.f32.mrf.mxu3  ;;  %v1128_v45 = vpop.f32.mrf.mxu2  ;;  %v989_v17 = vadd.f32 %v973_v35, %v2268_v11  ;;  %v1497_v11 = vld [vmem:[%s2282_s7 + $0x30] sm:$0x1] }
 0x186   : > { %v1478_v16 = vpack.c.bf16 %v1465_v1, %v1465_v1  ;;  %v1297_v18 = vadd.f32 %v1279_v48, %v1141_v46 }
 0x187   : > { %v1142_v14 = vadd.f32 %v1126_v15, %v989_v17 }
 0x188   : > { %1492 = vst.msk [vmem:[%s2282_s7 + $0x28] sm:$0xf] %vm1481_vm8, %v1478_v16  ;;  %v1436_v20 = vadd.f32 %v1418_v53, %v1297_v18 }
 0x18a   : > { %v1453_v21 = vadd.f32 %v2274_v6, %v1436_v20 }
 0x18b   : > { %v1423_v24 = vpop.f32.mrf.mxu0 }
 0x18c   : > { %v1466_v30 = vmax.f32 %v1453_v21, 0.0  ;;  %v975_v25 = vpop.f32.mrf.mxu1 }
 0x18d   : > { %v1282_v62 = vpop.f32.mrf.mxu3 }
 0x18e   : > { %v1479_v7 = vpack.c.bf16 %v1466_v30, %v1466_v30  ;;  %v1298_v44 = vadd.f32 %v1282_v62, %v1142_v14 }
 0x190   : > { %1493 = vst.msk [vmem:[%s2282_s7 + $0x2c] sm:$0xf] %vm1481_vm8, %v1479_v7  ;;  %v1437_v40 = vadd.f32 %v1421_v10, %v1298_v44 }
 0x192   : > { %v1454_v34 = vadd.f32 %v2274_v6, %v1437_v40 }
 0x194   : > { %v1467_v26 = vmax.f32 %v1454_v34, 0.0 }
 0x195   : > { %v1284_v27 = vpop.f32.mrf.mxu3 }
 0x196   : > { %v1480_v36 = vpack.c.bf16 %v1467_v26, %v1467_v26 }
 0x198   : > { %v1498_v37 = vsel %vm1496_vm11, %v1480_v36, %v1497_v11 }
 0x199   : > { %1499 = vst [vmem:[%s2282_s7 + $0x30] sm:$0x1] %v1498_v37 }
 0x19a PF: > { %s13_s12 = sadd.s32 1, %s1858_s12  }
 0x19b   : > { %p10_p4 = scmp.ge.s32.totalorder %s13_s12, 4  }
 0x19d   :  { %12 = sbr.rel (!%p10_p4) target bundleno = 1 (0x1), region = 62 }

// kernel: progressive_encoder_forward.7
= control target key start
LH: loop header
LB: loop body
LE: loop exit
PB: predicated region body
PF: predicated region fallthrough
CT: control target
= control target key end

     0   :  { %s1550_s12 = smov 0   ;;  %s1897_s0 = inlined_call_operand.vmem [shape: bf16[2,97,32], index: 0, kind: input, shape index: {}]   ;;  %s1898_s1 = inlined_call_operand.vmem [shape: bf16[288,32], index: 1, kind: input, shape index: {}]   ;;  %s1899_s2 = inlined_call_operand.vmem [shape: f32[1,32], index: 2, kind: input, shape index: {}]   ;;  %s1900_s3 = inlined_call_operand.vmem [shape: bf16[2,73,32], index: 3, kind: output, shape index: {}]  }
   0x1 LB: > { %s1274_s13 = sadd.s32 4294967295, %s1528_s12   ;;  %p1278_p0 = scmp.ge.s32.totalorder %s1528_s12, 1  ;;  %s1528_s12 = sphi %s1550_s12, %s13_s12  }
   0x2   : > { %p137_p1 = scmp.lt.s32.totalorder %s1528_s12, 3 }
   0x4   : > { %p138_p2 = pnand %p1278_p0, %p137_p1 }
   0x5   : > { %p161_p3 = scmp.lt.s32.totalorder (!%p138_p2), %s1274_s13, 1 }
   0x6   : > { %141 = sbr.rel (%p138_p2) target bundleno = 353 (0x161), region = 32 }
   0xb   : > { %v1470_v0 = vld [vmem:[%s1898_s1 + $0x18] sm:$0xff]  ;;  %v1469_v1 = vld [vmem:[%s1898_s1 + $0x10] sm:$0xff]  ;;  %s1902_s13 = smov (!%p161_p3, %s1274_s13), 1  ;;  %v1472_v2 = vld [vmem:[%s1898_s1 + $0x28] sm:$0xff]  ;;  %vm215_vm0 = vsmask.f32 7424 }
   0xc   : > { %1505 = vmatpush.bf16.msra.mxu1 %v1470_v0  ;;  %1506 = vmatpush.bf16.msra.mxu2 %v1470_v0  ;;  %s1511_s20 = smul.u32 52, %s1902_s13  ;;  %v1468_v3 = vld [vmem:[%s1898_s1 + $0x8] sm:$0xff]  ;;  %v1477_v4 = vld [vmem:[%s1898_s1 + $0x38] sm:$0xff]  ;;  %v1467_v6 = vld [vmem:[%s1898_s1] sm:$0xff]  ;;  %vm267_vm1 = vcmask 261120   ;;  %vm633_vm2 = vcmask 1045504  }
   0xd   : > { %1507 = vmatpush.bf16.msra.mxu3 %v1470_v0  ;;  %289 = vmatpush.bf16.msra.mxu0 %v1470_v0  ;;  %v1479_v5 = vld [vmem:[%s1898_s1 + $0x48] sm:$0xff]  ;;  %v1471_v7 = vld [vmem:[%s1898_s1 + $0x20] sm:$0xff]  ;;  %v1476_v11 = vld [vmem:[%s1898_s1 + $0x30] sm:$0xff]  ;;  %vm505_vm3 = vsmask.f32 6400  ;;  %vm385_vm4 = vcmask 1046528  }
   0xe   : > { %s1582_s29 = scalar_lea.vmem %s1897_s0, %s1511_s20  ;;  %v1478_v12 = vld [vmem:[%s1898_s1 + $0x40] sm:$0xff]  ;;  %v1488_v42 = vld [vmem:[%s1898_s1 + $0x68] sm:$0xff]  ;;  %v1490_v47 = vld [vmem:[%s1898_s1 + $0x78] sm:$0xff]  ;;  %vm718_vm5 = vsmask.f32 5376  ;;  %vm858_vm7 = vcmask 1044480  }
   0xf   : > { %v1591_v8 = vld [vmem:[%s1582_s29 + $0x8] sm:$0xff]  ;;  %v1594_v9 = vld [vmem:[%s1582_s29 + $0x10] sm:$0xff]  ;;  %v1597_v10 = vld [vmem:[%s1582_s29 + $0x18] sm:$0xff]  ;;  %vm943_vm6 = vsmask.f32 4352  ;;  %s1512_s4 = smul.u32 40, %s1902_s13 }
  0x10   : > { %1508 = vmatpush.bf16.msra.mxu1 %v1469_v1  ;;  %1509 = vmatpush.bf16.msra.mxu2 %v1469_v1  ;;  %v1606_v13 = vld [vmem:[%s1582_s29 + $0x20] sm:$0xff]   ;;  %v224_v16 = vshll.u32 %v1591_v8, 16  ;;  %v228_v17 = vshrl.u32 %v1591_v8, 16  ;;  %v232_v18 = vshll.u32 %v1594_v9, 16  ;;  %v236_v19 = vshrl.u32 %v1594_v9, 16  ;;  %v1638_v45 = vld [vmem:[%s1582_s29 + $0xc] sm:$0xff] }
  0x11   : > { %1510 = vmatpush.bf16.msra.mxu3 %v1469_v1  ;;  %v181_v14 = vld [vmem:[%s1582_s29 + $0x24] sm:$0x1]  ;;  %290 = vmatpush.bf16.msra.mxu0 %v1469_v1  ;;  %v466_v20 = vld [vmem:[%s1582_s29 + $0x4] sm:$0xe]  ;;  %v240_v21 = vshll.u32 %v1597_v10, 16  ;;  %v208_v22 = vunpack.c.l.b16 %v1606_v13  ;;  %v1481_v48 = vld [vmem:[%s1898_s1 + $0x58] sm:$0xff]  ;;  %s1855_s7 = scalar_lea.vmem %s1900_s3, %s1512_s4 }
  0x12   : > { %v1610_v15 = vld [vmem:[%s1582_s29] sm:$0xff]   ;;  %v209_v23 = vunpack.c.l.b16 %v181_v14  ;;  %v467_v24 = vld [vmem:[%s1582_s29 + $0x8] sm:$0xf]  ;;  %v226_v25 = vrot.slane %v224_v16, 1  ;;  %v234_v26 = vrot.slane %v232_v18, 1  ;;  %v490_v31 = vunpack.c.l.b16 %v466_v20 }
  0x13   : > { %v217_v27 = vshrl.u32 %v1610_v15, 16  ;;  %v219_v28 = vshll.u32 %v1610_v15, 16  ;;  %v242_v29 = vrot.slane %v240_v21, 1  ;;  %v491_v35 = vunpack.c.l.b16 %v467_v24  ;;  %v621_v43 = vld [vmem:[%s1582_s29 + $0x4] sm:$0xc]  ;;  %v1497_v52 = vld [vmem:[%s1898_s1 + $0x88] sm:$0xff] }
  0x14   : > { %428 = vmatpush.bf16.msrb.mxu2 %v1472_v2  ;;  %345 = vmatpush.bf16.msrb.mxu1 %v1468_v3  ;;  %v1624_v30 = vpack.c.b16 %v209_v23, %v208_v22  ;;  %v230_v32 = vor.u32 %v228_v17, %v226_v25  ;;  %v238_v33 = vor.u32 %v236_v19, %v234_v26  ;;  %v629_v50 = vunpack.c.l.b16 %v621_v43  ;;  %v1496_v43 = vld [vmem:[%s1898_s1 + $0x80] sm:$0xff] }
  0x15   : > { %583 = vmatpush.bf16.msrb.mxu3 %v1477_v4  ;;  %676 = vmatpush.bf16.msrb.mxu0 %v1479_v5  ;;  %v221_v34 = vrot.slane %v219_v28, 1  ;;  %v500_v46 = vpack.c.b16 %v491_v35, %v490_v31  ;;  %v244_v51 = vshrl.u32 %v1597_v10, 16  ;;  %v515_v55 = vshrl.u32 %v1638_v45, 16  ;;  %v1480_v28 = vld [vmem:[%s1898_s1 + $0x50] sm:$0xff] }
  0x16   : > { %v248_v36 = vshll.u32 %v1624_v30, 16  ;;  %v252_v37 = vshrl.u32 %v1624_v30, 16  ;;  %v235_v38 = vsel %vm215_vm0, %v230_v32, %v234_v26  ;;  %v243_v39 = vsel %vm215_vm0, %v238_v33, %v242_v29 }
  0x17   : > { %v222_v40 = vor.u32 %v221_v34, %v217_v27  ;;  %1302 = vmatmul.msk.bf16.vlgmr.msra.gmra.mxu1 %vm267_vm1, %v235_v38  ;;  %1303 = vmatmul.msk.bf16.vlgmr.msra.gmra.mxu2 %vm267_vm1, %v243_v39  ;;  %v507_v53 = vshrl.u32 %v500_v46, 16  ;;  %v510_v54 = vshll.u32 %v500_v46, 16  ;;  %v518_v56 = vshll.u32 %v1638_v45, 16  ;;  %v1693_v27 = vld [vmem:[%s1582_s29 + $0x1c] sm:$0xff] }
  0x18   : > { %429 = vmatpush.bf16.msrb.mxu2 %v1471_v7  ;;  %346 = vmatpush.bf16.msrb.mxu1 %v1467_v6  ;;  %v250_v41 = vrot.slane %v248_v36, 1  ;;  %v1654_v57 = vpack.c.b16 %v491_v35, %v629_v50  ;;  %v246_v58 = vor.u32 %v244_v51, %v242_v29  ;;  %v517_v61 = vrot.slane %v515_v55, 1  ;;  %v1669_v6 = vld [vmem:[%s1582_s29 + $0x14] sm:$0xff]  ;;  %v1502_v7 = vld [vmem:[%s1582_s29] sm:$0xf0] }
  0x19   : > { %584 = vmatpush.bf16.msrb.mxu3 %v1476_v11  ;;  %677 = vmatpush.bf16.msrb.mxu0 %v1478_v12  ;;  %v227_v44 = vsel %vm215_vm0, %v222_v40, %v226_v25  ;;  %v509_v59 = vrot.slane %v507_v53, 1  ;;  %v512_v60 = vrot.slane %v510_v54, 2  ;;  %v520_v62 = vrot.slane %v518_v56, 2  ;;  %v1503_v11 = vld [vmem:[%s1582_s29] sm:$0xe] }
  0x1a   : > { %v254_v49 = vor.u32 %v252_v37, %v250_v41  ;;  %1301 = vmatmul.msk.bf16.vlgmr.msra.gmra.mxu0 %vm267_vm1, %v227_v44  ;;  %v634_v63 = vrot.slane %v1654_v57, 2  ;;  %v635_v0 = vrot.slane %v1638_v45, 2  ;;  %v251_v1 = vsel %vm215_vm0, %v246_v58, %v250_v41  ;;  %v1487_v25 = vld [vmem:[%s1898_s1 + $0x60] sm:$0xff]  ;;  %v475_v35 = vld [vmem:[%s1582_s29 + $0x28] sm:$0x3] }
  0x1b   : > { %v513_v2 = vor.u32 %v512_v60, %v509_v59  ;;  %v521_v3 = vor.u32 %v520_v62, %v517_v61  ;;  %v1504_v12 = vor.u32 %v1503_v11, %v1502_v7  ;;  %v524_v14 = vshrl.u32 %v1669_v6, 16 }
  0x1c   : > { %901 = vmatpush.bf16.msra.mxu2 %v1488_v42  ;;  %781 = vmatpush.bf16.msra.mxu1 %v1481_v48  ;;  %v636_v4 = vsel %vm633_vm2, %v634_v63, %v635_v0  ;;  %v527_v16 = vshll.u32 %v1669_v6, 16  ;;  %v387_v18 = vrot.slane %v1591_v8, 1  ;;  %v637_v20 = vrot.slane %v1669_v6, 2  ;;  %v622_v42 = vld [vmem:[%s1582_s29 + $0x28] sm:$0x7] }
  0x1d   : > { %1305 = vmatmul.msk.bf16.vlgmr.msra.gmra.mxu3 %vm267_vm1, %v254_v49  ;;  %1131 = vmatpush.bf16.msra.mxu0 %v1497_v52  ;;  %v522_v5 = vsel %vm505_vm3, %v513_v2, %v521_v3  ;;  %v386_v17 = vrot.slane %v1504_v12, 1  ;;  %v533_v29 = vshrl.u32 %v1693_v27, 16  ;;  %v536_v31 = vshll.u32 %v1693_v27, 16 }
  0x1e   : > { %1021 = vmatpush.bf16.msra.mxu3 %v1490_v47  ;;  %v529_v19 = vrot.slane %v527_v16, 2  ;;  %v638_v24 = vsel %vm633_vm2, %v635_v0, %v637_v20  ;;  %v389_v32 = vrot.slane %v1594_v9, 1  ;;  %v639_v36 = vrot.slane %v1693_v27, 2 }
  0x1f   : > { %v388_v21 = vsel %vm385_vm4, %v386_v17, %v387_v18  ;;  %v535_v33 = vrot.slane %v533_v29, 1  ;;  %v538_v34 = vrot.slane %v536_v31, 2  ;;  %v498_v39 = vunpack.c.h.b16 %v1606_v13 }
  0x20   : > { %902 = vmatpush.bf16.msra.mxu2 %v1487_v25  ;;  %782 = vmatpush.bf16.msra.mxu1 %v1480_v28  ;;  %v390_v37 = vsel %vm385_vm4, %v387_v18, %v389_v32  ;;  %v499_v40 = vunpack.c.l.b16 %v475_v35  ;;  %v640_v41 = vsel %vm633_vm2, %v637_v20, %v639_v36  ;;  %v630_v47 = vunpack.c.l.b16 %v622_v42  ;;  %v1385_v18 = vld [vmem:[%s1582_s29 + $0x8] sm:$0x8]  ;;  %v1484_v28 = vld [vmem:[%s1582_s29 + $0x18] sm:$0xff]  ;;  %v1774_v42 = vld [vmem:[%s1582_s29 + $0x20] sm:$0xff] }
  0x21   : > { %v539_v38 = vor.u32 %v538_v34, %v535_v33  ;;  %1132 = vmatpush.bf16.msra.mxu0 %v1496_v43  ;;  %v720_v53 = vshrl.u32 %v1654_v57, 16  ;;  %v723_v54 = vshll.u32 %v1654_v57, 16  ;;  %v727_v61 = vrot.slane %v515_v55, 2 }
  0x22   : > { %v504_v46 = vpack.c.b16 %v499_v40, %v498_v39  ;;  %v1725_v50 = vpack.c.b16 %v630_v47, %v498_v39  ;;  %v728_v62 = vrot.slane %v518_v56, 3  ;;  %v731_v56 = vrot.slane %v524_v14, 2  ;;  %v1492_v40 = vld [vmem:[%s1582_s29 + $0x14] sm:$0xff] }
  0x23   : > { %v722_v59 = vrot.slane %v720_v53, 2  ;;  %v725_v60 = vrot.slane %v723_v54, 3  ;;  %v965_v33 = vshll.u32 %v1484_v28, 16  ;;  %v735_v43 = vrot.slane %v533_v29, 2 }
  0x24   : > { %v542_v48 = vshrl.u32 %v504_v46, 16  ;;  %v545_v49 = vshll.u32 %v504_v46, 16  ;;  %v641_v58 = vrot.slane %v1725_v50, 2  ;;  %v729_v2 = vor.u32 %v728_v62, %v727_v61  ;;  %v1793_v61 = vld [vmem:[%s1582_s29 + $0x28] sm:$0xff] }
  0x25   : > { %v971_v46 = vshrl.u32 %v1774_v42, 16  ;;  %v974_v47 = vshll.u32 %v1774_v42, 16  ;;  %vm1203_vm8 = vcmask 257024   ;;  %vm1213_vm9 = vcmask 253952  }
  0x26   : > { %v544_v51 = vrot.slane %v542_v48, 1  ;;  %v547_v52 = vrot.slane %v545_v49, 2  ;;  %v642_v57 = vsel %vm633_vm2, %v639_v36, %v641_v58  ;;  %v862_v49 = vrot.slane %v1484_v28, 3 }
  0x27   : > { %1304 = vmatmul.msk.bf16.gmra.mxu2 %vm267_vm1, %v251_v1  ;;  %1314 = vmatmul.msk.bf16.vlgmr.msrb.gmra.mxu1 %vm267_vm1, %v1610_v15  ;;  %v526_v15 = vrot.slane %v524_v14, 1  ;;  %v726_v1 = vor.u32 %v725_v60, %v722_v59  ;;  %v1483_v14 = vld [vmem:[%s1582_s29 + $0x10] sm:$0xff]  ;;  %v1493_v59 = vld [vmem:[%s1582_s29 + $0x1c] sm:$0xff]  ;;  %v743_v60 = vshll.u32 %v1725_v50, 16  ;;  %vm1214_vm10 = vsmask.f32 256 }
  0x28   : > { %v548_v0 = vor.u32 %v547_v52, %v544_v51  ;;  %v860_v35 = vrot.slane %v1483_v14, 3  ;;  %v976_v51 = vrot.slane %v974_v47, 4  ;;  %vm1215_vm11 = vmand %vm1213_vm9, %vm1214_vm10 }
  0x29   : > { %v530_v23 = vor.u32 %v529_v19, %v526_v15  ;;  %v1482_v15 = vld [vmem:[%s1582_s29 + $0x8] sm:$0xf0]  ;;  %v956_v19 = vshll.u32 %v1483_v14, 16 }
  0x2a   : > { %1365 = vmatmul.msk.bf16.vlgmr.msrb.gmra.mxu0 %vm267_vm1, %v636_v4  ;;  %v730_v4 = vsel %vm718_vm5, %v726_v1, %v729_v2  ;;  %v549_v45 = vsel %vm505_vm3, %v539_v38, %v548_v0  ;;  %v1386_v6 = vor.u32 %v1482_v15, %v1385_v18  ;;  %v863_v54 = vsel %vm858_vm7, %v860_v35, %v862_v49  ;;  %v1494_v18 = vld [vmem:[%s1582_s29 + $0x24] sm:$0xff] }
  0x2b   : > { %v531_v26 = vsel %vm505_vm3, %v521_v3, %v530_v23  ;;  %v540_v44 = vsel %vm505_vm3, %v530_v23, %v539_v38  ;;  %v374_v3 = vld [vmem:[%s1582_s29 + $0x24] sm:$0x3]  ;;  %v745_v1 = vrot.slane %v743_v60, 3 }
  0x2c   : > { %v382_v55 = vunpack.c.l.b16 %v374_v3  ;;  %v945_v13 = vshrl.u32 %v1386_v6, 16  ;;  %v859_v34 = vrot.slane %v1386_v6, 3  ;;  %v983_v3 = vshll.u32 %v1793_v61, 16 }
  0x2d   : > { %1352 = vmatmul.msk.bf16.vlgmr.msrb.gmra.mxu3 %vm267_vm1, %v522_v5  ;;  %v732_v5 = vrot.slane %v527_v16, 3  ;;  %v953_v16 = vshrl.u32 %v1483_v14, 16 }
  0x2e   : > { %v384_v7 = vpack.c.b16 %v382_v55, %v208_v22  ;;  %v948_v22 = vshll.u32 %v1386_v6, 16  ;;  %v947_v20 = vrot.slane %v945_v13, 3  ;;  %v861_v38 = vsel %vm858_vm7, %v859_v34, %v860_v35 }
  0x2f   : > { %v955_v23 = vrot.slane %v953_v16, 3 }
  0x30   : > { %v393_v12 = vrot.slane %v384_v7, 1 }
  0x37   : > { %1315 = vmatmul.msk.bf16.gmra.mxu1 %vm267_vm1, %v1591_v8  ;;  %1327 = vmatmul.msk.bf16.vlgmr.msrb.gmra.mxu2 %vm267_vm1, %v388_v21  ;;  %v1489_v8 = vld [vmem:[%s1898_s1 + $0x70] sm:$0xff]  ;;  %v950_v21 = vrot.slane %v948_v22, 4 }
  0x38   : > { %1022 = vmatpush.bf16.msra.mxu3 %v1489_v8 }
  0x39   : > { %v951_v25 = vor.u32 %v950_v21, %v947_v20  ;;  %v866_v21 = vrot.slane %v1793_v61, 3 }
  0x3a   : > { %1366 = vmatmul.msk.bf16.gmra.mxu0 %vm267_vm1, %v638_v24  ;;  %v958_v24 = vrot.slane %v956_v19, 4 }
  0x3d   : > { %1353 = vmatmul.msk.bf16.gmra.mxu3 %vm267_vm1, %v531_v26  ;;  %v1491_v26 = vld [vmem:[%s1582_s29 + $0xc] sm:$0xff] }
  0x47   : > { %1316 = vmatmul.msk.bf16.gmra.mxu1 %vm267_vm1, %v1594_v9  ;;  %1328 = vmatmul.msk.bf16.gmra.mxu2 %vm267_vm1, %v390_v37  ;;  %v391_v9 = vrot.slane %v1597_v10, 1  ;;  %v967_v37 = vrot.slane %v965_v33, 4 }
  0x49   : > { %v392_v63 = vsel %vm385_vm4, %v389_v32, %v391_v9  ;;  %v394_v17 = vsel %vm385_vm4, %v391_v9, %v393_v12  ;;  %v962_v32 = vshrl.u32 %v1484_v28, 16  ;;  %v973_v9 = vrot.slane %v971_v46, 3 }
  0x4a   : > { %1367 = vmatmul.msk.bf16.gmra.mxu0 %vm267_vm1, %v640_v41 }
  0x4b   : > { %v964_v36 = vrot.slane %v962_v32, 3 }
  0x4d   : > { %1354 = vmatmul.msk.bf16.gmra.mxu3 %vm267_vm1, %v540_v44  ;;  %v968_v39 = vor.u32 %v967_v37, %v964_v36  ;;  %v736_v44 = vrot.slane %v536_v31, 3  ;;  %v740_v31 = vshrl.u32 %v1725_v50, 16  ;;  %v864_v50 = vrot.slane %v1774_v42, 3 }
  0x4f   : > { %v737_v48 = vor.u32 %v736_v44, %v735_v43 }
  0x57   : > { %1317 = vmatmul.msk.bf16.gmra.mxu1 %vm267_vm1, %v1597_v10  ;;  %1329 = vmatmul.msk.bf16.gmra.mxu2 %vm267_vm1, %v392_v63  ;;  %v733_v10 = vor.u32 %v732_v5, %v731_v56  ;;  %v985_v56 = vrot.slane %v983_v3, 4 }
  0x59   : > { %v734_v11 = vsel %vm718_vm5, %v729_v2, %v733_v10  ;;  %v738_v53 = vsel %vm718_vm5, %v733_v10, %v737_v48  ;;  %v980_v2 = vshrl.u32 %v1793_v61, 16 }
  0x5a   : > { %1368 = vmatmul.msk.bf16.gmra.mxu0 %vm267_vm1, %v642_v57 }
  0x5b   : > { %v982_v55 = vrot.slane %v980_v2, 3 }
  0x5d   : > { %1355 = vmatmul.msk.bf16.gmra.mxu3 %vm267_vm1, %v549_v45 }
  0x67   : > { %1318 = vmatmul.msk.bf16.gmra.mxu1 %vm267_vm1, %v1624_v30  ;;  %1330 = vmatmul.msk.bf16.gmra.mxu2 %vm267_vm1, %v394_v17  ;;  %v959_v30 = vor.u32 %v958_v24, %v955_v23  ;;  %v1447_v24 = vld [vmem:[%s1582_s29 + $0x2c] sm:$0xf] }
  0x69   : > { %v960_v8 = vsel %vm943_vm6, %v951_v25, %v959_v30  ;;  %v969_v41 = vsel %vm943_vm6, %v959_v30, %v968_v39  ;;  %v1495_v25 = vld [vmem:[%s1582_s29 + $0x2c] sm:$0x10] }
  0x6a   : > { %1369 = vmatmul.msk.bf16.gmra.mxu0 %vm267_vm1, %v641_v58  ;;  %v977_v58 = vor.u32 %v976_v51, %v973_v9  ;;  %v1448_v28 = vor.u32 %v1495_v25, %v1447_v24 }
  0x6c   : > { %v978_v27 = vsel %vm943_vm6, %v968_v39, %v977_v58 }
  0x6d   : > { %1356 = vmatmul.msk.bf16.gmra.mxu3 %vm267_vm1, %v548_v0  ;;  %v742_v0 = vrot.slane %v740_v31, 2 }
  0x6f   : > { %v746_v45 = vor.u32 %v745_v1, %v742_v0 }
  0x71   : > { %v747_v10 = vsel %vm718_vm5, %v737_v48, %v746_v45 }
  0x77   : > { %1331 = vmatmul.msk.bf16.gmra.mxu2 %vm267_vm1, %v393_v12  ;;  %1378 = vmatmul.msk.bf16.vlgmr.msra.gmra.mxu1 %vm267_vm1, %v730_v4  ;;  %v986_v12 = vor.u32 %v985_v56, %v982_v55 }
  0x79   : > { %v987_v6 = vsel %vm943_vm6, %v977_v58, %v986_v12 }
  0x7a   : > { %1457 = vmatmul.msk.bf16.vlgmr.msra.gmra.mxu0 %vm267_vm1, %v1491_v26  ;;  %v867_v26 = vsel %vm858_vm7, %v864_v50, %v866_v21 }
  0x7d   : > { %1424 = vmatmul.msk.bf16.vlgmr.msra.gmra.mxu3 %vm267_vm1, %v960_v8 }
  0x87   : > { %1379 = vmatmul.msk.bf16.gmra.mxu1 %vm267_vm1, %v734_v11  ;;  %1411 = vmatmul.msk.bf16.vlgmr.msra.gmra.mxu2 %vm267_vm1, %v861_v38  ;;  %v865_v11 = vsel %vm858_vm7, %v862_v49, %v864_v50 }
  0x8a   : > { %1458 = vmatmul.msk.bf16.gmra.mxu0 %vm267_vm1, %v1492_v40 }
  0x8d   : > { %1425 = vmatmul.msk.bf16.gmra.mxu3 %vm267_vm1, %v969_v41 }
  0x94   : > { %v297_v52 = vpop.f32.mrf.mxu1 }
  0x97   : > { %v292_v29 = vpop.f32.mrf.mxu0  ;;  %1380 = vmatmul.msk.bf16.gmra.mxu1 %vm267_vm1, %v738_v53  ;;  %1412 = vmatmul.msk.bf16.gmra.mxu2 %vm267_vm1, %v863_v54 }
  0x9a   : > { %1459 = vmatmul.msk.bf16.gmra.mxu0 %vm267_vm1, %v1493_v59  ;;  %v302_v62 = vpop.f32.mrf.mxu2 }
  0x9c   : > { %v299_v63 = vpop.f32.mrf.mxu1 }
  0x9d   : > { %1426 = vmatmul.msk.bf16.gmra.mxu3 %vm267_vm1, %v978_v27 }
  0x9f   : > { %v294_v4 = vpop.f32.mrf.mxu0 }
  0xa0   : > { %v1799_v57 = vpop.f32.mrf.mxu3 }
  0xa2   : > { %v304_v5 = vpop.f32.mrf.mxu2 }
  0xa4   : > { %v348_v7 = vpop.f32.mrf.mxu1 }
  0xa5   : > { %v349_v17 = vadd.f32 %v348_v7, %v292_v29 }
  0xa7   : > { %v679_v14 = vpop.f32.mrf.mxu0  ;;  %1381 = vmatmul.msk.bf16.gmra.mxu1 %vm267_vm1, %v747_v10  ;;  %1413 = vmatmul.msk.bf16.gmra.mxu2 %vm267_vm1, %v865_v11 }
  0xa8   : > { %v1805_v15 = vpop.f32.mrf.mxu3 }
  0xaa   : > { %1460 = vmatmul.msk.bf16.gmra.mxu0 %vm267_vm1, %v1494_v18  ;;  %v307_v13 = vpop.f32.mrf.mxu2 }
  0xac   : > { %v350_v22 = vpop.f32.mrf.mxu1 }
  0xad   : > { %1427 = vmatmul.msk.bf16.gmra.mxu3 %vm267_vm1, %v987_v6  ;;  %v351_v16 = vadd.f32 %v350_v22, %v294_v4 }
  0xaf   : > { %v681_v20 = vpop.f32.mrf.mxu0 }
  0xb0   : > { %v586_v19 = vpop.f32.mrf.mxu3 }
  0xb2   : > { %v309_v23 = vpop.f32.mrf.mxu2 }
  0xb4   : > { %v353_v30 = vpop.f32.mrf.mxu1 }
  0xb5   : > { %v354_v8 = vadd.f32 %v353_v30, %v297_v52 }
  0xb7   : > { %v684_v33 = vpop.f32.mrf.mxu0  ;;  %1382 = vmatmul.msk.bf16.gmra.mxu1 %vm267_vm1, %v746_v45  ;;  %1414 = vmatmul.msk.bf16.gmra.mxu2 %vm267_vm1, %v867_v26 }
  0xb8   : > { %v588_v32 = vpop.f32.mrf.mxu3 }
  0xba   : > { %1461 = vmatmul.msk.bf16.gmra.mxu0 %vm267_vm1, %v1448_v28  ;;  %v431_v34 = vpop.f32.mrf.mxu2 }
  0xbb   : > { %v456_v35 = vadd.f32 %v431_v34, %v349_v17 }
  0xbc   : > { %v355_v36 = vpop.f32.mrf.mxu1 }
  0xbd   : > { %1428 = vmatmul.msk.bf16.gmra.mxu3 %vm267_vm1, %v986_v12  ;;  %v611_v37 = vadd.f32 %v586_v19, %v456_v35  ;;  %v356_v38 = vadd.f32 %v355_v36, %v299_v63 }
  0xbf   : > { %v686_v40 = vpop.f32.mrf.mxu0  ;;  %v1820_v41 = vadd.f32 %v679_v14, %v611_v37 }
  0xc0   : > { %v591_v39 = vpop.f32.mrf.mxu3 }
  0xc2   : > { %v433_v42 = vpop.f32.mrf.mxu2 }
  0xc3   : > { %v457_v43 = vadd.f32 %v433_v42, %v351_v16 }
  0xc4   : > { %v358_v44 = vpop.f32.mrf.mxu1 }
  0xc5   : > { %v612_v46 = vadd.f32 %v588_v32, %v457_v43  ;;  %v359_v47 = vadd.f32 %v358_v44, %v302_v62 }
  0xc7   : > { %v689_v49 = vpop.f32.mrf.mxu0  ;;  %1415 = vmatmul.msk.bf16.gmra.mxu2 %vm267_vm1, %v866_v21  ;;  %v1823_v9 = vadd.f32 %v681_v20, %v612_v46 }
  0xc8   : > { %v593_v48 = vpop.f32.mrf.mxu3 }
  0xca   : > { %v436_v51 = vpop.f32.mrf.mxu2 }
  0xcb   : > { %v458_v52 = vadd.f32 %v436_v51, %v354_v8 }
  0xcc   : > { %v360_v53 = vpop.f32.mrf.mxu1 }
  0xcd   : > { %v613_v54 = vadd.f32 %v591_v39, %v458_v52  ;;  %v361_v58 = vadd.f32 %v360_v53, %v304_v5  ;;  %v1847_v53 = vld [vmem:[%s1899_s2] ss:$0 sm:$0xff] }
  0xcf   : > { %v691_v29 = vpop.f32.mrf.mxu0  ;;  %v1825_v27 = vadd.f32 %v684_v33, %v613_v54 }
  0xd0   : > { %v596_v59 = vpop.f32.mrf.mxu3 }
  0xd2   : > { %v438_v31 = vpop.f32.mrf.mxu2 }
  0xd3   : > { %v459_v60 = vadd.f32 %v438_v31, %v356_v38 }
  0xd4   : > { %v363_v61 = vpop.f32.mrf.mxu1 }
  0xd5   : > { %v614_v63 = vadd.f32 %v593_v48, %v459_v60  ;;  %v364_v62 = vadd.f32 %v363_v61, %v307_v13 }
  0xd7   : > { %v694_v1 = vpop.f32.mrf.mxu0  ;;  %v1827_v2 = vadd.f32 %v686_v40, %v614_v63 }
  0xd8   : > { %v598_v0 = vpop.f32.mrf.mxu3 }
  0xda   : > { %v441_v3 = vpop.f32.mrf.mxu2 }
  0xdb   : > { %v460_v4 = vadd.f32 %v441_v3, %v359_v47 }
  0xdc   : > { %v365_v45 = vpop.f32.mrf.mxu1 }
  0xdd   : > { %v615_v50 = vadd.f32 %v596_v59, %v460_v4  ;;  %v366_v55 = vadd.f32 %v365_v45, %v309_v23 }
  0xdf   : > { %v696_v5 = vpop.f32.mrf.mxu0  ;;  %v1829_v7 = vadd.f32 %v689_v49, %v615_v50 }
  0xe0   : > { %v601_v56 = vpop.f32.mrf.mxu3 }
  0xe2   : > { %v443_v10 = vpop.f32.mrf.mxu2 }
  0xe3   : > { %v461_v11 = vadd.f32 %v443_v10, %v361_v58 }
  0xe4   : > { %v368_v12 = vpop.f32.mrf.mxu1 }
  0xe5   : > { %v616_v17 = vadd.f32 %v598_v0, %v461_v11  ;;  %v369_v18 = vadd.f32 %v368_v12, %v1799_v57 }
  0xe7   : > { %v1832_v6 = vadd.f32 %v691_v29, %v616_v17  ;;  %v699_v13 = vpop.f32.mrf.mxu0 }
  0xe8   : > { %v603_v14 = vpop.f32.mrf.mxu3 }
  0xea   : > { %v446_v22 = vpop.f32.mrf.mxu2 }
  0xeb   : > { %v462_v16 = vadd.f32 %v446_v22, %v364_v62 }
  0xec   : > { %v370_v19 = vpop.f32.mrf.mxu1 }
  0xed   : > { %v617_v20 = vadd.f32 %v601_v56, %v462_v16  ;;  %v371_v21 = vadd.f32 %v370_v19, %v1805_v15 }
  0xef   : > { %v1835_v24 = vadd.f32 %v694_v1, %v617_v20  ;;  %v701_v30 = vpop.f32.mrf.mxu0 }
  0xf0   : > { %v606_v23 = vpop.f32.mrf.mxu3 }
  0xf2   : > { %v448_v25 = vpop.f32.mrf.mxu2 }
  0xf3   : > { %v463_v26 = vadd.f32 %v448_v25, %v366_v55 }
  0xf4   : > { %v784_v8 = vpop.f32.mrf.mxu1 }
  0xf5   : > { %v618_v28 = vadd.f32 %v603_v14, %v463_v26  ;;  %v809_v48 = vadd.f32 %v784_v8, %v1820_v41 }
  0xf7   : > { %v1837_v57 = vadd.f32 %v696_v5, %v618_v28  ;;  %v1134_v35 = vpop.f32.mrf.mxu0 }
  0xf8   : > { %v608_v32 = vpop.f32.mrf.mxu3 }
  0xfa   : > { %v451_v33 = vpop.f32.mrf.mxu2 }
  0xfb   : > { %v464_v34 = vadd.f32 %v451_v33, %v369_v18 }
  0xfc   : > { %v786_v37 = vpop.f32.mrf.mxu1 }
  0xfd   : > { %v619_v36 = vadd.f32 %v606_v23, %v464_v34  ;;  %v810_v29 = vadd.f32 %v786_v37, %v1823_v9 }
  0xff   : > { %v1839_v39 = vadd.f32 %v699_v13, %v619_v36  ;;  %v1136_v44 = vpop.f32.mrf.mxu0 }
 0x100   : > { %v1024_v38 = vpop.f32.mrf.mxu3 }
 0x102   : > { %v453_v15 = vpop.f32.mrf.mxu2 }
 0x103   : > { %v465_v40 = vadd.f32 %v453_v15, %v371_v21 }
 0x104   : > { %v789_v47 = vpop.f32.mrf.mxu1 }
 0x105   : > { %v620_v42 = vadd.f32 %v608_v32, %v465_v40  ;;  %v811_v3 = vadd.f32 %v789_v47, %v1825_v27 }
 0x107   : > { %v1841_v46 = vadd.f32 %v701_v30, %v620_v42  ;;  %v1139_v59 = vpop.f32.mrf.mxu0 }
 0x108   : > { %v1026_v43 = vpop.f32.mrf.mxu3 }
 0x10a   : > { %v904_v49 = vpop.f32.mrf.mxu2 }
 0x10b   : > { %v929_v51 = vadd.f32 %v904_v49, %v809_v48 }
 0x10c   : > { %v791_v60 = vpop.f32.mrf.mxu1 }
 0x10d   : > { %v1049_v52 = vadd.f32 %v1024_v38, %v929_v51  ;;  %v812_v17 = vadd.f32 %v791_v60, %v1827_v2 }
 0x10f   : > { %v1159_v58 = vadd.f32 %v1134_v35, %v1049_v52  ;;  %v1141_v50 = vpop.f32.mrf.mxu0 }
 0x110   : > { %v1029_v54 = vpop.f32.mrf.mxu3 }
 0x111   : > { %v1173_v31 = vadd.f32 %v1847_v53, %v1159_v58 }
 0x112   : > { %v906_v61 = vpop.f32.mrf.mxu2 }
 0x113   : > { %v1183_v63 = vmax.f32 %v1173_v31, 0.0  ;;  %v930_v41 = vadd.f32 %v906_v61, %v810_v29 }
 0x114   : > { %v794_v5 = vpop.f32.mrf.mxu1 }
 0x115   : > { %v1193_v62 = vpack.c.bf16 %v1183_v63, %v1183_v63  ;;  %v1050_v0 = vadd.f32 %v1026_v43, %v930_v41  ;;  %v813_v25 = vadd.f32 %v794_v5, %v1829_v7 }
 0x117   : > { %1204 = vst.msk [vmem:[%s1855_s7] sm:$0xf] %vm1203_vm8, %v1193_v62  ;;  %v1160_v1 = vadd.f32 %v1136_v44, %v1050_v0  ;;  %v1144_v16 = vpop.f32.mrf.mxu0 }
 0x118   : > { %v1031_v9 = vpop.f32.mrf.mxu3 }
 0x119   : > { %v1174_v4 = vadd.f32 %v1847_v53, %v1160_v1 }
 0x11a   : > { %v909_v45 = vpop.f32.mrf.mxu2 }
 0x11b   : > { %v1184_v55 = vmax.f32 %v1174_v4, 0.0  ;;  %v931_v56 = vadd.f32 %v909_v45, %v811_v3 }
 0x11c   : > { %v796_v21 = vpop.f32.mrf.mxu1 }
 0x11d   : > { %v1194_v10 = vpack.c.bf16 %v1184_v55, %v1184_v55  ;;  %v1051_v11 = vadd.f32 %v1029_v54, %v931_v56  ;;  %v814_v37 = vadd.f32 %v796_v21, %v1832_v6 }
 0x11f   : > { %1205 = vst.msk [vmem:[%s1855_s7 + $0x4] sm:$0xf] %vm1203_vm8, %v1194_v10  ;;  %v1161_v12 = vadd.f32 %v1139_v59, %v1051_v11  ;;  %v1146_v34 = vpop.f32.mrf.mxu0 }
 0x120   : > { %v1034_v13 = vpop.f32.mrf.mxu3 }
 0x121   : > { %v1175_v18 = vadd.f32 %v1847_v53, %v1161_v12 }
 0x122   : > { %v911_v14 = vpop.f32.mrf.mxu2 }
 0x123   : > { %v1185_v27 = vmax.f32 %v1175_v18, 0.0  ;;  %v932_v22 = vadd.f32 %v911_v14, %v812_v17 }
 0x124   : > { %v799_v36 = vpop.f32.mrf.mxu1 }
 0x125   : > { %v1195_v19 = vpack.c.bf16 %v1185_v27, %v1185_v27  ;;  %v1052_v20 = vadd.f32 %v1031_v9, %v932_v22  ;;  %v815_v49 = vadd.f32 %v799_v36, %v1835_v24 }
 0x127   : > { %1206 = vst.msk [vmem:[%s1855_s7 + $0x8] sm:$0xf] %vm1203_vm8, %v1195_v19  ;;  %v1162_v23 = vadd.f32 %v1141_v50, %v1052_v20  ;;  %v1149_v48 = vpop.f32.mrf.mxu0 }
 0x128   : > { %v1036_v28 = vpop.f32.mrf.mxu3 }
 0x129   : > { %v1176_v30 = vadd.f32 %v1847_v53, %v1162_v23 }
 0x12a   : > { %v914_v26 = vpop.f32.mrf.mxu2 }
 0x12b   : > { %v1186_v2 = vmax.f32 %v1176_v30, 0.0  ;;  %v933_v8 = vadd.f32 %v914_v26, %v813_v25 }
 0x12c   : > { %v801_v52 = vpop.f32.mrf.mxu1 }
 0x12d   : > { %v1196_v32 = vpack.c.bf16 %v1186_v2, %v1186_v2  ;;  %v1053_v33 = vadd.f32 %v1034_v13, %v933_v8  ;;  %v816_v61 = vadd.f32 %v801_v52, %v1837_v57 }
 0x12f   : > { %1207 = vst.msk [vmem:[%s1855_s7 + $0xc] sm:$0xf] %vm1203_vm8, %v1196_v32  ;;  %v1163_v35 = vadd.f32 %v1144_v16, %v1053_v33  ;;  %v1151_v41 = vpop.f32.mrf.mxu0 }
 0x130   : > { %v1039_v44 = vpop.f32.mrf.mxu3 }
 0x131   : > { %v1177_v38 = vadd.f32 %v1847_v53, %v1163_v35 }
 0x132   : > { %v916_v15 = vpop.f32.mrf.mxu2 }
 0x133   : > { %v1187_v7 = vmax.f32 %v1177_v38, 0.0  ;;  %v934_v40 = vadd.f32 %v916_v15, %v814_v37 }
 0x134   : > { %v804_v1 = vpop.f32.mrf.mxu1 }
 0x135   : > { %v1197_v42 = vpack.c.bf16 %v1187_v7, %v1187_v7  ;;  %v1054_v43 = vadd.f32 %v1036_v28, %v934_v40  ;;  %v817_v45 = vadd.f32 %v804_v1, %v1839_v39 }
 0x137   : > { %1208 = vst.msk [vmem:[%s1855_s7 + $0x10] sm:$0xf] %vm1203_vm8, %v1197_v42  ;;  %v1164_v47 = vadd.f32 %v1146_v34, %v1054_v43  ;;  %v1154_v10 = vpop.f32.mrf.mxu0 }
 0x138   : > { %v1041_v60 = vpop.f32.mrf.mxu3 }
 0x139   : > { %v1178_v51 = vadd.f32 %v1847_v53, %v1164_v47 }
 0x13a   : > { %v919_v54 = vpop.f32.mrf.mxu2 }
 0x13b   : > { %v1188_v6 = vmax.f32 %v1178_v51, 0.0  ;;  %v935_v58 = vadd.f32 %v919_v54, %v815_v49 }
 0x13c   : > { %v806_v17 = vpop.f32.mrf.mxu1 }
 0x13d   : > { %v1198_v59 = vpack.c.bf16 %v1188_v6, %v1188_v6  ;;  %v1055_v29 = vadd.f32 %v1039_v44, %v935_v58  ;;  %v818_v14 = vadd.f32 %v806_v17, %v1841_v46  ;;  %v1216_v46 = vld [vmem:[%s1855_s7 + $0x24] sm:$0x1] }
 0x13f   : > { %1209 = vst.msk [vmem:[%s1855_s7 + $0x14] sm:$0xf] %vm1203_vm8, %v1198_v59  ;;  %v1165_v31 = vadd.f32 %v1149_v48, %v1055_v29  ;;  %v1156_v21 = vpop.f32.mrf.mxu0 }
 0x140   : > { %v1044_v55 = vpop.f32.mrf.mxu3 }
 0x141   : > { %v1179_v63 = vadd.f32 %v1847_v53, %v1165_v31 }
 0x142   : > { %v921_v62 = vpop.f32.mrf.mxu2 }
 0x143   : > { %v1189_v24 = vmax.f32 %v1179_v63, 0.0  ;;  %v936_v0 = vadd.f32 %v921_v62, %v816_v61 }
 0x145   : > { %v1199_v9 = vpack.c.bf16 %v1189_v24, %v1189_v24  ;;  %v1056_v3 = vadd.f32 %v1041_v60, %v936_v0 }
 0x147   : > { %1210 = vst.msk [vmem:[%s1855_s7 + $0x18] sm:$0xf] %vm1203_vm8, %v1199_v9  ;;  %v1166_v4 = vadd.f32 %v1151_v41, %v1056_v3 }
 0x148   : > { %v1046_v16 = vpop.f32.mrf.mxu3 }
 0x149   : > { %v1180_v50 = vadd.f32 %v1847_v53, %v1166_v4 }
 0x14a   : > { %v924_v56 = vpop.f32.mrf.mxu2 }
 0x14b   : > { %v1190_v57 = vmax.f32 %v1180_v50, 0.0  ;;  %v937_v5 = vadd.f32 %v924_v56, %v817_v45 }
 0x14d   : > { %v1200_v11 = vpack.c.bf16 %v1190_v57, %v1190_v57  ;;  %v1057_v12 = vadd.f32 %v1044_v55, %v937_v5 }
 0x14f   : > { %1211 = vst.msk [vmem:[%s1855_s7 + $0x1c] sm:$0xf] %vm1203_vm8, %v1200_v11  ;;  %v1167_v18 = vadd.f32 %v1154_v10, %v1057_v12 }
 0x151   : > { %v1181_v13 = vadd.f32 %v1847_v53, %v1167_v18 }
 0x152   : > { %v926_v39 = vpop.f32.mrf.mxu2 }
 0x153   : > { %v1191_v27 = vmax.f32 %v1181_v13, 0.0  ;;  %v938_v22 = vadd.f32 %v926_v39, %v818_v14 }
 0x155   : > { %v1201_v19 = vpack.c.bf16 %v1191_v27, %v1191_v27  ;;  %v1058_v20 = vadd.f32 %v1046_v16, %v938_v22 }
 0x157   : > { %1212 = vst.msk [vmem:[%s1855_s7 + $0x20] sm:$0xf] %vm1203_vm8, %v1201_v19  ;;  %v1168_v23 = vadd.f32 %v1156_v21, %v1058_v20 }
 0x159   : > { %v1182_v25 = vadd.f32 %v1847_v53, %v1168_v23 }
 0x15b   : > { %v1192_v30 = vmax.f32 %v1182_v25, 0.0 }
 0x15d   : > { %v1202_v26 = vpack.c.bf16 %v1192_v30, %v1192_v30 }
 0x15f   : > { %v1217_v2 = vsel %vm1215_vm11, %v1202_v26, %v1216_v46 }
 0x160   : > { %1218 = vst [vmem:[%s1855_s7 + $0x24] sm:$0x1] %v1217_v2 }
 0x161 PF: > { %s13_s12 = sadd.s32 1, %s1528_s12  }
 0x162   : > { %p10_p4 = scmp.ge.s32.totalorder %s13_s12, 4  }
 0x164   :  { %12 = sbr.rel (!%p10_p4) target bundleno = 1 (0x1), region = 62 }

// kernel: progressive_encoder_forward.8
= control target key start
LH: loop header
LB: loop body
LE: loop exit
PB: predicated region body
PF: predicated region fallthrough
CT: control target
= control target key end

     0   :  { %s1321_s12 = smov 0   ;;  %s1567_s0 = inlined_call_operand.vmem [shape: bf16[2,73,32], index: 0, kind: input, shape index: {}]   ;;  %s1568_s1 = inlined_call_operand.vmem [shape: bf16[288,32], index: 1, kind: input, shape index: {}]   ;;  %s1569_s2 = inlined_call_operand.vmem [shape: f32[1,32], index: 2, kind: input, shape index: {}]   ;;  %s1570_s3 = inlined_call_operand.vmem [shape: bf16[2,49,32], index: 3, kind: output, shape index: {}]  }
   0x1 LB: > { %s1084_s13 = sadd.s32 4294967295, %s1299_s12   ;;  %p1088_p0 = scmp.ge.s32.totalorder %s1299_s12, 1  ;;  %s1299_s12 = sphi %s1321_s12, %s13_s12  }
   0x2   : > { %p137_p1 = scmp.lt.s32.totalorder %s1299_s12, 3 }
   0x4   : > { %p138_p2 = pnand %p1088_p0, %p137_p1 }
   0x5   : > { %p161_p3 = scmp.lt.s32.totalorder (!%p138_p2), %s1084_s13, 1 }
   0x6   : > { %141 = sbr.rel (%p138_p2) target bundleno = 300 (0x12c), region = 32 }
   0xb   : > { %v1246_v0 = vld [vmem:[%s1568_s1 + $0x18] sm:$0xff]  ;;  %v1245_v1 = vld [vmem:[%s1568_s1 + $0x10] sm:$0xff]  ;;  %s1572_s13 = smov (!%p161_p3, %s1084_s13), 1  ;;  %v1248_v2 = vld [vmem:[%s1568_s1 + $0x28] sm:$0xff]  ;;  %vm248_vm0 = vcmask 261120   ;;  %vm349_vm3 = vcmask 1046528  }
   0xc   : > { %1278 = vmatpush.bf16.msra.mxu3 %v1246_v0  ;;  %1276 = vmatpush.bf16.msra.mxu1 %v1246_v0  ;;  %s1282_s18 = smul.u32 40, %s1572_s13  ;;  %v1252_v3 = vld [vmem:[%s1568_s1 + $0x38] sm:$0xff]  ;;  %v1244_v4 = vld [vmem:[%s1568_s1 + $0x8] sm:$0xff]  ;;  %v1247_v6 = vld [vmem:[%s1568_s1 + $0x20] sm:$0xff]  ;;  %vm205_vm1 = vsmask.f32 7424 }
   0xd   : > { %1277 = vmatpush.bf16.msra.mxu2 %v1246_v0  ;;  %267 = vmatpush.bf16.msra.mxu0 %v1246_v0  ;;  %v1254_v5 = vld [vmem:[%s1568_s1 + $0x48] sm:$0xff]  ;;  %v1251_v7 = vld [vmem:[%s1568_s1 + $0x30] sm:$0xff]  ;;  %v1243_v19 = vld [vmem:[%s1568_s1] sm:$0xff]  ;;  %vm445_vm2 = vsmask.f32 6400  ;;  %vm552_vm4 = vcmask 1045504  }
   0xe   : > { %s1353_s29 = scalar_lea.vmem %s1567_s0, %s1282_s18  ;;  %v1253_v20 = vld [vmem:[%s1568_s1 + $0x40] sm:$0xff]  ;;  %v1263_v29 = vld [vmem:[%s1568_s1 + $0x78] sm:$0xff]  ;;  %v1261_v39 = vld [vmem:[%s1568_s1 + $0x68] sm:$0xff]  ;;  %vm623_vm5 = vsmask.f32 5376  ;;  %vm737_vm7 = vcmask 1044480  }
   0xf   : > { %v178_v8 = vld [vmem:[%s1353_s29 + $0x18] sm:$0x1]  ;;  %v1363_v9 = vld [vmem:[%s1353_s29 + $0x8] sm:$0xff]  ;;  %v1366_v10 = vld [vmem:[%s1353_s29 + $0x10] sm:$0xff]  ;;  %vm808_vm6 = vsmask.f32 4352 }
  0x10   : > { %1281 = vmatpush.bf16.msra.mxu3 %v1245_v1  ;;  %1279 = vmatpush.bf16.msra.mxu1 %v1245_v1  ;;  %v200_v11 = vunpack.c.l.b16 %v178_v8  ;;  %v1369_v12 = vld [vmem:[%s1353_s29] sm:$0xff]   ;;  %v417_v14 = vld [vmem:[%s1353_s29 + $0x8] sm:$0xf]  ;;  %v214_v15 = vshll.u32 %v1363_v9, 16  ;;  %v218_v16 = vshrl.u32 %v1363_v9, 16  ;;  %v222_v17 = vshll.u32 %v1366_v10, 16 }
  0x11   : > { %1280 = vmatpush.bf16.msra.mxu2 %v1245_v1  ;;  %268 = vmatpush.bf16.msra.mxu0 %v1245_v1  ;;  %v416_v13 = vld [vmem:[%s1353_s29 + $0x4] sm:$0xe]  ;;  %v226_v18 = vshrl.u32 %v1366_v10, 16  ;;  %v207_v22 = vshrl.u32 %v1369_v12, 16  ;;  %v209_v23 = vshll.u32 %v1369_v12, 16  ;;  %v1388_v24 = vld [vmem:[%s1353_s29 + $0xc] sm:$0xff]  ;;  %v435_v28 = vunpack.c.l.b16 %v417_v14 }
  0x12   : > { %v1383_v21 = vpack.c.b16 %v200_v11, %v200_v11  ;;  %v434_v25 = vunpack.c.l.b16 %v416_v13  ;;  %v216_v26 = vrot.slane %v214_v15, 1  ;;  %v224_v27 = vrot.slane %v222_v17, 1  ;;  %v1256_v40 = vld [vmem:[%s1568_s1 + $0x58] sm:$0xff]  ;;  %v540_v45 = vld [vmem:[%s1353_s29 + $0x4] sm:$0xc]  ;;  %v1268_v46 = vld [vmem:[%s1568_s1 + $0x88] sm:$0xff] }
  0x13   : > { %v211_v32 = vrot.slane %v209_v23, 1  ;;  %v455_v38 = vshrl.u32 %v1388_v24, 16  ;;  %v458_v44 = vshll.u32 %v1388_v24, 16  ;;  %v1273_v49 = vld [vmem:[%s1353_s29] sm:$0xf0]  ;;  %v548_v50 = vunpack.c.l.b16 %v540_v45  ;;  %v1250_v1 = vld [vmem:[%s1353_s29 + $0x14] sm:$0xff] }
  0x14   : > { %511 = vmatpush.bf16.msrb.mxu3 %v1252_v3  ;;  %315 = vmatpush.bf16.msrb.mxu1 %v1244_v4  ;;  %v234_v30 = vshrl.u32 %v1383_v21, 16  ;;  %v230_v31 = vshll.u32 %v1383_v21, 16  ;;  %v220_v33 = vor.u32 %v218_v16, %v216_v26  ;;  %v228_v34 = vor.u32 %v226_v18, %v224_v27  ;;  %v1274_v55 = vld [vmem:[%s1353_s29] sm:$0xe]  ;;  %v1255_v8 = vld [vmem:[%s1568_s1 + $0x50] sm:$0xff]  ;;  %s1283_s4 = smul.u32 28, %s1572_s13 }
  0x15   : > { %387 = vmatpush.bf16.msrb.mxu2 %v1248_v2  ;;  %590 = vmatpush.bf16.msrb.mxu0 %v1254_v5  ;;  %v441_v35 = vpack.c.b16 %v435_v28, %v434_v25  ;;  %v212_v37 = vor.u32 %v211_v32, %v207_v22  ;;  %v457_v53 = vrot.slane %v455_v38, 1  ;;  %v460_v54 = vrot.slane %v458_v44, 2  ;;  %v1267_v11 = vld [vmem:[%s1568_s1 + $0x80] sm:$0xff]  ;;  %v422_v14 = vld [vmem:[%s1353_s29 + $0x1c] sm:$0x3] }
  0x16   : > { %1110 = vmatmul.msk.bf16.vlgmr.msra.gmra.mxu3 %vm248_vm0, %v234_v30  ;;  %v232_v36 = vrot.slane %v230_v31, 1  ;;  %v225_v41 = vsel %vm205_vm1, %v220_v33, %v224_v27  ;;  %v1275_v56 = vor.u32 %v1274_v55, %v1273_v49  ;;  %v1420_v57 = vpack.c.b16 %v435_v28, %v548_v50  ;;  %v338_v27 = vld [vmem:[%s1353_s29 + $0x18] sm:$0x3]  ;;  %v541_v28 = vld [vmem:[%s1353_s29 + $0x1c] sm:$0x7]  ;;  %s1538_s7 = scalar_lea.vmem %s1570_s3, %s1283_s4 }
  0x17   : > { %v447_v42 = vshrl.u32 %v441_v35, 16  ;;  %v450_v43 = vshll.u32 %v441_v35, 16  ;;  %1108 = vmatmul.msk.bf16.vlgmr.msra.gmra.mxu1 %vm248_vm0, %v225_v41  ;;  %v217_v48 = vsel %vm205_vm1, %v212_v37, %v216_v26  ;;  %v461_v59 = vor.u32 %v460_v54, %v457_v53  ;;  %v1181_v45 = vld [vmem:[%s1353_s29 + $0x8] sm:$0x8] }
  0x18   : > { %512 = vmatpush.bf16.msrb.mxu3 %v1251_v7  ;;  %316 = vmatpush.bf16.msrb.mxu1 %v1243_v19  ;;  %v233_v47 = vsel %vm205_vm1, %v228_v34, %v232_v36  ;;  %v350_v60 = vrot.slane %v1275_v56, 1  ;;  %v351_v61 = vrot.slane %v1363_v9, 1  ;;  %v553_v62 = vrot.slane %v1420_v57, 2  ;;  %v1262_v7 = vld [vmem:[%s1568_s1 + $0x70] sm:$0xff] }
  0x19   : > { %388 = vmatpush.bf16.msrb.mxu2 %v1247_v6  ;;  %591 = vmatpush.bf16.msrb.mxu0 %v1253_v20  ;;  %v449_v51 = vrot.slane %v447_v42, 1  ;;  %v452_v52 = vrot.slane %v450_v43, 2  ;;  %v554_v63 = vrot.slane %v1388_v24, 2  ;;  %v464_v4 = vshrl.u32 %v1250_v1, 16  ;;  %v1260_v6 = vld [vmem:[%s1568_s1 + $0x60] sm:$0xff] }
  0x1a   : > { %1109 = vmatmul.msk.bf16.vlgmr.msra.gmra.mxu2 %vm248_vm0, %v233_v47  ;;  %1107 = vmatmul.msk.bf16.vlgmr.msra.gmra.mxu0 %vm248_vm0, %v217_v48  ;;  %v352_v2 = vsel %vm349_vm3, %v350_v60, %v351_v61  ;;  %v467_v5 = vshll.u32 %v1250_v1, 16  ;;  %v440_v16 = vunpack.c.l.b16 %v422_v14  ;;  %v353_v17 = vrot.slane %v1366_v10, 1 }
  0x1b   : > { %v453_v58 = vor.u32 %v452_v52, %v449_v51  ;;  %v555_v3 = vsel %vm552_vm4, %v553_v62, %v554_v63  ;;  %v556_v18 = vrot.slane %v1250_v1, 2  ;;  %v549_v30 = vunpack.c.l.b16 %v541_v28 }
  0x1c   : > { %874 = vmatpush.bf16.msra.mxu3 %v1263_v29  ;;  %679 = vmatpush.bf16.msra.mxu1 %v1256_v40  ;;  %v469_v13 = vrot.slane %v467_v5, 2  ;;  %v444_v20 = vpack.c.b16 %v440_v16, %v440_v16  ;;  %v354_v22 = vsel %vm349_vm3, %v351_v61, %v353_v17  ;;  %v346_v29 = vunpack.c.l.b16 %v338_v27 }
  0x1d   : > { %775 = vmatpush.bf16.msra.mxu2 %v1261_v39  ;;  %962 = vmatpush.bf16.msra.mxu0 %v1268_v46  ;;  %v462_v0 = vsel %vm445_vm2, %v453_v58, %v461_v59  ;;  %v557_v23 = vsel %vm552_vm4, %v554_v63, %v556_v18  ;;  %v1458_v34 = vpack.c.b16 %v549_v30, %v549_v30  ;;  %v632_v39 = vrot.slane %v455_v38, 2  ;;  %v1257_v46 = vld [vmem:[%s1353_s29 + $0x8] sm:$0xf0]  ;;  %v1258_v38 = vld [vmem:[%s1353_s29 + $0x10] sm:$0xff] }
  0x1e   : > { %v473_v25 = vshrl.u32 %v444_v20, 16  ;;  %v476_v26 = vshll.u32 %v444_v20, 16  ;;  %v348_v33 = vpack.c.b16 %v346_v29, %v346_v29  ;;  %v633_v40 = vrot.slane %v458_v44, 3 }
  0x1f   : > { %v558_v37 = vrot.slane %v1458_v34, 2  ;;  %v1182_v47 = vor.u32 %v1257_v46, %v1181_v45  ;;  %v636_v24 = vrot.slane %v464_v4, 2  ;;  %v637_v44 = vrot.slane %v467_v5, 3 }
  0x20   : > { %875 = vmatpush.bf16.msra.mxu3 %v1262_v7  ;;  %680 = vmatpush.bf16.msra.mxu1 %v1255_v8  ;;  %v475_v31 = vrot.slane %v473_v25, 1  ;;  %v478_v32 = vrot.slane %v476_v26, 2  ;;  %v355_v36 = vrot.slane %v348_v33, 1  ;;  %v634_v41 = vor.u32 %v633_v40, %v632_v39 }
  0x21   : > { %776 = vmatpush.bf16.msra.mxu2 %v1260_v6  ;;  %963 = vmatpush.bf16.msra.mxu0 %v1267_v11  ;;  %v559_v43 = vsel %vm552_vm4, %v556_v18, %v558_v37  ;;  %v1476_v48 = vor.u32 %v637_v44, %v636_v24  ;;  %v818_v49 = vshrl.u32 %v1258_v38, 16  ;;  %v810_v50 = vshrl.u32 %v1182_v47, 16  ;;  %v1265_v18 = vld [vmem:[%s1353_s29 + $0x14] sm:$0xff] }
  0x22   : > { %v479_v35 = vor.u32 %v478_v32, %v475_v31  ;;  %v356_v42 = vsel %vm349_vm3, %v353_v17, %v355_v36  ;;  %v813_v51 = vshll.u32 %v1182_v47, 16  ;;  %v821_v52 = vshll.u32 %v1258_v38, 16 }
  0x23   : > { %v625_v53 = vshrl.u32 %v1420_v57, 16  ;;  %v628_v54 = vshll.u32 %v1420_v57, 16  ;;  %v812_v55 = vrot.slane %v810_v50, 3  ;;  %v820_v58 = vrot.slane %v818_v49, 3 }
  0x24   : > { %v815_v56 = vrot.slane %v813_v51, 4  ;;  %v739_v1 = vrot.slane %v1258_v38, 3  ;;  %v644_v25 = vshll.u32 %v1458_v34, 16  ;;  %vm1016_vm8 = vcmask 257024  }
  0x25   : > { %v627_v60 = vrot.slane %v625_v53, 2  ;;  %v630_v61 = vrot.slane %v628_v54, 3  ;;  %vm1023_vm9 = vcmask 253952   ;;  %vm1024_vm10 = vsmask.f32 256 }
  0x26   : > { %1151 = vmatmul.msk.bf16.vlgmr.msrb.gmra.mxu3 %vm248_vm0, %v462_v0  ;;  %v816_v62 = vor.u32 %v815_v56, %v812_v55  ;;  %v738_v0 = vrot.slane %v1182_v47, 3  ;;  %v646_v29 = vrot.slane %v644_v25, 3  ;;  %vm1025_vm11 = vmand %vm1023_vm9, %vm1024_vm10 }
  0x27   : > { %1119 = vmatmul.msk.bf16.vlgmr.msrb.gmra.mxu1 %vm248_vm0, %v1369_v12  ;;  %v466_v12 = vrot.slane %v464_v4, 1  ;;  %v1264_v4 = vld [vmem:[%s1353_s29 + $0xc] sm:$0xff] }
  0x28   : > { %v740_v5 = vsel %vm737_vm7, %v738_v0, %v739_v1 }
  0x29   : > { %v470_v15 = vor.u32 %v469_v13, %v466_v12  ;;  %v714_v12 = vld [vmem:[%s1353_s29 + $0x20] sm:$0xf] }
  0x2a   : > { %1131 = vmatmul.msk.bf16.vlgmr.msrb.gmra.mxu2 %vm248_vm0, %v352_v2  ;;  %1163 = vmatmul.msk.bf16.vlgmr.msrb.gmra.mxu0 %vm248_vm0, %v555_v3  ;;  %v1259_v3 = vld [vmem:[%s1353_s29 + $0x18] sm:$0xff]  ;;  %v732_v14 = vunpack.c.l.b16 %v714_v12 }
  0x2b   : > { %v471_v19 = vsel %vm445_vm2, %v461_v59, %v470_v15  ;;  %v823_v59 = vrot.slane %v821_v52, 4  ;;  %v827_v6 = vshrl.u32 %v1259_v3, 16  ;;  %v830_v7 = vshll.u32 %v1259_v3, 16 }
  0x2c   : > { %v736_v17 = vpack.c.b16 %v732_v14, %v732_v14 }
  0x2d   : > { %v824_v63 = vor.u32 %v823_v59, %v820_v58  ;;  %v829_v8 = vrot.slane %v827_v6, 3  ;;  %v832_v11 = vrot.slane %v830_v7, 4 }
  0x2e   : > { %v836_v20 = vshrl.u32 %v736_v17, 16  ;;  %v743_v32 = vrot.slane %v736_v17, 3 }
  0x2f   : > { %v825_v2 = vsel %vm808_vm6, %v816_v62, %v824_v63  ;;  %v833_v13 = vor.u32 %v832_v11, %v829_v8 }
  0x30   : > { %v838_v26 = vrot.slane %v836_v20, 3 }
  0x31   : > { %v834_v16 = vsel %vm808_vm6, %v824_v63, %v833_v13 }
  0x36   : > { %1152 = vmatmul.msk.bf16.gmra.mxu3 %vm248_vm0, %v471_v19 }
  0x37   : > { %1120 = vmatmul.msk.bf16.gmra.mxu1 %vm248_vm0, %v1363_v9  ;;  %v480_v9 = vsel %vm445_vm2, %v470_v15, %v479_v35  ;;  %v741_v15 = vrot.slane %v1259_v3, 3 }
  0x39   : > { %v742_v19 = vsel %vm737_vm7, %v739_v1, %v741_v15 }
  0x3a   : > { %1132 = vmatmul.msk.bf16.gmra.mxu2 %vm248_vm0, %v354_v22  ;;  %1164 = vmatmul.msk.bf16.gmra.mxu0 %vm248_vm0, %v557_v23  ;;  %v839_v22 = vshll.u32 %v736_v17, 16  ;;  %v641_v23 = vshrl.u32 %v1458_v34, 16  ;;  %v909_v34 = vld [vmem:[%s1353_s29 + $0x24] sm:$0x1] }
  0x3c   : > { %v841_v27 = vrot.slane %v839_v22, 4  ;;  %v643_v28 = vrot.slane %v641_v23, 2 }
  0x3e   : > { %v842_v30 = vor.u32 %v841_v27, %v838_v26 }
  0x40   : > { %v843_v33 = vsel %vm808_vm6, %v833_v13, %v842_v30 }
  0x46   : > { %1153 = vmatmul.msk.bf16.gmra.mxu3 %vm248_vm0, %v480_v9  ;;  %v927_v9 = vunpack.c.l.b16 %v909_v34 }
  0x47   : > { %1121 = vmatmul.msk.bf16.gmra.mxu1 %vm248_vm0, %v1366_v10  ;;  %v639_v10 = vsel %vm623_vm5, %v634_v41, %v1476_v48 }
  0x48   : > { %v931_v40 = vpack.c.b16 %v927_v9, %v927_v9 }
  0x4a   : > { %1133 = vmatmul.msk.bf16.gmra.mxu2 %vm248_vm0, %v356_v42  ;;  %1165 = vmatmul.msk.bf16.gmra.mxu0 %vm248_vm0, %v559_v43 }
  0x56   : > { %1154 = vmatmul.msk.bf16.gmra.mxu3 %vm248_vm0, %v475_v31  ;;  %v647_v31 = vor.u32 %v646_v29, %v643_v28 }
  0x57   : > { %1122 = vmatmul.msk.bf16.gmra.mxu1 %vm248_vm0, %v1383_v21  ;;  %v631_v21 = vor.u32 %v630_v61, %v627_v60 }
  0x58   : > { %v648_v35 = vsel %vm623_vm5, %v1476_v48, %v647_v31 }
  0x59   : > { %v635_v57 = vsel %vm623_vm5, %v631_v21, %v634_v41 }
  0x5a   : > { %1134 = vmatmul.msk.bf16.gmra.mxu2 %vm248_vm0, %v355_v36  ;;  %1166 = vmatmul.msk.bf16.gmra.mxu0 %vm248_vm0, %v558_v37  ;;  %v1266_v36 = vld [vmem:[%s1353_s29 + $0x1c] sm:$0xff]  ;;  %v744_v37 = vsel %vm737_vm7, %v741_v15, %v743_v32 }
  0x66   : > { %1211 = vmatmul.msk.bf16.vlgmr.msra.gmra.mxu3 %vm248_vm0, %v825_v2 }
  0x67   : > { %1175 = vmatmul.msk.bf16.vlgmr.msra.gmra.mxu1 %vm248_vm0, %v635_v57 }
  0x6a   : > { %1199 = vmatmul.msk.bf16.vlgmr.msra.gmra.mxu2 %vm248_vm0, %v740_v5  ;;  %1235 = vmatmul.msk.bf16.vlgmr.msra.gmra.mxu0 %vm248_vm0, %v1264_v4 }
  0x76   : > { %1212 = vmatmul.msk.bf16.gmra.mxu3 %vm248_vm0, %v834_v16 }
  0x77   : > { %1176 = vmatmul.msk.bf16.gmra.mxu1 %vm248_vm0, %v639_v10 }
  0x7a   : > { %1200 = vmatmul.msk.bf16.gmra.mxu2 %vm248_vm0, %v742_v19  ;;  %1236 = vmatmul.msk.bf16.gmra.mxu0 %vm248_vm0, %v1265_v18 }
  0x86   : > { %1213 = vmatmul.msk.bf16.gmra.mxu3 %vm248_vm0, %v843_v33 }
  0x87   : > { %1177 = vmatmul.msk.bf16.gmra.mxu1 %vm248_vm0, %v648_v35 }
  0x8a   : > { %1201 = vmatmul.msk.bf16.gmra.mxu2 %vm248_vm0, %v744_v37  ;;  %1237 = vmatmul.msk.bf16.gmra.mxu0 %vm248_vm0, %v1266_v36 }
  0x94   : > { %v275_v39 = vpop.f32.mrf.mxu1 }
  0x96   : > { %1214 = vmatmul.msk.bf16.gmra.mxu3 %vm248_vm0, %v838_v26 }
  0x97   : > { %v270_v41 = vpop.f32.mrf.mxu0  ;;  %1178 = vmatmul.msk.bf16.gmra.mxu1 %vm248_vm0, %v643_v28 }
  0x99   : > { %v285_v42 = vpop.f32.mrf.mxu3 }
  0x9a   : > { %1202 = vmatmul.msk.bf16.gmra.mxu2 %vm248_vm0, %v743_v32  ;;  %1238 = vmatmul.msk.bf16.gmra.mxu0 %vm248_vm0, %v931_v40 }
  0x9c   : > { %v277_v45 = vpop.f32.mrf.mxu1 }
  0x9d   : > { %v280_v43 = vpop.f32.mrf.mxu2 }
  0x9f   : > { %v272_v46 = vpop.f32.mrf.mxu0 }
  0xa1   : > { %v287_v38 = vpop.f32.mrf.mxu3 }
  0xa4   : > { %v318_v24 = vpop.f32.mrf.mxu1 }
  0xa5   : > { %v282_v47 = vpop.f32.mrf.mxu2  ;;  %v319_v49 = vadd.f32 %v318_v24, %v270_v41 }
  0xa7   : > { %v593_v44 = vpop.f32.mrf.mxu0 }
  0xa9   : > { %v514_v48 = vpop.f32.mrf.mxu3 }
  0xac   : > { %v320_v52 = vpop.f32.mrf.mxu1 }
  0xad   : > { %v390_v50 = vpop.f32.mrf.mxu2  ;;  %v321_v56 = vadd.f32 %v320_v52, %v272_v46 }
  0xae   : > { %v409_v51 = vadd.f32 %v390_v50, %v319_v49 }
  0xaf   : > { %v595_v10 = vpop.f32.mrf.mxu0 }
  0xb0   : > { %v533_v53 = vadd.f32 %v514_v48, %v409_v51 }
  0xb1   : > { %v516_v54 = vpop.f32.mrf.mxu3 }
  0xb2   : > { %v612_v55 = vadd.f32 %v593_v44, %v533_v53 }
  0xb4   : > { %v323_v60 = vpop.f32.mrf.mxu1 }
  0xb5   : > { %v392_v58 = vpop.f32.mrf.mxu2  ;;  %v324_v0 = vadd.f32 %v323_v60, %v275_v39 }
  0xb6   : > { %v410_v59 = vadd.f32 %v392_v58, %v321_v56 }
  0xb7   : > { %v598_v61 = vpop.f32.mrf.mxu0 }
  0xb8   : > { %v534_v62 = vadd.f32 %v516_v54, %v410_v59 }
  0xb9   : > { %v519_v63 = vpop.f32.mrf.mxu3 }
  0xba   : > { %v613_v21 = vadd.f32 %v595_v10, %v534_v62 }
  0xbc   : > { %v325_v3 = vpop.f32.mrf.mxu1 }
  0xbd   : > { %v395_v1 = vpop.f32.mrf.mxu2  ;;  %v326_v7 = vadd.f32 %v325_v3, %v277_v45 }
  0xbe   : > { %v411_v2 = vadd.f32 %v395_v1, %v324_v0 }
  0xbf   : > { %v600_v57 = vpop.f32.mrf.mxu0 }
  0xc0   : > { %v535_v4 = vadd.f32 %v519_v63, %v411_v2 }
  0xc1   : > { %v521_v5 = vpop.f32.mrf.mxu3 }
  0xc2   : > { %v614_v6 = vadd.f32 %v598_v61, %v535_v4 }
  0xc4   : > { %v328_v12 = vpop.f32.mrf.mxu1 }
  0xc5   : > { %v397_v8 = vpop.f32.mrf.mxu2  ;;  %v329_v17 = vadd.f32 %v328_v12, %v280_v43 }
  0xc6   : > { %v412_v11 = vadd.f32 %v397_v8, %v326_v7 }
  0xc7   : > { %v603_v13 = vpop.f32.mrf.mxu0 }
  0xc8   : > { %v536_v14 = vadd.f32 %v521_v5, %v412_v11 }
  0xc9   : > { %v524_v15 = vpop.f32.mrf.mxu3 }
  0xca   : > { %v1520_v16 = vadd.f32 %v600_v57, %v536_v14 }
  0xcc   : > { %v330_v20 = vpop.f32.mrf.mxu1 }
  0xcd   : > { %v400_v18 = vpop.f32.mrf.mxu2  ;;  %v331_v27 = vadd.f32 %v330_v20, %v282_v47 }
  0xce   : > { %v413_v19 = vadd.f32 %v400_v18, %v329_v17 }
  0xcf   : > { %v605_v22 = vpop.f32.mrf.mxu0 }
  0xd0   : > { %v537_v23 = vadd.f32 %v524_v15, %v413_v19 }
  0xd1   : > { %v526_v25 = vpop.f32.mrf.mxu3 }
  0xd2   : > { %v1522_v26 = vadd.f32 %v603_v13, %v537_v23 }
  0xd4   : > { %v333_v30 = vpop.f32.mrf.mxu1 }
  0xd5   : > { %v402_v28 = vpop.f32.mrf.mxu2  ;;  %v334_v36 = vadd.f32 %v333_v30, %v285_v42  ;;  %v1531_v42 = vld [vmem:[%s1569_s2] ss:$0 sm:$0xff] }
  0xd6   : > { %v414_v29 = vadd.f32 %v402_v28, %v331_v27 }
  0xd7   : > { %v608_v31 = vpop.f32.mrf.mxu0 }
  0xd8   : > { %v538_v32 = vadd.f32 %v526_v25, %v414_v29 }
  0xd9   : > { %v529_v33 = vpop.f32.mrf.mxu3 }
  0xda   : > { %v1524_v35 = vadd.f32 %v605_v22, %v538_v32 }
  0xdc   : > { %v335_v9 = vpop.f32.mrf.mxu1 }
  0xdd   : > { %v405_v37 = vpop.f32.mrf.mxu2 }
  0xde   : > { %v415_v34 = vadd.f32 %v405_v37, %v334_v36 }
  0xdf   : > { %v610_v39 = vpop.f32.mrf.mxu0 }
  0xe0   : > { %v539_v40 = vadd.f32 %v529_v33, %v415_v34 }
  0xe1   : > { %v531_v41 = vpop.f32.mrf.mxu3 }
  0xe2   : > { %v1526_v43 = vadd.f32 %v608_v31, %v539_v40 }
  0xe4   : > { %v682_v46 = vpop.f32.mrf.mxu1 }
  0xe5   : > { %v407_v45 = vpop.f32.mrf.mxu2  ;;  %v701_v24 = vadd.f32 %v682_v46, %v612_v55 }
  0xe7   : > { %v965_v38 = vpop.f32.mrf.mxu0 }
  0xe9   : > { %v877_v47 = vpop.f32.mrf.mxu3 }
  0xec   : > { %v684_v49 = vpop.f32.mrf.mxu1 }
  0xed   : > { %v778_v44 = vpop.f32.mrf.mxu2  ;;  %v702_v54 = vadd.f32 %v684_v49, %v613_v21 }
  0xee   : > { %v797_v48 = vadd.f32 %v778_v44, %v701_v24 }
  0xef   : > { %v967_v50 = vpop.f32.mrf.mxu0 }
  0xf0   : > { %v896_v51 = vadd.f32 %v877_v47, %v797_v48 }
  0xf1   : > { %v879_v10 = vpop.f32.mrf.mxu3 }
  0xf2   : > { %v984_v52 = vadd.f32 %v965_v38, %v896_v51 }
  0xf4   : > { %v995_v53 = vadd.f32 %v1531_v42, %v984_v52  ;;  %v687_v55 = vpop.f32.mrf.mxu1 }
  0xf5   : > { %v780_v56 = vpop.f32.mrf.mxu2  ;;  %v703_v1 = vadd.f32 %v687_v55, %v614_v6 }
  0xf6   : > { %v1002_v58 = vmax.f32 %v995_v53, 0.0  ;;  %v798_v59 = vadd.f32 %v780_v56, %v702_v54 }
  0xf7   : > { %v970_v60 = vpop.f32.mrf.mxu0 }
  0xf8   : > { %v1009_v61 = vpack.c.bf16 %v1002_v58, %v1002_v58  ;;  %v897_v62 = vadd.f32 %v879_v10, %v798_v59 }
  0xf9   : > { %v882_v0 = vpop.f32.mrf.mxu3 }
  0xfa   : > { %1017 = vst.msk [vmem:[%s1538_s7] sm:$0xf] %vm1016_vm8, %v1009_v61  ;;  %v985_v63 = vadd.f32 %v967_v50, %v897_v62 }
  0xfc   : > { %v996_v21 = vadd.f32 %v1531_v42, %v985_v63  ;;  %v689_v4 = vpop.f32.mrf.mxu1 }
  0xfd   : > { %v783_v2 = vpop.f32.mrf.mxu2  ;;  %v704_v14 = vadd.f32 %v689_v4, %v1520_v16 }
  0xfe   : > { %v1003_v3 = vmax.f32 %v996_v21, 0.0  ;;  %v799_v57 = vadd.f32 %v783_v2, %v703_v1 }
  0xff   : > { %v972_v5 = vpop.f32.mrf.mxu0 }
 0x100   : > { %v1010_v7 = vpack.c.bf16 %v1003_v3, %v1003_v3  ;;  %v898_v8 = vadd.f32 %v882_v0, %v799_v57 }
 0x101   : > { %v884_v12 = vpop.f32.mrf.mxu3 }
 0x102   : > { %1018 = vst.msk [vmem:[%s1538_s7 + $0x4] sm:$0xf] %vm1016_vm8, %v1010_v7  ;;  %v986_v11 = vadd.f32 %v970_v60, %v898_v8 }
 0x104   : > { %v997_v13 = vadd.f32 %v1531_v42, %v986_v11  ;;  %v692_v6 = vpop.f32.mrf.mxu1 }
 0x105   : > { %v785_v15 = vpop.f32.mrf.mxu2  ;;  %v705_v28 = vadd.f32 %v692_v6, %v1522_v26 }
 0x106   : > { %v1004_v17 = vmax.f32 %v997_v13, 0.0  ;;  %v800_v18 = vadd.f32 %v785_v15, %v704_v14 }
 0x107   : > { %v975_v19 = vpop.f32.mrf.mxu0 }
 0x108   : > { %v1011_v20 = vpack.c.bf16 %v1004_v17, %v1004_v17  ;;  %v899_v22 = vadd.f32 %v884_v12, %v800_v18 }
 0x109   : > { %v887_v25 = vpop.f32.mrf.mxu3 }
 0x10a   : > { %1019 = vst.msk [vmem:[%s1538_s7 + $0x8] sm:$0xf] %vm1016_vm8, %v1011_v20  ;;  %v987_v23 = vadd.f32 %v972_v5, %v899_v22 }
 0x10c   : > { %v998_v27 = vadd.f32 %v1531_v42, %v987_v23  ;;  %v694_v16 = vpop.f32.mrf.mxu1 }
 0x10d   : > { %v788_v29 = vpop.f32.mrf.mxu2  ;;  %v706_v39 = vadd.f32 %v694_v16, %v1524_v35 }
 0x10e   : > { %v1005_v30 = vmax.f32 %v998_v27, 0.0  ;;  %v801_v31 = vadd.f32 %v788_v29, %v705_v28 }
 0x10f   : > { %v977_v32 = vpop.f32.mrf.mxu0 }
 0x110   : > { %v1012_v33 = vpack.c.bf16 %v1005_v30, %v1005_v30  ;;  %v900_v36 = vadd.f32 %v887_v25, %v801_v31 }
 0x111   : > { %v889_v34 = vpop.f32.mrf.mxu3 }
 0x112   : > { %1020 = vst.msk [vmem:[%s1538_s7 + $0xc] sm:$0xf] %vm1016_vm8, %v1012_v33  ;;  %v988_v37 = vadd.f32 %v975_v19, %v900_v36 }
 0x114   : > { %v999_v9 = vadd.f32 %v1531_v42, %v988_v37  ;;  %v697_v26 = vpop.f32.mrf.mxu1 }
 0x115   : > { %v790_v40 = vpop.f32.mrf.mxu2  ;;  %v707_v49 = vadd.f32 %v697_v26, %v1526_v43  ;;  %v1026_v43 = vld [vmem:[%s1538_s7 + $0x18] sm:$0x1] }
 0x116   : > { %v1006_v41 = vmax.f32 %v999_v9, 0.0  ;;  %v802_v45 = vadd.f32 %v790_v40, %v706_v39 }
 0x117   : > { %v980_v46 = vpop.f32.mrf.mxu0 }
 0x118   : > { %v1013_v38 = vpack.c.bf16 %v1006_v41, %v1006_v41  ;;  %v901_v47 = vadd.f32 %v889_v34, %v802_v45 }
 0x119   : > { %v892_v44 = vpop.f32.mrf.mxu3 }
 0x11a   : > { %1021 = vst.msk [vmem:[%s1538_s7 + $0x10] sm:$0xf] %vm1016_vm8, %v1013_v38  ;;  %v989_v24 = vadd.f32 %v977_v32, %v901_v47 }
 0x11c   : > { %v1000_v48 = vadd.f32 %v1531_v42, %v989_v24  ;;  %v699_v52 = vpop.f32.mrf.mxu1 }
 0x11d   : > { %v793_v50 = vpop.f32.mrf.mxu2 }
 0x11e   : > { %v1007_v51 = vmax.f32 %v1000_v48, 0.0  ;;  %v803_v35 = vadd.f32 %v793_v50, %v707_v49 }
 0x11f   : > { %v982_v10 = vpop.f32.mrf.mxu0 }
 0x120   : > { %v1014_v53 = vpack.c.bf16 %v1007_v51, %v1007_v51  ;;  %v902_v54 = vadd.f32 %v892_v44, %v803_v35 }
 0x121   : > { %v894_v58 = vpop.f32.mrf.mxu3 }
 0x122   : > { %1022 = vst.msk [vmem:[%s1538_s7 + $0x14] sm:$0xf] %vm1016_vm8, %v1014_v53  ;;  %v990_v56 = vadd.f32 %v980_v46, %v902_v54 }
 0x124   : > { %v1001_v59 = vadd.f32 %v1531_v42, %v990_v56 }
 0x125   : > { %v795_v55 = vpop.f32.mrf.mxu2 }
 0x126   : > { %v1008_v60 = vmax.f32 %v1001_v59, 0.0 }
 0x128   : > { %v1015_v61 = vpack.c.bf16 %v1008_v60, %v1008_v60 }
 0x12a   : > { %v1027_v62 = vsel %vm1025_vm11, %v1015_v61, %v1026_v43 }
 0x12b   : > { %1028 = vst [vmem:[%s1538_s7 + $0x18] sm:$0x1] %v1027_v62 }
 0x12c PF: > { %s13_s12 = sadd.s32 1, %s1299_s12  }
 0x12d   : > { %p10_p4 = scmp.ge.s32.totalorder %s13_s12, 4  }
 0x12f   :  { %12 = sbr.rel (!%p10_p4) target bundleno = 1 (0x1), region = 62 }

// kernel: progressive_encoder_forward.9
= control target key start
LH: loop header
LB: loop body
LE: loop exit
PB: predicated region body
PF: predicated region fallthrough
CT: control target
= control target key end

     0   :  { %s4469_s1 = inlined_call_operand.vmem [shape: bf16[896,512], index: 1, kind: input, shape index: {}]   ;;  %s4470_s0 = inlined_call_operand.vmem [shape: bf16[8,896], index: 0, kind: input, shape index: {}]   ;;  %s4471_s2 = inlined_call_operand.vmem [shape: f32[1,512], index: 2, kind: input, shape index: {}]   ;;  %s4472_s3 = inlined_call_operand.vmem [shape: f32[1,512], index: 3, kind: input, shape index: {}]   ;;  %s4473_s4 = inlined_call_operand.vmem [shape: f32[1,512], index: 4, kind: input, shape index: {}]   ;;  %s4474_s5 = inlined_call_operand.vmem [shape: f32[8,512], index: 5, kind: output, shape index: {}]  }
   0x1   :  { %v1994_v0 = vld [vmem:[%s4469_s1 + $0xe0] sm:$0xf]  ;;  %v2806_v1 = vld [vmem:[%s4469_s1 + $0xec] sm:$0xf0] }
   0x2   :  { %v2122_v2 = vld [vmem:[%s4469_s1 + $0x1e0] sm:$0xf]  ;;  %v1995_v3 = vor.u32 %v2806_v1, %v1994_v0  ;;  %v2838_v4 = vld [vmem:[%s4469_s1 + $0x1ec] sm:$0xf0] }
   0x3   :  { %v2250_v5 = vld [vmem:[%s4469_s1 + $0x2e0] sm:$0xf]  ;;  %v2870_v6 = vld [vmem:[%s4469_s1 + $0x2ec] sm:$0xf0]  ;;  %v2123_v7 = vor.u32 %v2838_v4, %v2122_v2 }
   0x4   :  { %v2251_v8 = vor.u32 %v2870_v6, %v2250_v5  ;;  %v2378_v9 = vld [vmem:[%s4469_s1 + $0x3e0] sm:$0xf]  ;;  %v2902_v10 = vld [vmem:[%s4469_s1 + $0x3ec] sm:$0xf0]  ;;  %1405 = vmatpush.bf16.msra.mxu0 %v1995_v3 }
   0x5   :  { %v1978_v11 = vld [vmem:[%s4469_s1 + $0xc0] sm:$0xf]  ;;  %v2379_v12 = vor.u32 %v2902_v10, %v2378_v9  ;;  %v2802_v13 = vld [vmem:[%s4469_s1 + $0xcc] sm:$0xf0]  ;;  %1418 = vmatpush.bf16.msra.mxu1 %v2123_v7 }
   0x6   :  { %v2106_v14 = vld [vmem:[%s4469_s1 + $0x1c0] sm:$0xf]  ;;  %v2834_v15 = vld [vmem:[%s4469_s1 + $0x1cc] sm:$0xf0]  ;;  %1431 = vmatpush.bf16.msra.mxu2 %v2251_v8  ;;  %v1979_v16 = vor.u32 %v2802_v13, %v1978_v11 }
   0x7   :  { %v2107_v17 = vor.u32 %v2834_v15, %v2106_v14  ;;  %v2234_v18 = vld [vmem:[%s4469_s1 + $0x2c0] sm:$0xf]  ;;  %v2866_v19 = vld [vmem:[%s4469_s1 + $0x2cc] sm:$0xf0]  ;;  %1444 = vmatpush.bf16.msra.mxu3 %v2379_v12 }
   0x8   :  { %v2362_v20 = vld [vmem:[%s4469_s1 + $0x3c0] sm:$0xf]  ;;  %v2235_v21 = vor.u32 %v2866_v19, %v2234_v18  ;;  %v2898_v22 = vld [vmem:[%s4469_s1 + $0x3cc] sm:$0xf0]  ;;  %1406 = vmatpush.bf16.msra.mxu0 %v1979_v16 }
   0x9   :  { %v1962_v23 = vld [vmem:[%s4469_s1 + $0xa0] sm:$0xf]  ;;  %v2798_v24 = vld [vmem:[%s4469_s1 + $0xac] sm:$0xf0]  ;;  %v2363_v25 = vor.u32 %v2898_v22, %v2362_v20  ;;  %1419 = vmatpush.bf16.msra.mxu1 %v2107_v17 }
   0xa   :  { %v2090_v26 = vld [vmem:[%s4469_s1 + $0x1a0] sm:$0xf]  ;;  %v2830_v27 = vld [vmem:[%s4469_s1 + $0x1ac] sm:$0xf0]  ;;  %v1963_v29 = vor.u32 %v2798_v24, %v1962_v23  ;;  %1432 = vmatpush.bf16.msra.mxu2 %v2235_v21 }
   0xb   :  { %v2218_v28 = vld [vmem:[%s4469_s1 + $0x2a0] sm:$0xf]  ;;  %v2862_v30 = vld [vmem:[%s4469_s1 + $0x2ac] sm:$0xf0]  ;;  %v2091_v33 = vor.u32 %v2830_v27, %v2090_v26  ;;  %1445 = vmatpush.bf16.msra.mxu3 %v2363_v25 }
   0xc   :  { %v2346_v31 = vld [vmem:[%s4469_s1 + $0x3a0] sm:$0xf]  ;;  %v2894_v32 = vld [vmem:[%s4469_s1 + $0x3ac] sm:$0xf0]  ;;  %v2219_v34 = vor.u32 %v2862_v30, %v2218_v28  ;;  %1407 = vmatpush.bf16.msra.mxu0 %v1963_v29 }
   0xd   :  { %v1946_v35 = vld [vmem:[%s4469_s1 + $0x80] sm:$0xf]  ;;  %v2794_v36 = vld [vmem:[%s4469_s1 + $0x8c] sm:$0xf0]  ;;  %v2347_v38 = vor.u32 %v2894_v32, %v2346_v31  ;;  %1420 = vmatpush.bf16.msra.mxu1 %v2091_v33 }
   0xe   :  { %v2074_v37 = vld [vmem:[%s4469_s1 + $0x180] sm:$0xf]  ;;  %v2826_v39 = vld [vmem:[%s4469_s1 + $0x18c] sm:$0xf0]  ;;  %v1947_v44 = vor.u32 %v2794_v36, %v1946_v35  ;;  %1433 = vmatpush.bf16.msra.mxu2 %v2219_v34 }
   0xf   :  { %v2202_v40 = vld [vmem:[%s4469_s1 + $0x280] sm:$0xf]  ;;  %v2858_v41 = vld [vmem:[%s4469_s1 + $0x28c] sm:$0xf0]  ;;  %v2075_v45 = vor.u32 %v2826_v39, %v2074_v37  ;;  %1446 = vmatpush.bf16.msra.mxu3 %v2347_v38  ;;  %v2804_v37 = vld [vmem:[%s4469_s1 + $0xe4] sm:$0xf] }
  0x10   :  { %v2330_v42 = vld [vmem:[%s4469_s1 + $0x380] sm:$0xf]  ;;  %v2890_v43 = vld [vmem:[%s4469_s1 + $0x38c] sm:$0xf0]  ;;  %v2203_v46 = vor.u32 %v2858_v41, %v2202_v40  ;;  %1408 = vmatpush.bf16.msra.mxu0 %v1947_v44  ;;  %v1996_v38 = vld [vmem:[%s4469_s1 + $0xf0] sm:$0xf0] }
  0x11   :  { %v1930_v47 = vld [vmem:[%s4469_s1 + $0x60] sm:$0xf]  ;;  %v2790_v48 = vld [vmem:[%s4469_s1 + $0x6c] sm:$0xf0]  ;;  %v2331_v50 = vor.u32 %v2890_v43, %v2330_v42  ;;  %1421 = vmatpush.bf16.msra.mxu1 %v2075_v45 }
  0x12   :  { %v2058_v49 = vld [vmem:[%s4469_s1 + $0x160] sm:$0xf]  ;;  %v2822_v51 = vld [vmem:[%s4469_s1 + $0x16c] sm:$0xf0]  ;;  %v1931_v56 = vor.u32 %v2790_v48, %v1930_v47  ;;  %1434 = vmatpush.bf16.msra.mxu2 %v2203_v46  ;;  %v1999_v46 = vor.u32 %v2804_v37, %v1996_v38 }
  0x13   :  { %v2186_v52 = vld [vmem:[%s4469_s1 + $0x260] sm:$0xf]  ;;  %v2854_v53 = vld [vmem:[%s4469_s1 + $0x26c] sm:$0xf0]  ;;  %v2059_v57 = vor.u32 %v2822_v51, %v2058_v49  ;;  %1447 = vmatpush.bf16.msra.mxu3 %v2331_v50  ;;  %v2800_v50 = vld [vmem:[%s4469_s1 + $0xc4] sm:$0xf] }
  0x14   :  { %v2314_v54 = vld [vmem:[%s4469_s1 + $0x360] sm:$0xf]  ;;  %v2886_v55 = vld [vmem:[%s4469_s1 + $0x36c] sm:$0xf0]  ;;  %v2187_v58 = vor.u32 %v2854_v53, %v2186_v52  ;;  %1409 = vmatpush.bf16.msra.mxu0 %v1931_v56  ;;  %v1980_v51 = vld [vmem:[%s4469_s1 + $0xd0] sm:$0xf0] }
  0x15   :  { %v1914_v59 = vld [vmem:[%s4469_s1 + $0x40] sm:$0xf]  ;;  %v2786_v60 = vld [vmem:[%s4469_s1 + $0x4c] sm:$0xf0]  ;;  %v2315_v62 = vor.u32 %v2886_v55, %v2314_v54  ;;  %1422 = vmatpush.bf16.msra.mxu1 %v2059_v57 }
  0x16   :  { %v2042_v61 = vld [vmem:[%s4469_s1 + $0x140] sm:$0xf]  ;;  %v2818_v63 = vld [vmem:[%s4469_s1 + $0x14c] sm:$0xf0]  ;;  %v1915_v4 = vor.u32 %v2786_v60, %v1914_v59  ;;  %1435 = vmatpush.bf16.msra.mxu2 %v2187_v58  ;;  %v33_v58 = vld [vmem:[%s4470_s0 + $0x8] sm:$0xff]  ;;  %v1983_v59 = vor.u32 %v2800_v50, %v1980_v51 }
  0x17   :  { %v2170_v0 = vld [vmem:[%s4469_s1 + $0x240] sm:$0xf]  ;;  %v2850_v1 = vld [vmem:[%s4469_s1 + $0x24c] sm:$0xf0]  ;;  %v2043_v5 = vor.u32 %v2818_v63, %v2042_v61  ;;  %1448 = vmatpush.bf16.msra.mxu3 %v2315_v62  ;;  %v266_v63 = vunpack.c.l.b16 %v33_v58 }
  0x18   :  { %v2298_v2 = vld [vmem:[%s4469_s1 + $0x340] sm:$0xf]  ;;  %v2882_v3 = vld [vmem:[%s4469_s1 + $0x34c] sm:$0xf0]  ;;  %v2171_v6 = vor.u32 %v2850_v1, %v2170_v0  ;;  %1410 = vmatpush.bf16.msra.mxu0 %v1915_v4  ;;  %v267_v0 = vunpack.c.h.b16 %v33_v58  ;;  %v2796_v1 = vld [vmem:[%s4469_s1 + $0xa4] sm:$0xf] }
  0x19   :  { %v1898_v7 = vld [vmem:[%s4469_s1 + $0x20] sm:$0xf]  ;;  %v2782_v8 = vld [vmem:[%s4469_s1 + $0x2c] sm:$0xf0]  ;;  %v2299_v10 = vor.u32 %v2882_v3, %v2298_v2  ;;  %1423 = vmatpush.bf16.msra.mxu1 %v2043_v5  ;;  %v1964_v2 = vld [vmem:[%s4469_s1 + $0xb0] sm:$0xf0]  ;;  %v3311_v4 = vpack.c.b16 %v266_v63, %v266_v63 }
  0x1a   :  { %v2026_v9 = vld [vmem:[%s4469_s1 + $0x120] sm:$0xf]  ;;  %v2814_v11 = vld [vmem:[%s4469_s1 + $0x12c] sm:$0xf0]  ;;  %v1899_v16 = vor.u32 %v2782_v8, %v1898_v7  ;;  %1436 = vmatpush.bf16.msra.mxu2 %v2171_v6  ;;  %v3316_v6 = vpack.c.b16 %v267_v0, %v267_v0 }
  0x1b   :  { %v2154_v12 = vld [vmem:[%s4469_s1 + $0x220] sm:$0xf]  ;;  %v2846_v13 = vld [vmem:[%s4469_s1 + $0x22c] sm:$0xf0]  ;;  %v2027_v19 = vor.u32 %v2814_v11, %v2026_v9  ;;  %1449 = vmatpush.bf16.msra.mxu3 %v2299_v10 }
  0x1c   :  { %v2282_v14 = vld [vmem:[%s4469_s1 + $0x320] sm:$0xf]  ;;  %v2878_v15 = vld [vmem:[%s4469_s1 + $0x32c] sm:$0xf0]  ;;  %v2155_v20 = vor.u32 %v2846_v13, %v2154_v12  ;;  %1411 = vmatpush.bf16.msra.mxu0 %v1899_v16 }
  0x1d   :  { %v1882_v17 = vld [vmem:[%s4469_s1] sm:$0xf]  ;;  %v2778_v18 = vld [vmem:[%s4469_s1 + $0xc] sm:$0xf0]  ;;  %v2283_v24 = vor.u32 %v2878_v15, %v2282_v14  ;;  %1424 = vmatpush.bf16.msra.mxu1 %v2027_v19  ;;  %v1967_v14 = vor.u32 %v2796_v1, %v1964_v2  ;;  %v1948_v19 = vld [vmem:[%s4469_s1 + $0x90] sm:$0xf0] }
  0x1e   :  { %v2010_v21 = vld [vmem:[%s4469_s1 + $0x100] sm:$0xf]  ;;  %v2810_v22 = vld [vmem:[%s4469_s1 + $0x10c] sm:$0xf0]  ;;  %v1883_v31 = vor.u32 %v2778_v18, %v1882_v17  ;;  %1437 = vmatpush.bf16.msra.mxu2 %v2155_v20  ;;  %v2792_v18 = vld [vmem:[%s4469_s1 + $0x84] sm:$0xf] }
  0x1f   :  { %v2138_v23 = vld [vmem:[%s4469_s1 + $0x200] sm:$0xf]  ;;  %v2842_v25 = vld [vmem:[%s4469_s1 + $0x20c] sm:$0xf0]  ;;  %v2011_v35 = vor.u32 %v2810_v22, %v2010_v21  ;;  %1450 = vmatpush.bf16.msra.mxu3 %v2283_v24 }
  0x20   :  { %v2266_v26 = vld [vmem:[%s4469_s1 + $0x300] sm:$0xf]  ;;  %v2874_v27 = vld [vmem:[%s4469_s1 + $0x30c] sm:$0xf0]  ;;  %v2139_v36 = vor.u32 %v2842_v25, %v2138_v23  ;;  %1412 = vmatpush.bf16.msra.mxu0 %v1883_v31 }
  0x21   :  { %v2506_v28 = vld [vmem:[%s4469_s1 + $0x4e0] sm:$0xf]  ;;  %v2934_v29 = vld [vmem:[%s4469_s1 + $0x4ec] sm:$0xf0]  ;;  %v2267_v39 = vor.u32 %v2874_v27, %v2266_v26  ;;  %1425 = vmatpush.bf16.msra.mxu1 %v2011_v35 }
  0x22   :  { %v2634_v30 = vld [vmem:[%s4469_s1 + $0x5e0] sm:$0xf]  ;;  %v2966_v32 = vld [vmem:[%s4469_s1 + $0x5ec] sm:$0xf0]  ;;  %v2507_v40 = vor.u32 %v2934_v29, %v2506_v28  ;;  %1438 = vmatpush.bf16.msra.mxu2 %v2139_v36  ;;  %v1951_v28 = vor.u32 %v2792_v18, %v1948_v19 }
  0x23   :  { %v2762_v33 = vld [vmem:[%s4469_s1 + $0x6e0] sm:$0xf]  ;;  %v2998_v34 = vld [vmem:[%s4469_s1 + $0x6ec] sm:$0xf0]  ;;  %v2635_v41 = vor.u32 %v2966_v32, %v2634_v30  ;;  %1451 = vmatpush.bf16.msra.mxu3 %v2267_v39  ;;  %v2788_v32 = vld [vmem:[%s4469_s1 + $0x64] sm:$0xf] }
  0x24   :  { %v2763_v42 = vor.u32 %v2998_v34, %v2762_v33  ;;  %v2490_v43 = vld [vmem:[%s4469_s1 + $0x4c0] sm:$0xf]  ;;  %v2930_v44 = vld [vmem:[%s4469_s1 + $0x4cc] sm:$0xf0]  ;;  %1457 = vmatpush.bf16.msrb.mxu0 %v2507_v40  ;;  %v1932_v33 = vld [vmem:[%s4469_s1 + $0x70] sm:$0xf0] }
  0x25   :  { %v2618_v45 = vld [vmem:[%s4469_s1 + $0x5c0] sm:$0xf]  ;;  %v2962_v47 = vld [vmem:[%s4469_s1 + $0x5cc] sm:$0xf0]  ;;  %v2491_v52 = vor.u32 %v2930_v44, %v2490_v43  ;;  %1470 = vmatpush.bf16.msrb.mxu1 %v2635_v41  ;;  %1439 = vmatmul.bf16.vlgmr.msra.gmra.mxu2 %v3311_v4  ;;  %v1935_v40 = vor.u32 %v2788_v32, %v1932_v33  ;;  %v2784_v44 = vld [vmem:[%s4469_s1 + $0x44] sm:$0xf] }
  0x26   :  { %v2746_v48 = vld [vmem:[%s4469_s1 + $0x6c0] sm:$0xf]  ;;  %v2994_v49 = vld [vmem:[%s4469_s1 + $0x6cc] sm:$0xf0]  ;;  %1483 = vmatpush.bf16.msrb.mxu2 %v2763_v42  ;;  %v2619_v54 = vor.u32 %v2962_v47, %v2618_v45  ;;  %1452 = vmatmul.bf16.vlgmr.msra.gmra.mxu3 %v3316_v6  ;;  %v1916_v45 = vld [vmem:[%s4469_s1 + $0x50] sm:$0xf0] }
  0x27   :  { %v2474_v53 = vld [vmem:[%s4469_s1 + $0x4a0] sm:$0xf]  ;;  %v2747_v55 = vor.u32 %v2994_v49, %v2746_v48  ;;  %v2926_v56 = vld [vmem:[%s4469_s1 + $0x4ac] sm:$0xf0]  ;;  %1496 = vmatpush.bf16.msrb.mxu3 %v1999_v46  ;;  %v2864_v32 = vld [vmem:[%s4469_s1 + $0x2c4] sm:$0xf] }
  0x28   :  { %v2602_v57 = vld [vmem:[%s4469_s1 + $0x5a0] sm:$0xf]  ;;  %v2958_v60 = vld [vmem:[%s4469_s1 + $0x5ac] sm:$0xf0]  ;;  %1458 = vmatpush.bf16.msrb.mxu0 %v2491_v52  ;;  %v2475_v3 = vor.u32 %v2926_v56, %v2474_v53  ;;  %v1919_v52 = vor.u32 %v2784_v44, %v1916_v45  ;;  %v2780_v56 = vld [vmem:[%s4469_s1 + $0x24] sm:$0xf] }
  0x29   :  { %v2730_v61 = vld [vmem:[%s4469_s1 + $0x6a0] sm:$0xf]  ;;  %v2990_v62 = vld [vmem:[%s4469_s1 + $0x6ac] sm:$0xf0]  ;;  %1471 = vmatpush.bf16.msrb.mxu1 %v2619_v54  ;;  %v2603_v7 = vor.u32 %v2958_v60, %v2602_v57  ;;  %v1900_v57 = vld [vmem:[%s4469_s1 + $0x30] sm:$0xf0] }
  0x2a   :  { %v32_v5 = vld [vmem:[%s4470_s0] sm:$0xff]  ;;  %1484 = vmatpush.bf16.msrb.mxu2 %v2747_v55  ;;  %v2731_v8 = vor.u32 %v2990_v62, %v2730_v61  ;;  %v2922_v10 = vld [vmem:[%s4469_s1 + $0x48c] sm:$0xf0] }
  0x2b   :  { %v2458_v9 = vld [vmem:[%s4469_s1 + $0x480] sm:$0xf]  ;;  %v264_v12 = vunpack.c.l.b16 %v32_v5  ;;  %v265_v13 = vunpack.c.h.b16 %v32_v5  ;;  %1497 = vmatpush.bf16.msrb.mxu3 %v1983_v59  ;;  %v2954_v15 = vld [vmem:[%s4469_s1 + $0x58c] sm:$0xf0]  ;;  %v1903_v5 = vor.u32 %v2780_v56, %v1900_v57  ;;  %v2828_v45 = vld [vmem:[%s4469_s1 + $0x1a4] sm:$0xf] }
  0x2c   :  { %v2586_v11 = vld [vmem:[%s4469_s1 + $0x580] sm:$0xf]  ;;  %v2986_v17 = vld [vmem:[%s4469_s1 + $0x68c] sm:$0xf0]  ;;  %1459 = vmatpush.bf16.msrb.mxu0 %v2475_v3  ;;  %v2459_v22 = vor.u32 %v2922_v10, %v2458_v9  ;;  %v35_v3 = vld [vmem:[%s4470_s0 + $0x18] sm:$0xf] }
  0x2d   :  { %v2714_v16 = vld [vmem:[%s4469_s1 + $0x680] sm:$0xf]  ;;  %v3343_v20 = vpack.c.b16 %v264_v12, %v264_v12  ;;  %v3345_v21 = vpack.c.b16 %v265_v13, %v265_v13  ;;  %1472 = vmatpush.bf16.msrb.mxu1 %v2603_v7  ;;  %v2587_v23 = vor.u32 %v2954_v15, %v2586_v11  ;;  %v2918_v26 = vld [vmem:[%s4469_s1 + $0x46c] sm:$0xf0]  ;;  %v2776_v7 = vld [vmem:[%s4469_s1 + $0x4] sm:$0xf] }
  0x2e   :  { %1485 = vmatpush.bf16.msrb.mxu2 %v2731_v8  ;;  %v2715_v24 = vor.u32 %v2986_v17, %v2714_v16  ;;  %v2442_v25 = vld [vmem:[%s4469_s1 + $0x460] sm:$0xf]  ;;  %v2950_v29 = vld [vmem:[%s4469_s1 + $0x56c] sm:$0xf0]  ;;  %v1884_v8 = vld [vmem:[%s4469_s1 + $0x10] sm:$0xf0]  ;;  %v270_v17 = vunpack.c.l.b16 %v35_v3 }
  0x2f   :  { %v2570_v27 = vld [vmem:[%s4469_s1 + $0x560] sm:$0xf]  ;;  %1498 = vmatpush.bf16.msrb.mxu3 %v1967_v14  ;;  %v2982_v31 = vld [vmem:[%s4469_s1 + $0x66c] sm:$0xf0]  ;;  %1413 = vmatmul.bf16.vlgmr.msra.gmra.mxu0 %v3343_v20  ;;  %v2443_v34 = vor.u32 %v2918_v26, %v2442_v25  ;;  %v2836_v10 = vld [vmem:[%s4469_s1 + $0x1e4] sm:$0xf]  ;;  %v1887_v26 = vor.u32 %v2776_v7, %v1884_v8 }
  0x30   :  { %v2698_v30 = vld [vmem:[%s4469_s1 + $0x660] sm:$0xf]  ;;  %1426 = vmatmul.bf16.vlgmr.msra.gmra.mxu1 %v3345_v21  ;;  %1460 = vmatpush.bf16.msrb.mxu0 %v2459_v22  ;;  %v2571_v35 = vor.u32 %v2950_v29, %v2570_v27  ;;  %v2914_v38 = vld [vmem:[%s4469_s1 + $0x44c] sm:$0xf0]  ;;  %v2124_v11 = vld [vmem:[%s4469_s1 + $0x1f0] sm:$0xf0] }
  0x31   :  { %1473 = vmatpush.bf16.msrb.mxu1 %v2587_v23  ;;  %v2699_v36 = vor.u32 %v2982_v31, %v2698_v30  ;;  %v2426_v37 = vld [vmem:[%s4469_s1 + $0x440] sm:$0xf]  ;;  %v2946_v41 = vld [vmem:[%s4469_s1 + $0x54c] sm:$0xf0]  ;;  %v2868_v12 = vld [vmem:[%s4469_s1 + $0x2e4] sm:$0xf]  ;;  %v2127_v27 = vor.u32 %v2836_v10, %v2124_v11 }
  0x32   :  { %1486 = vmatpush.bf16.msrb.mxu2 %v2715_v24  ;;  %v2554_v39 = vld [vmem:[%s4469_s1 + $0x540] sm:$0xf]  ;;  %v2978_v43 = vld [vmem:[%s4469_s1 + $0x64c] sm:$0xf0]  ;;  %v2427_v46 = vor.u32 %v2914_v38, %v2426_v37  ;;  %v2252_v14 = vld [vmem:[%s4469_s1 + $0x2f0] sm:$0xf0]  ;;  %v3494_v37 = vpack.c.b16 %v270_v17, %v270_v17 }
  0x33   :  { %1499 = vmatpush.bf16.msrb.mxu3 %v1951_v28  ;;  %v2682_v42 = vld [vmem:[%s4469_s1 + $0x640] sm:$0xf]  ;;  %v2555_v47 = vor.u32 %v2946_v41, %v2554_v39  ;;  %v2910_v50 = vld [vmem:[%s4469_s1 + $0x42c] sm:$0xf0]  ;;  %v2900_v15 = vld [vmem:[%s4469_s1 + $0x3e4] sm:$0xf]  ;;  %v2255_v28 = vor.u32 %v2868_v12, %v2252_v14 }
  0x34   :  { %1461 = vmatpush.bf16.msrb.mxu0 %v2443_v34  ;;  %v2683_v48 = vor.u32 %v2978_v43, %v2682_v42  ;;  %v2410_v49 = vld [vmem:[%s4469_s1 + $0x420] sm:$0xf]  ;;  %v2942_v53 = vld [vmem:[%s4469_s1 + $0x52c] sm:$0xf0]  ;;  %v2380_v16 = vld [vmem:[%s4469_s1 + $0x3f0] sm:$0xf0] }
  0x35   :  { %1474 = vmatpush.bf16.msrb.mxu1 %v2571_v35  ;;  %v2538_v51 = vld [vmem:[%s4469_s1 + $0x520] sm:$0xf]  ;;  %v2974_v55 = vld [vmem:[%s4469_s1 + $0x62c] sm:$0xf0]  ;;  %v2411_v59 = vor.u32 %v2910_v50, %v2410_v49  ;;  %v2932_v22 = vld [vmem:[%s4469_s1 + $0x4e4] sm:$0xf]  ;;  %v2383_v29 = vor.u32 %v2900_v15, %v2380_v16 }
  0x36   :  { %1487 = vmatpush.bf16.msrb.mxu2 %v2699_v36  ;;  %v2666_v54 = vld [vmem:[%s4469_s1 + $0x620] sm:$0xf]  ;;  %v2906_v60 = vld [vmem:[%s4469_s1 + $0x40c] sm:$0xf0]  ;;  %v2539_v63 = vor.u32 %v2942_v53, %v2538_v51  ;;  %v2508_v23 = vld [vmem:[%s4469_s1 + $0x4f0] sm:$0xf0] }
  0x37   :  { %1500 = vmatpush.bf16.msrb.mxu3 %v1935_v40  ;;  %v2394_v58 = vld [vmem:[%s4469_s1 + $0x400] sm:$0xf]  ;;  %v2938_v62 = vld [vmem:[%s4469_s1 + $0x50c] sm:$0xf0]  ;;  %v2667_v0 = vor.u32 %v2974_v55, %v2666_v54  ;;  %v2832_v30 = vld [vmem:[%s4469_s1 + $0x1c4] sm:$0xf]  ;;  %v2511_v33 = vor.u32 %v2932_v22, %v2508_v23 }
  0x38   :  { %1462 = vmatpush.bf16.msrb.mxu0 %v2427_v46  ;;  %v2522_v61 = vld [vmem:[%s4469_s1 + $0x500] sm:$0xf]  ;;  %v2970_v2 = vld [vmem:[%s4469_s1 + $0x60c] sm:$0xf0]  ;;  %v2395_v13 = vor.u32 %v2906_v60, %v2394_v58  ;;  %v2108_v31 = vld [vmem:[%s4469_s1 + $0x1d0] sm:$0xf0] }
  0x39   :  { %1475 = vmatpush.bf16.msrb.mxu1 %v2555_v47  ;;  %v2650_v1 = vld [vmem:[%s4469_s1 + $0x600] sm:$0xf]  ;;  %v34_v9 = vld [vmem:[%s4470_s0 + $0x10] sm:$0xff]  ;;  %v2523_v18 = vor.u32 %v2938_v62, %v2522_v61  ;;  %v2896_v35 = vld [vmem:[%s4469_s1 + $0x3c4] sm:$0xf]  ;;  %v2111_v42 = vor.u32 %v2832_v30, %v2108_v31 }
  0x3a   :  { %1488 = vmatpush.bf16.msrb.mxu2 %v2683_v48  ;;  %v2651_v19 = vor.u32 %v2970_v2, %v2650_v1  ;;  %v268_v24 = vunpack.c.l.b16 %v34_v9  ;;  %v269_v25 = vunpack.c.h.b16 %v34_v9  ;;  %v2236_v34 = vld [vmem:[%s4469_s1 + $0x2d0] sm:$0xf0]  ;;  %v2928_v38 = vld [vmem:[%s4469_s1 + $0x4c4] sm:$0xf] }
  0x3b   :  { %1501 = vmatpush.bf16.msrb.mxu3 %v1919_v52  ;;  %v2364_v36 = vld [vmem:[%s4469_s1 + $0x3d0] sm:$0xf0]  ;;  %v2239_v43 = vor.u32 %v2864_v32, %v2236_v34  ;;  %v2860_v47 = vld [vmem:[%s4469_s1 + $0x2a4] sm:$0xf] }
  0x3c   :  { %1463 = vmatpush.bf16.msrb.mxu0 %v2411_v59  ;;  %v2492_v39 = vld [vmem:[%s4469_s1 + $0x4d0] sm:$0xf0]  ;;  %v3502_v40 = vpack.c.b16 %v268_v24, %v268_v24  ;;  %v3504_v41 = vpack.c.b16 %v269_v25, %v269_v25  ;;  %v2367_v44 = vor.u32 %v2896_v35, %v2364_v36  ;;  %v2892_v50 = vld [vmem:[%s4469_s1 + $0x3a4] sm:$0xf] }
  0x3d   :  { %1476 = vmatpush.bf16.msrb.mxu1 %v2539_v63  ;;  %v2092_v46 = vld [vmem:[%s4469_s1 + $0x1b0] sm:$0xf0]  ;;  %v2495_v48 = vor.u32 %v2928_v38, %v2492_v39  ;;  %v2924_v52 = vld [vmem:[%s4469_s1 + $0x4a4] sm:$0xf] }
  0x3e   :  { %1489 = vmatpush.bf16.msrb.mxu2 %v2667_v0  ;;  %v2220_v49 = vld [vmem:[%s4469_s1 + $0x2b0] sm:$0xf0]  ;;  %v2095_v54 = vor.u32 %v2828_v45, %v2092_v46  ;;  %v2824_v57 = vld [vmem:[%s4469_s1 + $0x184] sm:$0xf] }
  0x3f   :  { %1502 = vmatpush.bf16.msrb.mxu3 %v1903_v5  ;;  %v2348_v51 = vld [vmem:[%s4469_s1 + $0x3b0] sm:$0xf0]  ;;  %v2223_v55 = vor.u32 %v2860_v47, %v2220_v49  ;;  %v2856_v59 = vld [vmem:[%s4469_s1 + $0x284] sm:$0xf] }
  0x40   :  { %1464 = vmatpush.bf16.msrb.mxu0 %v2395_v13  ;;  %v2476_v53 = vld [vmem:[%s4469_s1 + $0x4b0] sm:$0xf0]  ;;  %v2351_v56 = vor.u32 %v2892_v50, %v2348_v51  ;;  %v2888_v62 = vld [vmem:[%s4469_s1 + $0x384] sm:$0xf] }
  0x41   :  { %1477 = vmatpush.bf16.msrb.mxu1 %v2523_v18  ;;  %v2076_v58 = vld [vmem:[%s4469_s1 + $0x190] sm:$0xf0]  ;;  %v2479_v60 = vor.u32 %v2924_v52, %v2476_v53  ;;  %v2920_v0 = vld [vmem:[%s4469_s1 + $0x484] sm:$0xf] }
  0x42   :  { %1490 = vmatpush.bf16.msrb.mxu2 %v2651_v19  ;;  %v2204_v61 = vld [vmem:[%s4469_s1 + $0x290] sm:$0xf0]  ;;  %v2079_v2 = vor.u32 %v2824_v57, %v2076_v58  ;;  %v2820_v7 = vld [vmem:[%s4469_s1 + $0x164] sm:$0xf] }
  0x43   :  { %1503 = vmatpush.bf16.msrb.mxu3 %v1887_v26  ;;  %1465 = vmatmul.bf16.vlgmr.msrb.gmra.mxu0 %v3502_v40  ;;  %v2332_v63 = vld [vmem:[%s4469_s1 + $0x390] sm:$0xf0]  ;;  %v2207_v3 = vor.u32 %v2856_v59, %v2204_v61  ;;  %v2852_v9 = vld [vmem:[%s4469_s1 + $0x264] sm:$0xf] }
  0x44   :  { %1509 = vmatpush.bf16.msra.mxu0 %v2127_v27  ;;  %1478 = vmatmul.bf16.vlgmr.msrb.gmra.mxu1 %v3504_v41  ;;  %v2460_v1 = vld [vmem:[%s4469_s1 + $0x490] sm:$0xf0]  ;;  %v2335_v5 = vor.u32 %v2888_v62, %v2332_v63  ;;  %v2884_v12 = vld [vmem:[%s4469_s1 + $0x364] sm:$0xf]  ;;  %v2002_v62 = vld [vmem:[%s4469_s1 + $0xe8] sm:$0xf] }
  0x45   :  { %1522 = vmatpush.bf16.msra.mxu1 %v2255_v28  ;;  %1491 = vmatmul.bf16.vlgmr.msrb.gmra.mxu2 %v3494_v37  ;;  %v2060_v8 = vld [vmem:[%s4469_s1 + $0x170] sm:$0xf0]  ;;  %v2463_v10 = vor.u32 %v2920_v0, %v2460_v1  ;;  %v2916_v14 = vld [vmem:[%s4469_s1 + $0x464] sm:$0xf]  ;;  %v2807_v63 = vld [vmem:[%s4469_s1 + $0xf4] sm:$0xf0] }
  0x46   :  { %1535 = vmatpush.bf16.msra.mxu2 %v2383_v29  ;;  %1504 = vmatmul.bf16.vlgmr.msrb.gmra.mxu3 %v3343_v20  ;;  %v2188_v11 = vld [vmem:[%s4469_s1 + $0x270] sm:$0xf0]  ;;  %v2063_v16 = vor.u32 %v2820_v7, %v2060_v8  ;;  %v2816_v19 = vld [vmem:[%s4469_s1 + $0x144] sm:$0xf] }
  0x47   :  { %1548 = vmatpush.bf16.msra.mxu3 %v2511_v33  ;;  %v2316_v13 = vld [vmem:[%s4469_s1 + $0x370] sm:$0xf0]  ;;  %v2191_v17 = vor.u32 %v2852_v9, %v2188_v11  ;;  %v2848_v23 = vld [vmem:[%s4469_s1 + $0x244] sm:$0xf]  ;;  %v2003_v9 = vor.u32 %v2807_v63, %v2002_v62 }
  0x48   :  { %1510 = vmatpush.bf16.msra.mxu0 %v2111_v42  ;;  %v2444_v15 = vld [vmem:[%s4469_s1 + $0x470] sm:$0xf0]  ;;  %v2319_v18 = vor.u32 %v2884_v12, %v2316_v13  ;;  %v2880_v26 = vld [vmem:[%s4469_s1 + $0x344] sm:$0xf] }
  0x49   :  { %1523 = vmatpush.bf16.msra.mxu1 %v2239_v43  ;;  %v2044_v22 = vld [vmem:[%s4469_s1 + $0x150] sm:$0xf0]  ;;  %v2447_v24 = vor.u32 %v2916_v14, %v2444_v15  ;;  %v2912_v28 = vld [vmem:[%s4469_s1 + $0x444] sm:$0xf]  ;;  %v1986_v15 = vld [vmem:[%s4469_s1 + $0xc8] sm:$0xf] }
  0x4a   :  { %1536 = vmatpush.bf16.msra.mxu2 %v2367_v44  ;;  %v2172_v25 = vld [vmem:[%s4469_s1 + $0x250] sm:$0xf0]  ;;  %v2047_v30 = vor.u32 %v2816_v19, %v2044_v22  ;;  %v2812_v33 = vld [vmem:[%s4469_s1 + $0x124] sm:$0xf] }
  0x4b   :  { %1549 = vmatpush.bf16.msra.mxu3 %v2495_v48  ;;  %v2300_v27 = vld [vmem:[%s4469_s1 + $0x350] sm:$0xf0]  ;;  %v2175_v31 = vor.u32 %v2848_v23, %v2172_v25  ;;  %v2844_v35 = vld [vmem:[%s4469_s1 + $0x224] sm:$0xf] }
  0x4c   :  { %1511 = vmatpush.bf16.msra.mxu0 %v2095_v54  ;;  %v2428_v29 = vld [vmem:[%s4469_s1 + $0x450] sm:$0xf0]  ;;  %v2303_v32 = vor.u32 %v2880_v26, %v2300_v27  ;;  %v2876_v39 = vld [vmem:[%s4469_s1 + $0x324] sm:$0xf] }
  0x4d   :  { %1524 = vmatpush.bf16.msra.mxu1 %v2223_v55  ;;  %v2028_v34 = vld [vmem:[%s4469_s1 + $0x130] sm:$0xf0]  ;;  %v2431_v36 = vor.u32 %v2912_v28, %v2428_v29  ;;  %v2908_v43 = vld [vmem:[%s4469_s1 + $0x424] sm:$0xf]  ;;  %v1970_v29 = vld [vmem:[%s4469_s1 + $0xa8] sm:$0xf] }
  0x4e   :  { %1537 = vmatpush.bf16.msra.mxu2 %v2351_v56  ;;  %v2156_v38 = vld [vmem:[%s4469_s1 + $0x230] sm:$0xf0]  ;;  %v2031_v45 = vor.u32 %v2812_v33, %v2028_v34  ;;  %v2808_v46 = vld [vmem:[%s4469_s1 + $0x104] sm:$0xf] }
  0x4f   :  { %1550 = vmatpush.bf16.msra.mxu3 %v2479_v60  ;;  %v2284_v42 = vld [vmem:[%s4469_s1 + $0x330] sm:$0xf0]  ;;  %v2159_v48 = vor.u32 %v2844_v35, %v2156_v38  ;;  %v2840_v50 = vld [vmem:[%s4469_s1 + $0x204] sm:$0xf] }
  0x50   :  { %1512 = vmatpush.bf16.msra.mxu0 %v2079_v2  ;;  %v2412_v44 = vld [vmem:[%s4469_s1 + $0x430] sm:$0xf0]  ;;  %v2287_v49 = vor.u32 %v2876_v39, %v2284_v42  ;;  %v2872_v52 = vld [vmem:[%s4469_s1 + $0x304] sm:$0xf]  ;;  %v2130_v2 = vld [vmem:[%s4469_s1 + $0x1e8] sm:$0xf] }
  0x51   :  { %1525 = vmatpush.bf16.msra.mxu1 %v2207_v3  ;;  %v2012_v47 = vld [vmem:[%s4469_s1 + $0x110] sm:$0xf0]  ;;  %v2415_v53 = vor.u32 %v2908_v43, %v2412_v44  ;;  %v2904_v55 = vld [vmem:[%s4469_s1 + $0x404] sm:$0xf]  ;;  %v2839_v3 = vld [vmem:[%s4469_s1 + $0x1f4] sm:$0xf0] }
  0x52   :  { %1538 = vmatpush.bf16.msra.mxu2 %v2335_v5  ;;  %v2140_v51 = vld [vmem:[%s4469_s1 + $0x210] sm:$0xf0]  ;;  %v2964_v57 = vld [vmem:[%s4469_s1 + $0x5e4] sm:$0xf]  ;;  %v2015_v60 = vor.u32 %v2808_v46, %v2012_v47  ;;  %v2131_v13 = vor.u32 %v2839_v3, %v2130_v2  ;;  %v1954_v44 = vld [vmem:[%s4469_s1 + $0x88] sm:$0xf] }
  0x53   :  { %1551 = vmatpush.bf16.msra.mxu3 %v2463_v10  ;;  %v2268_v54 = vld [vmem:[%s4469_s1 + $0x310] sm:$0xf0]  ;;  %v2996_v59 = vld [vmem:[%s4469_s1 + $0x6e4] sm:$0xf]  ;;  %v2143_v0 = vor.u32 %v2840_v50, %v2140_v51  ;;  %v2082_v46 = vld [vmem:[%s4469_s1 + $0x188] sm:$0xf] }
  0x54   :  { %1513 = vmatpush.bf16.msra.mxu0 %v2063_v16  ;;  %v2396_v56 = vld [vmem:[%s4469_s1 + $0x410] sm:$0xf0]  ;;  %v2271_v1 = vor.u32 %v2872_v52, %v2268_v54  ;;  %v2960_v10 = vld [vmem:[%s4469_s1 + $0x5c4] sm:$0xf]  ;;  %v2803_v16 = vld [vmem:[%s4469_s1 + $0xd4] sm:$0xf0] }
  0x55   :  { %1526 = vmatpush.bf16.msra.mxu1 %v2191_v17  ;;  %v2636_v58 = vld [vmem:[%s4469_s1 + $0x5f0] sm:$0xf0]  ;;  %v2399_v5 = vor.u32 %v2904_v55, %v2396_v56  ;;  %v2992_v12 = vld [vmem:[%s4469_s1 + $0x6c4] sm:$0xf]  ;;  %v2114_v17 = vld [vmem:[%s4469_s1 + $0x1c8] sm:$0xf]  ;;  %v1987_v23 = vor.u32 %v2803_v16, %v1986_v15 }
  0x56   :  { %1539 = vmatpush.bf16.msra.mxu2 %v2319_v18  ;;  %v2764_v61 = vld [vmem:[%s4469_s1 + $0x6f0] sm:$0xf0]  ;;  %v2639_v7 = vor.u32 %v2964_v57, %v2636_v58  ;;  %v2835_v18 = vld [vmem:[%s4469_s1 + $0x1d4] sm:$0xf0]  ;;  %v2988_v26 = vld [vmem:[%s4469_s1 + $0x6a4] sm:$0xf] }
  0x57   :  { %1552 = vmatpush.bf16.msra.mxu3 %v2447_v24  ;;  %v2767_v8 = vor.u32 %v2996_v59, %v2764_v61  ;;  %v2620_v11 = vld [vmem:[%s4469_s1 + $0x5d0] sm:$0xf0]  ;;  %v2956_v24 = vld [vmem:[%s4469_s1 + $0x5a4] sm:$0xf]  ;;  %v2115_v27 = vor.u32 %v2835_v18, %v2114_v17  ;;  %v2827_v47 = vld [vmem:[%s4469_s1 + $0x194] sm:$0xf0] }
  0x58   :  { %1514 = vmatpush.bf16.msra.mxu0 %v2047_v30  ;;  %v2748_v14 = vld [vmem:[%s4469_s1 + $0x6d0] sm:$0xf0]  ;;  %v2623_v19 = vor.u32 %v2960_v10, %v2620_v11  ;;  %v2799_v30 = vld [vmem:[%s4469_s1 + $0xb4] sm:$0xf0]  ;;  %v2984_v39 = vld [vmem:[%s4469_s1 + $0x684] sm:$0xf]  ;;  %v2083_v54 = vor.u32 %v2827_v47, %v2082_v46 }
  0x59   :  { %1527 = vmatpush.bf16.msra.mxu1 %v2175_v31  ;;  %v2751_v22 = vor.u32 %v2992_v12, %v2748_v14  ;;  %v2604_v25 = vld [vmem:[%s4469_s1 + $0x5b0] sm:$0xf0]  ;;  %v2098_v31 = vld [vmem:[%s4469_s1 + $0x1a8] sm:$0xf]  ;;  %v1971_v35 = vor.u32 %v2799_v30, %v1970_v29  ;;  %v2948_v51 = vld [vmem:[%s4469_s1 + $0x564] sm:$0xf] }
  0x5a   :  { %1540 = vmatpush.bf16.msra.mxu2 %v2303_v32  ;;  %v2732_v28 = vld [vmem:[%s4469_s1 + $0x6b0] sm:$0xf0]  ;;  %v2831_v32 = vld [vmem:[%s4469_s1 + $0x1b4] sm:$0xf0]  ;;  %v2607_v33 = vor.u32 %v2956_v24, %v2604_v25  ;;  %v1938_v56 = vld [vmem:[%s4469_s1 + $0x68] sm:$0xf] }
  0x5b   :  { %1553 = vmatpush.bf16.msra.mxu3 %v2431_v36  ;;  %v2735_v34 = vor.u32 %v2988_v26, %v2732_v28  ;;  %v2952_v36 = vld [vmem:[%s4469_s1 + $0x584] sm:$0xf]  ;;  %v2588_v38 = vld [vmem:[%s4469_s1 + $0x590] sm:$0xf0]  ;;  %v2099_v42 = vor.u32 %v2831_v32, %v2098_v31  ;;  %v2791_v57 = vld [vmem:[%s4469_s1 + $0x74] sm:$0xf0] }
  0x5c   :  { %1515 = vmatpush.bf16.msra.mxu0 %v2031_v45  ;;  %v2716_v43 = vld [vmem:[%s4469_s1 + $0x690] sm:$0xf0]  ;;  %v2795_v45 = vld [vmem:[%s4469_s1 + $0x94] sm:$0xf0]  ;;  %v2066_v58 = vld [vmem:[%s4469_s1 + $0x168] sm:$0xf]  ;;  %v1939_v62 = vor.u32 %v2791_v57, %v1938_v56 }
  0x5d   :  { %1528 = vmatpush.bf16.msra.mxu1 %v2159_v48  ;;  %v2591_v48 = vor.u32 %v2952_v36, %v2588_v38  ;;  %v1955_v50 = vor.u32 %v2795_v45, %v1954_v44  ;;  %v2572_v52 = vld [vmem:[%s4469_s1 + $0x570] sm:$0xf0]  ;;  %v2823_v59 = vld [vmem:[%s4469_s1 + $0x174] sm:$0xf0]  ;;  %v2944_v63 = vld [vmem:[%s4469_s1 + $0x544] sm:$0xf] }
  0x5e   :  { %1541 = vmatpush.bf16.msra.mxu2 %v2287_v49  ;;  %v2719_v49 = vor.u32 %v2984_v39, %v2716_v43  ;;  %v2700_v55 = vld [vmem:[%s4469_s1 + $0x670] sm:$0xf0]  ;;  %v2067_v2 = vor.u32 %v2823_v59, %v2066_v58  ;;  %v2972_v15 = vld [vmem:[%s4469_s1 + $0x624] sm:$0xf]  ;;  %v1906_v18 = vld [vmem:[%s4469_s1 + $0x28] sm:$0xf] }
  0x5f   :  { %1554 = vmatpush.bf16.msra.mxu3 %v2415_v53  ;;  %v2980_v53 = vld [vmem:[%s4469_s1 + $0x664] sm:$0xf]  ;;  %v2684_v3 = vld [vmem:[%s4469_s1 + $0x650] sm:$0xf0]  ;;  %v1890_v31 = vld [vmem:[%s4469_s1 + $0x8] sm:$0xf] }
  0x60   :  { %1516 = vmatpush.bf16.msra.mxu0 %v2015_v60  ;;  %v2575_v60 = vor.u32 %v2948_v51, %v2572_v52  ;;  %v2703_v61 = vor.u32 %v2980_v53, %v2700_v55  ;;  %v2540_v14 = vld [vmem:[%s4469_s1 + $0x530] sm:$0xf0]  ;;  %v2936_v25 = vld [vmem:[%s4469_s1 + $0x504] sm:$0xf]  ;;  %v2258_v36 = vld [vmem:[%s4469_s1 + $0x2e8] sm:$0xf] }
  0x61   :  { %1529 = vmatpush.bf16.msra.mxu1 %v2143_v0  ;;  %v2556_v0 = vld [vmem:[%s4469_s1 + $0x550] sm:$0xf0]  ;;  %v2968_v29 = vld [vmem:[%s4469_s1 + $0x604] sm:$0xf]  ;;  %v2871_v38 = vld [vmem:[%s4469_s1 + $0x2f4] sm:$0xf0] }
  0x62   :  { %1542 = vmatpush.bf16.msra.mxu2 %v2271_v1  ;;  %v2976_v1 = vld [vmem:[%s4469_s1 + $0x644] sm:$0xf]  ;;  %v2559_v10 = vor.u32 %v2944_v63, %v2556_v0  ;;  %v2668_v17 = vld [vmem:[%s4469_s1 + $0x630] sm:$0xf0]  ;;  %v2386_v39 = vld [vmem:[%s4469_s1 + $0x3e8] sm:$0xf]  ;;  %v2259_v51 = vor.u32 %v2871_v38, %v2258_v36 }
  0x63   :  { %1555 = vmatpush.bf16.msra.mxu3 %v2399_v5  ;;  %1517 = vmatmul.bf16.vlgmr.msra.gmra.mxu0 %v3345_v21  ;;  %v1922_v5 = vld [vmem:[%s4469_s1 + $0x48] sm:$0xf]  ;;  %v2687_v11 = vor.u32 %v2976_v1, %v2684_v3  ;;  %v2524_v26 = vld [vmem:[%s4469_s1 + $0x510] sm:$0xf0]  ;;  %v2903_v43 = vld [vmem:[%s4469_s1 + $0x3f4] sm:$0xf0] }
  0x64   :  { %1561 = vmatpush.bf16.msrb.mxu0 %v2639_v7  ;;  %1530 = vmatmul.bf16.vlgmr.msra.gmra.mxu1 %v3311_v4  ;;  %v2787_v7 = vld [vmem:[%s4469_s1 + $0x54] sm:$0xf0]  ;;  %v2652_v30 = vld [vmem:[%s4469_s1 + $0x610] sm:$0xf0]  ;;  %v2514_v44 = vld [vmem:[%s4469_s1 + $0x4e8] sm:$0xf]  ;;  %v2387_v52 = vor.u32 %v2903_v43, %v2386_v39 }
  0x65   :  { %1574 = vmatpush.bf16.msrb.mxu1 %v2767_v8  ;;  %1543 = vmatmul.bf16.vlgmr.msra.gmra.mxu2 %v3316_v6  ;;  %v2050_v8 = vld [vmem:[%s4469_s1 + $0x148] sm:$0xf]  ;;  %v1923_v12 = vor.u32 %v2787_v7, %v1922_v5  ;;  %v2935_v45 = vld [vmem:[%s4469_s1 + $0x4f4] sm:$0xf0]  ;;  %v2655_v46 = vor.u32 %v2968_v29, %v2652_v30 }
  0x66   :  { %1587 = vmatpush.bf16.msrb.mxu2 %v2003_v9  ;;  %1556 = vmatmul.bf16.vlgmr.msra.gmra.mxu3 %v3502_v40  ;;  %v2819_v9 = vld [vmem:[%s4469_s1 + $0x154] sm:$0xf0]  ;;  %v2515_v53 = vor.u32 %v2935_v45, %v2514_v44  ;;  %v2370_v56 = vld [vmem:[%s4469_s1 + $0x3c8] sm:$0xf] }
  0x67   :  { %1600 = vmatpush.bf16.msrb.mxu3 %v2131_v13  ;;  %v2940_v13 = vld [vmem:[%s4469_s1 + $0x524] sm:$0xf]  ;;  %v2051_v16 = vor.u32 %v2819_v9, %v2050_v8  ;;  %v2867_v55 = vld [vmem:[%s4469_s1 + $0x2d4] sm:$0xf0]  ;;  %v2498_v59 = vld [vmem:[%s4469_s1 + $0x4c8] sm:$0xf] }
  0x68   :  { %1562 = vmatpush.bf16.msrb.mxu0 %v2623_v19  ;;  %v2783_v19 = vld [vmem:[%s4469_s1 + $0x34] sm:$0xf0]  ;;  %v2543_v24 = vor.u32 %v2940_v13, %v2540_v14  ;;  %v2354_v5 = vld [vmem:[%s4469_s1 + $0x3a8] sm:$0xf] }
  0x69   :  { %1575 = vmatpush.bf16.msrb.mxu1 %v2751_v22  ;;  %v2034_v22 = vld [vmem:[%s4469_s1 + $0x128] sm:$0xf]  ;;  %v1907_v28 = vor.u32 %v2783_v19, %v1906_v18  ;;  %v2899_v58 = vld [vmem:[%s4469_s1 + $0x3d4] sm:$0xf0] }
  0x6a   :  { %1588 = vmatpush.bf16.msrb.mxu2 %v1987_v23  ;;  %v2815_v23 = vld [vmem:[%s4469_s1 + $0x134] sm:$0xf0]  ;;  %v2371_v0 = vor.u32 %v2899_v58, %v2370_v56  ;;  %v2482_v9 = vld [vmem:[%s4469_s1 + $0x4a8] sm:$0xf] }
  0x6b   :  { %1601 = vmatpush.bf16.msrb.mxu3 %v2115_v27  ;;  %v2671_v27 = vor.u32 %v2972_v15, %v2668_v17  ;;  %v2035_v32 = vor.u32 %v2815_v23, %v2034_v22  ;;  %v2863_v3 = vld [vmem:[%s4469_s1 + $0x2b4] sm:$0xf0]  ;;  %v2338_v18 = vld [vmem:[%s4469_s1 + $0x388] sm:$0xf] }
  0x6c   :  { %1563 = vmatpush.bf16.msrb.mxu0 %v2607_v33  ;;  %v2779_v33 = vld [vmem:[%s4469_s1 + $0x14] sm:$0xf0]  ;;  %v2466_v23 = vld [vmem:[%s4469_s1 + $0x488] sm:$0xf] }
  0x6d   :  { %1576 = vmatpush.bf16.msrb.mxu1 %v2735_v34  ;;  %v2018_v34 = vld [vmem:[%s4469_s1 + $0x108] sm:$0xf]  ;;  %v1891_v47 = vor.u32 %v2779_v33, %v1890_v31  ;;  %v2895_v8 = vld [vmem:[%s4469_s1 + $0x3b4] sm:$0xf0] }
  0x6e   :  { %1589 = vmatpush.bf16.msrb.mxu2 %v1971_v35  ;;  %v2811_v35 = vld [vmem:[%s4469_s1 + $0x114] sm:$0xf0]  ;;  %v2355_v14 = vor.u32 %v2895_v8, %v2354_v5  ;;  %v2194_v30 = vld [vmem:[%s4469_s1 + $0x268] sm:$0xf] }
  0x6f   :  { %1602 = vmatpush.bf16.msrb.mxu3 %v2099_v42  ;;  %v2527_v42 = vor.u32 %v2936_v25, %v2524_v26  ;;  %v2859_v17 = vld [vmem:[%s4469_s1 + $0x294] sm:$0xf0]  ;;  %v2594_v25 = vld [vmem:[%s4469_s1 + $0x588] sm:$0xf] }
  0x70   :  { %1564 = vmatpush.bf16.msrb.mxu0 %v2591_v48  ;;  %v2642_v48 = vld [vmem:[%s4469_s1 + $0x5e8] sm:$0xf]  ;;  %v2891_v22 = vld [vmem:[%s4469_s1 + $0x394] sm:$0xf0] }
  0x71   :  { %1577 = vmatpush.bf16.msrb.mxu1 %v2719_v49  ;;  %v2967_v49 = vld [vmem:[%s4469_s1 + $0x5f4] sm:$0xf0]  ;;  %v2578_v38 = vld [vmem:[%s4469_s1 + $0x568] sm:$0xf] }
  0x72   :  { %1590 = vmatpush.bf16.msrb.mxu2 %v1955_v50  ;;  %v2019_v50 = vor.u32 %v2811_v35, %v2018_v34  ;;  %v2643_v57 = vor.u32 %v2967_v49, %v2642_v48  ;;  %v2955_v26 = vld [vmem:[%s4469_s1 + $0x594] sm:$0xf0]  ;;  %v2450_v35 = vld [vmem:[%s4469_s1 + $0x468] sm:$0xf] }
  0x73   :  { %1603 = vmatpush.bf16.msrb.mxu3 %v2083_v54  ;;  %v2242_v54 = vld [vmem:[%s4469_s1 + $0x2c8] sm:$0xf]  ;;  %v2855_v31 = vld [vmem:[%s4469_s1 + $0x274] sm:$0xf0]  ;;  %v2595_v33 = vor.u32 %v2955_v26, %v2594_v25 }
  0x74   :  { %1565 = vmatpush.bf16.msrb.mxu0 %v2575_v60  ;;  %v2931_v60 = vld [vmem:[%s4469_s1 + $0x4d4] sm:$0xf0]  ;;  %v2243_v63 = vor.u32 %v2867_v55, %v2242_v54  ;;  %v2178_v45 = vld [vmem:[%s4469_s1 + $0x248] sm:$0xf] }
  0x75   :  { %1578 = vmatpush.bf16.msrb.mxu1 %v2703_v61  ;;  %v2626_v61 = vld [vmem:[%s4469_s1 + $0x5c8] sm:$0xf]  ;;  %v2499_v1 = vor.u32 %v2931_v60, %v2498_v59  ;;  %v2887_v34 = vld [vmem:[%s4469_s1 + $0x374] sm:$0xf0] }
  0x76   :  { %1591 = vmatpush.bf16.msrb.mxu2 %v1939_v62  ;;  %v2963_v62 = vld [vmem:[%s4469_s1 + $0x5d4] sm:$0xf0]  ;;  %v2290_v59 = vld [vmem:[%s4469_s1 + $0x328] sm:$0xf] }
  0x77   :  { %1604 = vmatpush.bf16.msrb.mxu3 %v2067_v2  ;;  %v2226_v2 = vld [vmem:[%s4469_s1 + $0x2a8] sm:$0xf]  ;;  %v2627_v7 = vor.u32 %v2963_v62, %v2626_v61  ;;  %v2919_v36 = vld [vmem:[%s4469_s1 + $0x474] sm:$0xf0] }
  0x78   :  { %1566 = vmatpush.bf16.msrb.mxu0 %v2559_v10  ;;  %v2927_v10 = vld [vmem:[%s4469_s1 + $0x4b4] sm:$0xf0]  ;;  %v2227_v13 = vor.u32 %v2863_v3, %v2226_v2  ;;  %v2451_v44 = vor.u32 %v2919_v36, %v2450_v35  ;;  %v2418_v62 = vld [vmem:[%s4469_s1 + $0x428] sm:$0xf]  ;;  %v2801_v35 = vld [vmem:[%s4469_s1 + $0xcc] sm:$0xf] }
  0x79   :  { %1579 = vmatpush.bf16.msrb.mxu1 %v2687_v11  ;;  %v2610_v11 = vld [vmem:[%s4469_s1 + $0x5a8] sm:$0xf]  ;;  %v2483_v15 = vor.u32 %v2927_v10, %v2482_v9  ;;  %v2951_v39 = vld [vmem:[%s4469_s1 + $0x574] sm:$0xf0] }
  0x7a   :  { %1592 = vmatpush.bf16.msrb.mxu2 %v1923_v12  ;;  %v2959_v12 = vld [vmem:[%s4469_s1 + $0x5b4] sm:$0xf0]  ;;  %v2579_v48 = vor.u32 %v2951_v39, %v2578_v38  ;;  %v2146_v3 = vld [vmem:[%s4469_s1 + $0x208] sm:$0xf]  ;;  %v1988_v38 = vld [vmem:[%s4469_s1 + $0xd8] sm:$0xf0] }
  0x7b   :  { %1605 = vmatpush.bf16.msrb.mxu3 %v2051_v16  ;;  %v2210_v16 = vld [vmem:[%s4469_s1 + $0x288] sm:$0xf]  ;;  %v2611_v19 = vor.u32 %v2959_v12, %v2610_v11  ;;  %v2883_v49 = vld [vmem:[%s4469_s1 + $0x354] sm:$0xf0]  ;;  %v2833_v39 = vld [vmem:[%s4469_s1 + $0x1cc] sm:$0xf] }
  0x7c   :  { %1567 = vmatpush.bf16.msrb.mxu0 %v2543_v24  ;;  %v2923_v24 = vld [vmem:[%s4469_s1 + $0x494] sm:$0xf0]  ;;  %v2274_v9 = vld [vmem:[%s4469_s1 + $0x308] sm:$0xf] }
  0x7d   :  { %1580 = vmatpush.bf16.msrb.mxu1 %v2671_v27  ;;  %v2211_v27 = vor.u32 %v2859_v17, %v2210_v16  ;;  %v2467_v29 = vor.u32 %v2923_v24, %v2466_v23  ;;  %v2847_v58 = vld [vmem:[%s4469_s1 + $0x234] sm:$0xf0]  ;;  %v2402_v11 = vld [vmem:[%s4469_s1 + $0x408] sm:$0xf]  ;;  %v2837_v23 = vld [vmem:[%s4469_s1 + $0x1ec] sm:$0xf] }
  0x7e   :  { %1593 = vmatpush.bf16.msrb.mxu2 %v1907_v28  ;;  %v2339_v28 = vor.u32 %v2891_v22, %v2338_v18  ;;  %v2879_v61 = vld [vmem:[%s4469_s1 + $0x334] sm:$0xf0]  ;;  %v2770_v16 = vld [vmem:[%s4469_s1 + $0x6e8] sm:$0xf]  ;;  %v2805_v18 = vld [vmem:[%s4469_s1 + $0xec] sm:$0xf] }
  0x7f   :  { %1606 = vmatpush.bf16.msrb.mxu3 %v2035_v32  ;;  %v2322_v32 = vld [vmem:[%s4469_s1 + $0x368] sm:$0xf]  ;;  %v2843_v5 = vld [vmem:[%s4469_s1 + $0x214] sm:$0xf0]  ;;  %v2004_v22 = vld [vmem:[%s4469_s1 + $0xf8] sm:$0xf0] }
  0x80   :  { %1568 = vmatpush.bf16.msrb.mxu0 %v2527_v42  ;;  %v2195_v42 = vor.u32 %v2855_v31, %v2194_v30  ;;  %v2323_v43 = vor.u32 %v2887_v34, %v2322_v32  ;;  %v2875_v10 = vld [vmem:[%s4469_s1 + $0x314] sm:$0xf0]  ;;  %v2132_v24 = vld [vmem:[%s4469_s1 + $0x1f8] sm:$0xf0]  ;;  %v2007_v31 = vor.u32 %v2805_v18, %v2004_v22 }
  0x81   :  { %1581 = vmatpush.bf16.msrb.mxu1 %v2655_v46  ;;  %v2851_v46 = vld [vmem:[%s4469_s1 + $0x254] sm:$0xf0]  ;;  %v2275_v25 = vor.u32 %v2875_v10, %v2274_v9  ;;  %v2135_v32 = vor.u32 %v2837_v23, %v2132_v24  ;;  %v2706_v10 = vld [vmem:[%s4469_s1 + $0x668] sm:$0xf]  ;;  %v2196_v18 = vld [vmem:[%s4469_s1 + $0x278] sm:$0xf0] }
  0x82   :  { %1594 = vmatpush.bf16.msrb.mxu2 %v1891_v47  ;;  %v2306_v47 = vld [vmem:[%s4469_s1 + $0x348] sm:$0xf]  ;;  %v2179_v54 = vor.u32 %v2851_v46, %v2178_v45  ;;  %v2999_v17 = vld [vmem:[%s4469_s1 + $0x6f4] sm:$0xf0]  ;;  %v1991_v46 = vor.u32 %v2801_v35, %v1988_v38 }
  0x83   :  { %1607 = vmatpush.bf16.msrb.mxu3 %v2019_v50  ;;  %1569 = vmatmul.bf16.vlgmr.msrb.gmra.mxu0 %v3504_v41  ;;  %v2434_v50 = vld [vmem:[%s4469_s1 + $0x448] sm:$0xf]  ;;  %v2307_v55 = vor.u32 %v2883_v49, %v2306_v47  ;;  %v2771_v30 = vor.u32 %v2999_v17, %v2770_v16  ;;  %v2995_v34 = vld [vmem:[%s4469_s1 + $0x6d4] sm:$0xf0]  ;;  %v2068_v16 = vld [vmem:[%s4469_s1 + $0x178] sm:$0xf0] }
  0x84   :  { %1613 = vmatpush.bf16.msra.mxu0 %v2259_v51  ;;  %1582 = vmatmul.bf16.vlgmr.msrb.gmra.mxu1 %v3494_v37  ;;  %v2915_v51 = vld [vmem:[%s4469_s1 + $0x454] sm:$0xf0]  ;;  %v2853_v17 = vld [vmem:[%s4469_s1 + $0x26c] sm:$0xf]  ;;  %v2690_v24 = vld [vmem:[%s4469_s1 + $0x648] sm:$0xf] }
  0x85   :  { %1626 = vmatpush.bf16.msra.mxu1 %v2387_v52  ;;  %1595 = vmatmul.bf16.vlgmr.msrb.gmra.mxu2 %v3343_v20  ;;  %v2562_v52 = vld [vmem:[%s4469_s1 + $0x548] sm:$0xf]  ;;  %v2435_v56 = vor.u32 %v2915_v51, %v2434_v50  ;;  %v2991_v49 = vld [vmem:[%s4469_s1 + $0x6b4] sm:$0xf0]  ;;  %v2797_v50 = vld [vmem:[%s4469_s1 + $0xac] sm:$0xf] }
  0x86   :  { %1639 = vmatpush.bf16.msra.mxu2 %v2515_v53  ;;  %1608 = vmatmul.bf16.vlgmr.msrb.gmra.mxu3 %v3345_v21  ;;  %v2947_v53 = vld [vmem:[%s4469_s1 + $0x554] sm:$0xf0] }
  0x87   :  { %1652 = vmatpush.bf16.msra.mxu3 %v2643_v57  ;;  %v2162_v57 = vld [vmem:[%s4469_s1 + $0x228] sm:$0xf]  ;;  %v2563_v60 = vor.u32 %v2947_v53, %v2562_v52  ;;  %v1972_v52 = vld [vmem:[%s4469_s1 + $0xb8] sm:$0xf0]  ;;  %v2829_v53 = vld [vmem:[%s4469_s1 + $0x1ac] sm:$0xf] }
  0x88   :  { %1614 = vmatpush.bf16.msra.mxu0 %v2243_v63  ;;  %v2911_v63 = vld [vmem:[%s4469_s1 + $0x434] sm:$0xf0]  ;;  %v2163_v2 = vor.u32 %v2847_v58, %v2162_v57  ;;  %v1975_v58 = vor.u32 %v2797_v50, %v1972_v52  ;;  %v2164_v52 = vld [vmem:[%s4469_s1 + $0x238] sm:$0xf0] }
  0x89   :  { %1627 = vmatpush.bf16.msra.mxu1 %v2371_v0  ;;  %v2546_v0 = vld [vmem:[%s4469_s1 + $0x528] sm:$0xf]  ;;  %v2419_v8 = vor.u32 %v2911_v63, %v2418_v62  ;;  %v2793_v62 = vld [vmem:[%s4469_s1 + $0x8c] sm:$0xf] }
  0x8a   :  { %1640 = vmatpush.bf16.msra.mxu2 %v2499_v1  ;;  %v2943_v1 = vld [vmem:[%s4469_s1 + $0x534] sm:$0xf0] }
  0x8b   :  { %1653 = vmatpush.bf16.msra.mxu3 %v2627_v7  ;;  %v2291_v7 = vor.u32 %v2879_v61, %v2290_v59  ;;  %v2547_v12 = vor.u32 %v2943_v1, %v2546_v0  ;;  %v2987_v61 = vld [vmem:[%s4469_s1 + $0x694] sm:$0xf0]  ;;  %v1956_v0 = vld [vmem:[%s4469_s1 + $0x98] sm:$0xf0]  ;;  %v2825_v1 = vld [vmem:[%s4469_s1 + $0x18c] sm:$0xf] }
  0x8c   :  { %1615 = vmatpush.bf16.msra.mxu0 %v2227_v13  ;;  %v2907_v13 = vld [vmem:[%s4469_s1 + $0x414] sm:$0xf0] }
  0x8d   :  { %1628 = vmatpush.bf16.msra.mxu1 %v2355_v14  ;;  %v2530_v14 = vld [vmem:[%s4469_s1 + $0x508] sm:$0xf]  ;;  %v2403_v26 = vor.u32 %v2907_v13, %v2402_v11  ;;  %v2983_v11 = vld [vmem:[%s4469_s1 + $0x674] sm:$0xf0] }
  0x8e   :  { %1641 = vmatpush.bf16.msra.mxu2 %v2483_v15  ;;  %v2939_v15 = vld [vmem:[%s4469_s1 + $0x514] sm:$0xf0] }
  0x8f   :  { %1654 = vmatpush.bf16.msra.mxu3 %v2611_v19  ;;  %v2147_v19 = vor.u32 %v2843_v5, %v2146_v3  ;;  %v2857_v3 = vld [vmem:[%s4469_s1 + $0x28c] sm:$0xf]  ;;  %v2212_v5 = vld [vmem:[%s4469_s1 + $0x298] sm:$0xf0] }
  0x90   :  { %1616 = vmatpush.bf16.msra.mxu0 %v2211_v27  ;;  %v2869_v27 = vld [vmem:[%s4469_s1 + $0x2ec] sm:$0xf]  ;;  %v2215_v13 = vor.u32 %v2857_v3, %v2212_v5  ;;  %v2388_v5 = vld [vmem:[%s4469_s1 + $0x3f8] sm:$0xf0] }
  0x91   :  { %1629 = vmatpush.bf16.msra.mxu1 %v2339_v28  ;;  %v2260_v28 = vld [vmem:[%s4469_s1 + $0x2f8] sm:$0xf0]  ;;  %v2901_v3 = vld [vmem:[%s4469_s1 + $0x3ec] sm:$0xf] }
  0x92   :  { %1642 = vmatpush.bf16.msra.mxu2 %v2467_v29  ;;  %v2531_v29 = vor.u32 %v2939_v15, %v2530_v14  ;;  %v2263_v36 = vor.u32 %v2869_v27, %v2260_v28  ;;  %v1940_v14 = vld [vmem:[%s4469_s1 + $0x78] sm:$0xf0]  ;;  %v2821_v15 = vld [vmem:[%s4469_s1 + $0x16c] sm:$0xf]  ;;  %v2199_v27 = vor.u32 %v2853_v17, %v2196_v18 }
  0x93   :  { %1655 = vmatpush.bf16.msra.mxu3 %v2595_v33  ;;  %v2754_v33 = vld [vmem:[%s4469_s1 + $0x6c8] sm:$0xf]  ;;  %v2071_v23 = vor.u32 %v2821_v15, %v2068_v16  ;;  %v1924_v28 = vld [vmem:[%s4469_s1 + $0x58] sm:$0xf0]  ;;  %v2997_v16 = vld [vmem:[%s4469_s1 + $0x6ec] sm:$0xf] }
  0x94   :  { %1617 = vmatpush.bf16.msra.mxu0 %v2195_v42  ;;  %v2116_v42 = vld [vmem:[%s4469_s1 + $0x1d8] sm:$0xf0]  ;;  %v2755_v45 = vor.u32 %v2995_v34, %v2754_v33 }
  0x95   :  { %1630 = vmatpush.bf16.msra.mxu1 %v2323_v43  ;;  %v2865_v43 = vld [vmem:[%s4469_s1 + $0x2cc] sm:$0xf]  ;;  %v2119_v47 = vor.u32 %v2833_v39, %v2116_v42  ;;  %v2674_v39 = vld [vmem:[%s4469_s1 + $0x628] sm:$0xf]  ;;  %v2975_v42 = vld [vmem:[%s4469_s1 + $0x634] sm:$0xf0] }
  0x96   :  { %1643 = vmatpush.bf16.msra.mxu2 %v2451_v44  ;;  %v2244_v44 = vld [vmem:[%s4469_s1 + $0x2d8] sm:$0xf0] }
  0x97   :  { %1656 = vmatpush.bf16.msra.mxu3 %v2579_v48  ;;  %v2738_v48 = vld [vmem:[%s4469_s1 + $0x6a8] sm:$0xf]  ;;  %v2247_v51 = vor.u32 %v2865_v43, %v2244_v44  ;;  %v2781_v43 = vld [vmem:[%s4469_s1 + $0x2c] sm:$0xf]  ;;  %v2772_v17 = vld [vmem:[%s4469_s1 + $0x6f8] sm:$0xf0] }
  0x98   :  { %1618 = vmatpush.bf16.msra.mxu0 %v2179_v54  ;;  %v2100_v54 = vld [vmem:[%s4469_s1 + $0x1b8] sm:$0xf0]  ;;  %v2739_v57 = vor.u32 %v2991_v49, %v2738_v48  ;;  %v2813_v48 = vld [vmem:[%s4469_s1 + $0x12c] sm:$0xf] }
  0x99   :  { %1631 = vmatpush.bf16.msra.mxu1 %v2307_v55  ;;  %v2861_v55 = vld [vmem:[%s4469_s1 + $0x2ac] sm:$0xf]  ;;  %v2103_v59 = vor.u32 %v2829_v53, %v2100_v54  ;;  %v2036_v49 = vld [vmem:[%s4469_s1 + $0x138] sm:$0xf0]  ;;  %v2675_v54 = vor.u32 %v2975_v42, %v2674_v39 }
  0x9a   :  { %1644 = vmatpush.bf16.msra.mxu2 %v2435_v56  ;;  %v2228_v56 = vld [vmem:[%s4469_s1 + $0x2b8] sm:$0xf0]  ;;  %v2893_v39 = vld [vmem:[%s4469_s1 + $0x3ac] sm:$0xf] }
  0x9b   :  { %1657 = vmatpush.bf16.msra.mxu3 %v2563_v60  ;;  %v2722_v60 = vld [vmem:[%s4469_s1 + $0x688] sm:$0xf]  ;;  %v2231_v63 = vor.u32 %v2861_v55, %v2228_v56  ;;  %v2971_v56 = vld [vmem:[%s4469_s1 + $0x614] sm:$0xf0]  ;;  %v2356_v42 = vld [vmem:[%s4469_s1 + $0x3b8] sm:$0xf0] }
  0x9c   :  { %1619 = vmatpush.bf16.msra.mxu0 %v2163_v2  ;;  %v2084_v2 = vld [vmem:[%s4469_s1 + $0x198] sm:$0xf0]  ;;  %v2658_v55 = vld [vmem:[%s4469_s1 + $0x608] sm:$0xf] }
  0x9d   :  { %1632 = vmatpush.bf16.msra.mxu1 %v2291_v7  ;;  %v2723_v7 = vor.u32 %v2987_v61, %v2722_v60  ;;  %v2087_v9 = vor.u32 %v2825_v1, %v2084_v2  ;;  %v1892_v60 = vld [vmem:[%s4469_s1 + $0x18] sm:$0xf0]  ;;  %v2809_v61 = vld [vmem:[%s4469_s1 + $0x10c] sm:$0xf] }
  0x9e   :  { %1645 = vmatpush.bf16.msra.mxu2 %v2419_v8  ;;  %v1959_v8 = vor.u32 %v2793_v62, %v1956_v0  ;;  %v2020_v0 = vld [vmem:[%s4469_s1 + $0x118] sm:$0xf0]  ;;  %v2841_v1 = vld [vmem:[%s4469_s1 + $0x20c] sm:$0xf] }
  0x9f   :  { %1658 = vmatpush.bf16.msra.mxu3 %v2547_v12  ;;  %v2789_v12 = vld [vmem:[%s4469_s1 + $0x6c] sm:$0xf]  ;;  %v2148_v2 = vld [vmem:[%s4469_s1 + $0x218] sm:$0xf0]  ;;  %v2023_v15 = vor.u32 %v2809_v61, %v2020_v0 }
  0xa0   :  { %1620 = vmatpush.bf16.msra.mxu0 %v2147_v19  ;;  %v2707_v19 = vor.u32 %v2983_v11, %v2706_v10  ;;  %v1943_v22 = vor.u32 %v2789_v12, %v1940_v14  ;;  %v2516_v10 = vld [vmem:[%s4469_s1 + $0x4f8] sm:$0xf0]  ;;  %v2965_v11 = vld [vmem:[%s4469_s1 + $0x5ec] sm:$0xf] }
  0xa1   :  { %1633 = vmatpush.bf16.msra.mxu1 %v2275_v25  ;;  %v2979_v25 = vld [vmem:[%s4469_s1 + $0x654] sm:$0xf0]  ;;  %v2644_v12 = vld [vmem:[%s4469_s1 + $0x5f8] sm:$0xf0] }
  0xa2   :  { %1646 = vmatpush.bf16.msra.mxu2 %v2403_v26  ;;  %v2785_v26 = vld [vmem:[%s4469_s1 + $0x4c] sm:$0xf]  ;;  %v2691_v34 = vor.u32 %v2979_v25, %v2690_v24  ;;  %v2647_v25 = vor.u32 %v2965_v11, %v2644_v12 }
  0xa3   :  { %1659 = vmatpush.bf16.msra.mxu3 %v2531_v29  ;;  %1621 = vmatmul.bf16.vlgmr.msra.gmra.mxu0 %v3311_v4  ;;  %v2817_v29 = vld [vmem:[%s4469_s1 + $0x14c] sm:$0xf] }
  0xa4   :  { %1665 = vmatpush.bf16.msrb.mxu0 %v2771_v30  ;;  %1634 = vmatmul.bf16.vlgmr.msra.gmra.mxu1 %v3316_v6  ;;  %v2052_v30 = vld [vmem:[%s4469_s1 + $0x158] sm:$0xf0]  ;;  %v2981_v11 = vld [vmem:[%s4469_s1 + $0x66c] sm:$0xf] }
  0xa5   :  { %1678 = vmatpush.bf16.msrb.mxu1 %v2007_v31  ;;  %1647 = vmatmul.bf16.vlgmr.msra.gmra.mxu2 %v3502_v40  ;;  %v2849_v31 = vld [vmem:[%s4469_s1 + $0x24c] sm:$0xf]  ;;  %v2055_v38 = vor.u32 %v2817_v29, %v2052_v30  ;;  %v2775_v29 = vor.u32 %v2997_v16, %v2772_v17  ;;  %v2500_v30 = vld [vmem:[%s4469_s1 + $0x4d8] sm:$0xf0] }
  0xa6   :  { %1691 = vmatpush.bf16.msrb.mxu2 %v2135_v32  ;;  %1660 = vmatmul.bf16.vlgmr.msra.gmra.mxu3 %v3504_v41  ;;  %v2180_v32 = vld [vmem:[%s4469_s1 + $0x258] sm:$0xf0]  ;;  %v2881_v16 = vld [vmem:[%s4469_s1 + $0x34c] sm:$0xf] }
  0xa7   :  { %1704 = vmatpush.bf16.msrb.mxu3 %v2263_v36  ;;  %v1927_v36 = vor.u32 %v2785_v26, %v1924_v28  ;;  %v2897_v26 = vld [vmem:[%s4469_s1 + $0x3cc] sm:$0xf]  ;;  %v2308_v17 = vld [vmem:[%s4469_s1 + $0x358] sm:$0xf0] }
  0xa8   :  { %1666 = vmatpush.bf16.msrb.mxu0 %v2755_v45  ;;  %v1440_v45 = vpop.f32.mrf.mxu2  ;;  %v2929_v28 = vld [vmem:[%s4469_s1 + $0x4cc] sm:$0xf] }
  0xa9   :  { %1679 = vmatpush.bf16.msrb.mxu1 %v1991_v46  ;;  %v2183_v46 = vor.u32 %v2849_v31, %v2180_v32  ;;  %v1453_v50 = vpop.f32.mrf.mxu3  ;;  %v2961_v31 = vld [vmem:[%s4469_s1 + $0x5cc] sm:$0xf]  ;;  %v2628_v32 = vld [vmem:[%s4469_s1 + $0x5d8] sm:$0xf0] }
  0xaa   :  { %1692 = vmatpush.bf16.msrb.mxu2 %v2119_v47  ;;  %v1908_v47 = vld [vmem:[%s4469_s1 + $0x38] sm:$0xf0] }
  0xab   :  { %1705 = vmatpush.bf16.msrb.mxu3 %v2247_v51  ;;  %v2845_v51 = vld [vmem:[%s4469_s1 + $0x22c] sm:$0xf] }
  0xac   :  { %1667 = vmatpush.bf16.msrb.mxu0 %v2739_v57  ;;  %v1414_v33 = vpop.f32.mrf.mxu0  ;;  %v1911_v57 = vor.u32 %v2781_v43, %v1908_v47  ;;  %v2925_v43 = vld [vmem:[%s4469_s1 + $0x4ac] sm:$0xf]  ;;  %v2612_v47 = vld [vmem:[%s4469_s1 + $0x5b8] sm:$0xf0] }
  0xad   :  { %1680 = vmatpush.bf16.msrb.mxu1 %v1975_v58  ;;  %v1427_v35 = vpop.f32.mrf.mxu1  ;;  %v2039_v58 = vor.u32 %v2813_v48, %v2036_v49  ;;  %v2989_v48 = vld [vmem:[%s4469_s1 + $0x6ac] sm:$0xf]  ;;  %v2740_v49 = vld [vmem:[%s4469_s1 + $0x6b8] sm:$0xf0] }
  0xae   :  { %1693 = vmatpush.bf16.msrb.mxu2 %v2103_v59  ;;  %v1428_v44 = vadd.f32 %v1427_v35, %v1414_v33  ;;  %v2777_v59 = vld [vmem:[%s4469_s1 + $0xc] sm:$0xf] }
  0xaf   :  { %1706 = vmatpush.bf16.msrb.mxu3 %v2231_v63  ;;  %v2167_v63 = vor.u32 %v2845_v51, %v2164_v52  ;;  %v1895_v14 = vor.u32 %v2777_v59, %v1892_v60  ;;  %v2993_v33 = vld [vmem:[%s4469_s1 + $0x6cc] sm:$0xf] }
  0xb0   :  { %1668 = vmatpush.bf16.msrb.mxu0 %v2723_v7  ;;  %v1441_v53 = vadd.f32 %v1440_v45, %v1428_v44  ;;  %v2933_v7 = vld [vmem:[%s4469_s1 + $0x4ec] sm:$0xf]  ;;  %v1442_v18 = vpop.f32.mrf.mxu2  ;;  %v2484_v45 = vld [vmem:[%s4469_s1 + $0x4b8] sm:$0xf0] }
  0xb1   :  { %1681 = vmatpush.bf16.msrb.mxu1 %v1959_v8  ;;  %v2519_v24 = vor.u32 %v2933_v7, %v2516_v10  ;;  %v2487_v51 = vor.u32 %v2925_v43, %v2484_v45  ;;  %v2580_v10 = vld [vmem:[%s4469_s1 + $0x578] sm:$0xf0]  ;;  %v2913_v18 = vld [vmem:[%s4469_s1 + $0x44c] sm:$0xf] }
  0xb2   :  { %1694 = vmatpush.bf16.msrb.mxu2 %v2087_v9  ;;  %v4233_v62 = vadd.f32 %v1453_v50, %v1441_v53  ;;  %v2659_v9 = vor.u32 %v2971_v56, %v2658_v55  ;;  %v2359_v50 = vor.u32 %v2893_v39, %v2356_v42  ;;  %v2340_v53 = vld [vmem:[%s4469_s1 + $0x398] sm:$0xf0]  ;;  %v2953_v55 = vld [vmem:[%s4469_s1 + $0x58c] sm:$0xf] }
  0xb3   :  { %1707 = vmatpush.bf16.msrb.mxu3 %v2215_v13  ;;  %v2596_v56 = vld [vmem:[%s4469_s1 + $0x598] sm:$0xf0]  ;;  %v2941_v43 = vld [vmem:[%s4469_s1 + $0x52c] sm:$0xf] }
  0xb4   :  { %1669 = vmatpush.bf16.msrb.mxu0 %v2707_v19  ;;  %v1416_v8 = vpop.f32.mrf.mxu0  ;;  %v2151_v19 = vor.u32 %v2841_v1, %v2148_v2  ;;  %v2599_v0 = vor.u32 %v2953_v55, %v2596_v56  ;;  %v2885_v1 = vld [vmem:[%s4469_s1 + $0x36c] sm:$0xf]  ;;  %v2324_v2 = vld [vmem:[%s4469_s1 + $0x378] sm:$0xf0] }
  0xb5   :  { %1682 = vmatpush.bf16.msrb.mxu1 %v1943_v22  ;;  %v1429_v13 = vpop.f32.mrf.mxu1  ;;  %v2391_v22 = vor.u32 %v2901_v3, %v2388_v5  ;;  %v2917_v3 = vld [vmem:[%s4469_s1 + $0x46c] sm:$0xf]  ;;  %v2452_v8 = vld [vmem:[%s4469_s1 + $0x478] sm:$0xf0] }
  0xb6   :  { %1695 = vmatpush.bf16.msrb.mxu2 %v2071_v23  ;;  %v1455_v23 = vpop.f32.mrf.mxu3  ;;  %v2327_v13 = vor.u32 %v2885_v1, %v2324_v2  ;;  %v2420_v42 = vld [vmem:[%s4469_s1 + $0x438] sm:$0xf0]  ;;  %v2973_v45 = vld [vmem:[%s4469_s1 + $0x62c] sm:$0xf] }
  0xb7   :  { %1708 = vmatpush.bf16.msrb.mxu3 %v2199_v27  ;;  %v2372_v27 = vld [vmem:[%s4469_s1 + $0x3d8] sm:$0xf0]  ;;  %v2969_v55 = vld [vmem:[%s4469_s1 + $0x60c] sm:$0xf] }
  0xb8   :  { %1670 = vmatpush.bf16.msrb.mxu0 %v2691_v34  ;;  %v2756_v34 = vld [vmem:[%s4469_s1 + $0x6d8] sm:$0xf0]  ;;  %v2375_v35 = vor.u32 %v2897_v26, %v2372_v27  ;;  %v2977_v27 = vld [vmem:[%s4469_s1 + $0x64c] sm:$0xf] }
  0xb9   :  { %1683 = vmatpush.bf16.msrb.mxu1 %v1927_v36  ;;  %v2503_v36 = vor.u32 %v2929_v28, %v2500_v30  ;;  %v2759_v44 = vor.u32 %v2993_v33, %v2756_v34  ;;  %v2436_v23 = vld [vmem:[%s4469_s1 + $0x458] sm:$0xf0]  ;;  %v2311_v30 = vor.u32 %v2881_v16, %v2308_v17 }
  0xba   :  { %1696 = vmatpush.bf16.msrb.mxu2 %v2055_v38  ;;  %v2631_v38 = vor.u32 %v2961_v31, %v2628_v32  ;;  %v2692_v28 = vld [vmem:[%s4469_s1 + $0x658] sm:$0xf0]  ;;  %v2439_v33 = vor.u32 %v2913_v18, %v2436_v23 }
  0xbb   :  { %1709 = vmatpush.bf16.msrb.mxu3 %v2183_v46  ;;  %v2957_v46 = vld [vmem:[%s4469_s1 + $0x5ac] sm:$0xf]  ;;  %v2695_v39 = vor.u32 %v2977_v27, %v2692_v28  ;;  %v2660_v56 = vld [vmem:[%s4469_s1 + $0x618] sm:$0xf0] }
  0xbc   :  { %1671 = vmatpush.bf16.msrb.mxu0 %v2675_v54  ;;  %v2615_v52 = vor.u32 %v2957_v46, %v2612_v47  ;;  %v2743_v54 = vor.u32 %v2989_v48, %v2740_v49  ;;  %v2676_v46 = vld [vmem:[%s4469_s1 + $0x638] sm:$0xf0] }
  0xbd   :  { %1684 = vmatpush.bf16.msrb.mxu1 %v1911_v57  ;;  %v2985_v57 = vld [vmem:[%s4469_s1 + $0x68c] sm:$0xf] }
  0xbe   :  { %1697 = vmatpush.bf16.msrb.mxu2 %v2039_v58  ;;  %v2724_v58 = vld [vmem:[%s4469_s1 + $0x698] sm:$0xf0] }
  0xbf   :  { %1710 = vmatpush.bf16.msrb.mxu3 %v2167_v63  ;;  %v2727_v7 = vor.u32 %v2985_v57, %v2724_v58 }
  0xc0   :  { %1672 = vmatpush.bf16.msrb.mxu0 %v2659_v9  ;;  %v1466_v60 = vpop.f32.mrf.mxu0  ;;  %v2949_v9 = vld [vmem:[%s4469_s1 + $0x56c] sm:$0xf] }
  0xc1   :  { %1685 = vmatpush.bf16.msrb.mxu1 %v1895_v14  ;;  %v1479_v61 = vpop.f32.mrf.mxu1  ;;  %v1467_v5 = vadd.f32 %v1466_v60, %v4233_v62  ;;  %v2708_v62 = vld [vmem:[%s4469_s1 + $0x678] sm:$0xf0]  ;;  %v2455_v14 = vor.u32 %v2917_v3, %v2452_v8 }
  0xc2   :  { %1698 = vmatpush.bf16.msrb.mxu2 %v2023_v15  ;;  %v2583_v15 = vor.u32 %v2949_v9, %v2580_v10 }
  0xc3   :  { %1711 = vmatpush.bf16.msrb.mxu3 %v2151_v19  ;;  %1673 = vmatmul.bf16.vlgmr.msrb.gmra.mxu0 %v3494_v37  ;;  %v1480_v12 = vadd.f32 %v1479_v61, %v1467_v5  ;;  %v2663_v61 = vor.u32 %v2969_v55, %v2660_v56 }
  0xc4   :  { %1717 = vmatpush.bf16.msra.mxu0 %v2391_v22  ;;  %1686 = vmatmul.bf16.vlgmr.msrb.gmra.mxu1 %v3343_v20  ;;  %v2468_v20 = vld [vmem:[%s4469_s1 + $0x498] sm:$0xf0]  ;;  %v2711_v22 = vor.u32 %v2981_v11, %v2708_v62 }
  0xc5   :  { %1730 = vmatpush.bf16.msra.mxu1 %v2519_v24  ;;  %1699 = vmatmul.bf16.vlgmr.msrb.gmra.mxu2 %v3345_v21  ;;  %v2889_v21 = vld [vmem:[%s4469_s1 + $0x38c] sm:$0xf] }
  0xc6   :  { %1743 = vmatpush.bf16.msra.mxu2 %v2647_v25  ;;  %1712 = vmatmul.bf16.vlgmr.msrb.gmra.mxu3 %v3311_v4  ;;  %v2921_v4 = vld [vmem:[%s4469_s1 + $0x48c] sm:$0xf]  ;;  %v2343_v59 = vor.u32 %v2889_v21, %v2340_v53  ;;  %v2564_v25 = vld [vmem:[%s4469_s1 + $0x558] sm:$0xf0]  ;;  %v2679_v53 = vor.u32 %v2973_v45, %v2676_v46 }
  0xc7   :  { %1756 = vmatpush.bf16.msra.mxu3 %v2775_v29  ;;  %v2471_v63 = vor.u32 %v2921_v4, %v2468_v20  ;;  %v2945_v24 = vld [vmem:[%s4469_s1 + $0x54c] sm:$0xf]  ;;  %v2404_v4 = vld [vmem:[%s4469_s1 + $0x418] sm:$0xf0] }
  0xc8   :  { %1718 = vmatpush.bf16.msra.mxu0 %v2375_v35  ;;  %v1492_v19 = vpop.f32.mrf.mxu2  ;;  %v1468_v31 = vpop.f32.mrf.mxu0  ;;  %v2567_v34 = vor.u32 %v2945_v24, %v2564_v25  ;;  %v2877_v35 = vld [vmem:[%s4469_s1 + $0x32c] sm:$0xf]  ;;  %v2532_v20 = vld [vmem:[%s4469_s1 + $0x518] sm:$0xf0] }
  0xc9   :  { %1731 = vmatpush.bf16.msra.mxu1 %v2503_v36  ;;  %v4387_v26 = vadd.f32 %v1492_v19, %v1480_v12  ;;  %v1505_v29 = vpop.f32.mrf.mxu3  ;;  %v1481_v32 = vpop.f32.mrf.mxu1  ;;  %v2292_v36 = vld [vmem:[%s4469_s1 + $0x338] sm:$0xf0] }
  0xca   :  { %1744 = vmatpush.bf16.msra.mxu2 %v2631_v38  ;;  %v2909_v38 = vld [vmem:[%s4469_s1 + $0x42c] sm:$0xf]  ;;  %v2295_v47 = vor.u32 %v2877_v35, %v2292_v36 }
  0xcb   :  { %1757 = vmatpush.bf16.msra.mxu3 %v2759_v44  ;;  %v2548_v44 = vld [vmem:[%s4469_s1 + $0x538] sm:$0xf0]  ;;  %v2423_v48 = vor.u32 %v2909_v38, %v2420_v42 }
  0xcc   :  { %1719 = vmatpush.bf16.msra.mxu0 %v2359_v50  ;;  %v2551_v49 = vor.u32 %v2941_v43, %v2548_v44  ;;  %v2873_v50 = vld [vmem:[%s4469_s1 + $0x30c] sm:$0xf] }
  0xcd   :  { %1732 = vmatpush.bf16.msra.mxu1 %v2487_v51  ;;  %v2276_v51 = vld [vmem:[%s4469_s1 + $0x318] sm:$0xf0] }
  0xce   :  { %1745 = vmatpush.bf16.msra.mxu2 %v2615_v52  ;;  %v2905_v52 = vld [vmem:[%s4469_s1 + $0x40c] sm:$0xf]  ;;  %v2279_v58 = vor.u32 %v2873_v50, %v2276_v51 }
  0xcf   :  { %1758 = vmatpush.bf16.msra.mxu3 %v2743_v54  ;;  %v2937_v54 = vld [vmem:[%s4469_s1 + $0x50c] sm:$0xf] }
  0xd0   :  { %1720 = vmatpush.bf16.msra.mxu0 %v2343_v59  ;;  %v1494_v21 = vpop.f32.mrf.mxu2  ;;  %v2407_v59 = vor.u32 %v2905_v52, %v2404_v4  ;;  %v2535_v60 = vor.u32 %v2937_v54, %v2532_v20 }
  0xd1   :  { %1733 = vmatpush.bf16.msra.mxu1 %v2471_v63  ;;  %v1507_v57 = vpop.f32.mrf.mxu3 }
  0xd2   :  { %1746 = vmatpush.bf16.msra.mxu2 %v2599_v0 }
  0xd3   :  { %1759 = vmatpush.bf16.msra.mxu3 %v2727_v7 }
  0xd4   :  { %1721 = vmatpush.bf16.msra.mxu0 %v2327_v13 }
  0xd5   :  { %1734 = vmatpush.bf16.msra.mxu1 %v2455_v14 }
  0xd6   :  { %1747 = vmatpush.bf16.msra.mxu2 %v2583_v15 }
  0xd7   :  { %1760 = vmatpush.bf16.msra.mxu3 %v2711_v22 }
  0xd8   :  { %1722 = vmatpush.bf16.msra.mxu0 %v2311_v30 }
  0xd9   :  { %1735 = vmatpush.bf16.msra.mxu1 %v2439_v33 }
  0xda   :  { %1748 = vmatpush.bf16.msra.mxu2 %v2567_v34 }
  0xdb   :  { %1761 = vmatpush.bf16.msra.mxu3 %v2695_v39 }
  0xdc   :  { %1723 = vmatpush.bf16.msra.mxu0 %v2295_v47  ;;  %v1784_v47 = vld [vmem:[%s4471_s2] sm:$0xf] }
  0xdd   :  { %1736 = vmatpush.bf16.msra.mxu1 %v2423_v48  ;;  %v1786_v52 = vperm.slane %v1784_v47, 0 }
  0xde   :  { %1749 = vmatpush.bf16.msra.mxu2 %v2551_v49  ;;  %v1787_v49 = vperm.slane %v1784_v47, 1 }
  0xdf   :  { %1762 = vmatpush.bf16.msra.mxu3 %v2679_v53  ;;  %v1788_v53 = vperm.slane %v1784_v47, 2  ;;  %v1794_v55 = vadd.f32 %v1786_v52, %v4387_v26 }
  0xe0   :  { %1724 = vmatpush.bf16.msra.mxu0 %v2279_v58  ;;  %v1518_v63 = vpop.f32.mrf.mxu0 }
  0xe1   :  { %1737 = vmatpush.bf16.msra.mxu1 %v2407_v59  ;;  %v1519_v0 = vadd.f32 %v1518_v63, %v1505_v29  ;;  %v1531_v1 = vpop.f32.mrf.mxu1 }
  0xe2   :  { %1750 = vmatpush.bf16.msra.mxu2 %v2535_v60  ;;  %v1789_v60 = vperm.slane %v1784_v47, 3 }
  0xe3   :  { %1763 = vmatpush.bf16.msra.mxu3 %v2663_v61  ;;  %1725 = vmatmul.bf16.vlgmr.msra.gmra.mxu0 %v3316_v6  ;;  %v1532_v2 = vadd.f32 %v1531_v1, %v1519_v0 }
  0xe4   :  { %1738 = vmatmul.bf16.vlgmr.msra.gmra.mxu1 %v3502_v40 }
  0xe5   :  { %1751 = vmatmul.bf16.vlgmr.msra.gmra.mxu2 %v3504_v41 }
  0xe6   :  { %1764 = vmatmul.bf16.vlgmr.msra.gmra.mxu3 %v3494_v37 }
  0xe8   :  { %v1544_v3 = vpop.f32.mrf.mxu2  ;;  %v1520_v9 = vpop.f32.mrf.mxu0 }
  0xe9   :  { %v1545_v5 = vadd.f32 %v1544_v3, %v1532_v2  ;;  %v1557_v7 = vpop.f32.mrf.mxu3  ;;  %v1533_v10 = vpop.f32.mrf.mxu1 }
  0xeb   :  { %v1558_v8 = vadd.f32 %v1557_v7, %v1545_v5 }
  0xf0   :  { %v1546_v11 = vpop.f32.mrf.mxu2 }
  0xf1   :  { %v1559_v62 = vpop.f32.mrf.mxu3 }
 0x100   :  { %v1570_v12 = vpop.f32.mrf.mxu0 }
 0x101   :  { %v1571_v6 = vadd.f32 %v1570_v12, %v1558_v8  ;;  %v1583_v13 = vpop.f32.mrf.mxu1  ;;  %v3013_v8 = vmov 512.0  }
 0x102   :  { %3001 = vrcp.f32 %v3013_v8 }
 0x103   :  { %v1584_v40 = vadd.f32 %v1583_v13, %v1571_v6 }
 0x105   :  { %v1795_v4 = vadd.f32 %v1787_v49, %v1584_v40 }
 0x107   :  { %v1798_v0 = vadd.f32 %v1795_v4, %v1794_v55 }
 0x108   :  { %v1596_v14 = vpop.f32.mrf.mxu2  ;;  %v1572_v15 = vpop.f32.mrf.mxu0 }
 0x109   :  { %v1609_v41 = vpop.f32.mrf.mxu3  ;;  %v1585_v16 = vpop.f32.mrf.mxu1 }
 0x10a   :  { %v1610_v37 = vadd.f32 %v1609_v41, %v1596_v14  ;;  %v3002_v9 = vpop.eup %3001 }
 0x10b   :  { %v1804_v10 = vmul.f32 512.0, %v3002_v9  ;;  %vm1808_vm0 = vweird.f32 %v3002_v9 }
 0x10d   :  { %v1805_v11 = vsub.f32 1.0, %v1804_v10 }
 0x10f   :  { %v1806_v26 = vmul.f32 %v3002_v9, %v1805_v11 }
 0x110   :  { %v1598_v17 = vpop.f32.mrf.mxu2 }
 0x111   :  { %v1611_v18 = vpop.f32.mrf.mxu3  ;;  %v1807_v62 = vadd.f32 %v3002_v9, %v1806_v26 }
 0x113   :  { %v1809_v12 = vsel %vm1808_vm0, %v3002_v9, %v1807_v62 }
 0x120   :  { %v1622_v19 = vpop.f32.mrf.mxu0 }
 0x121   :  { %v1635_v22 = vpop.f32.mrf.mxu1  ;;  %v1623_v39 = vadd.f32 %v1622_v19, %v1610_v37 }
 0x123   :  { %v1636_v42 = vadd.f32 %v1635_v22, %v1623_v39 }
 0x128   :  { %v1648_v23 = vpop.f32.mrf.mxu2  ;;  %v1624_v25 = vpop.f32.mrf.mxu0 }
 0x129   :  { %v1661_v24 = vpop.f32.mrf.mxu3  ;;  %v1637_v27 = vpop.f32.mrf.mxu1  ;;  %v1649_v44 = vadd.f32 %v1648_v23, %v1636_v42 }
 0x12b   :  { %v1662_v50 = vadd.f32 %v1661_v24, %v1649_v44 }
 0x130   :  { %v1650_v28 = vpop.f32.mrf.mxu2 }
 0x131   :  { %v1663_v29 = vpop.f32.mrf.mxu3 }
 0x140   :  { %v1674_v30 = vpop.f32.mrf.mxu0 }
 0x141   :  { %v1687_v31 = vpop.f32.mrf.mxu1  ;;  %v1675_v21 = vadd.f32 %v1674_v30, %v1662_v50 }
 0x143   :  { %v1796_v56 = vadd.f32 %v1788_v53, %v1675_v21 }
 0x145   :  { %v1799_v2 = vadd.f32 %v1798_v0, %v1796_v56 }
 0x148   :  { %v1700_v32 = vpop.f32.mrf.mxu2  ;;  %v1676_v34 = vpop.f32.mrf.mxu0 }
 0x149   :  { %v1713_v33 = vpop.f32.mrf.mxu3  ;;  %v1689_v35 = vpop.f32.mrf.mxu1  ;;  %v1701_v43 = vadd.f32 %v1700_v32, %v1687_v31  ;;  %v1840_v32 = vld [vmem:[%s4472_s3] sm:$0xf] }
 0x14a   :  { %v1854_v34 = vld [vmem:[%s4473_s4] sm:$0xf]  ;;  %v1844_v39 = vperm.slane %v1840_v32, 2  ;;  %v1845_v42 = vperm.slane %v1840_v32, 3 }
 0x14b   :  { %v1714_v45 = vadd.f32 %v1713_v33, %v1701_v43  ;;  %v1856_v43 = vperm.slane %v1854_v34, 0  ;;  %v1857_v44 = vperm.slane %v1854_v34, 1 }
 0x150   :  { %v1702_v36 = vpop.f32.mrf.mxu2 }
 0x151   :  { %v1715_v38 = vpop.f32.mrf.mxu3  ;;  %v1842_v36 = vperm.slane %v1840_v32, 0 }
 0x152   :  { %v1843_v38 = vperm.slane %v1840_v32, 1 }
 0x160   :  { %v1726_v46 = vpop.f32.mrf.mxu0 }
 0x161   :  { %v1739_v48 = vpop.f32.mrf.mxu1  ;;  %v1727_v51 = vadd.f32 %v1726_v46, %v1714_v45  ;;  %v1858_v45 = vperm.slane %v1854_v34, 2 }
 0x163   :  { %v1740_v54 = vadd.f32 %v1739_v48, %v1727_v51  ;;  %v1859_v51 = vperm.slane %v1854_v34, 3 }
 0x168   :  { %v1752_v20 = vpop.f32.mrf.mxu2  ;;  %v1728_v59 = vpop.f32.mrf.mxu0 }
 0x169   :  { %v1753_v57 = vadd.f32 %v1752_v20, %v1740_v54  ;;  %v1765_v58 = vpop.f32.mrf.mxu3  ;;  %v1741_v61 = vpop.f32.mrf.mxu1 }
 0x16b   :  { %v1766_v63 = vadd.f32 %v1765_v58, %v1753_v57 }
 0x16d   :  { %v1797_v1 = vadd.f32 %v1789_v60, %v1766_v63 }
 0x16f   :  { %v1800_v3 = vadd.f32 %v1799_v2, %v1797_v1 }
 0x170   :  { %v1754_v5 = vpop.f32.mrf.mxu2 }
 0x171   :  { %v1767_v7 = vpop.f32.mrf.mxu3  ;;  %1801 = vadd.xlane.f32.xlu0 %v1800_v3 }
 0x1e4   :  { %v1802_v6 = vpop.xlane.xlu0 %1801 }
 0x1e5   :  { %v1810_v13 = vmul.f32 %v1809_v12, %v1802_v6 }
 0x1e7   :  { %v1811_v40 = vsub.f32 %v1794_v55, %v1810_v13  ;;  %v1812_v14 = vsub.f32 %v1795_v4, %v1810_v13  ;;  %v1813_v41 = vsub.f32 %v1796_v56, %v1810_v13  ;;  %v1814_v15 = vsub.f32 %v1797_v1, %v1810_v13 }
 0x1e9   :  { %v1815_v37 = vmul.f32 %v1811_v40, %v1811_v40  ;;  %v1816_v16 = vmul.f32 %v1812_v14, %v1812_v14  ;;  %v1817_v17 = vmul.f32 %v1813_v41, %v1813_v41  ;;  %v1818_v19 = vmul.f32 %v1814_v15, %v1814_v15 }
 0x1eb   :  { %v1819_v18 = vadd.f32 %v1816_v16, %v1815_v37 }
 0x1ed   :  { %v1820_v22 = vadd.f32 %v1819_v18, %v1817_v17 }
 0x1ef   :  { %v1821_v23 = vadd.f32 %v1820_v22, %v1818_v19 }
 0x1f1   :  { %1822 = vadd.xlane.f32.xlu0 %v1821_v23 }
 0x264   :  { %v1823_v24 = vpop.xlane.xlu0 %1822 }
 0x265   :  { %v1824_v25 = vmul.f32 %v1823_v24, %v1809_v12 }
 0x267   :  { %v1825_v27 = vadd.f32 1e-05, %v1824_v25 }
 0x269   :  { %3003 = vrsqrt.f32 %v1825_v27  ;;  %vm1832_vm2 = vweird.f32 %v1825_v27 }
 0x26f   :  { %v3004_v28 = vpop.eup %3003 }
 0x270   :  { %v1827_v29 = vmul.f32 %v3004_v28, %v1825_v27  ;;  %vm1833_vm1 = vweird.f32 %v3004_v28 }
 0x271   :  { %vm1834_vm3 = vmor %vm1832_vm2, %vm1833_vm1 }
 0x272   :  { %v1828_v30 = vmul.f32 %v3004_v28, %v1827_v29 }
 0x274   :  { %v1829_v31 = vmul.f32 0.5, %v1828_v30 }
 0x276   :  { %v1830_v33 = vsub.f32 1.5, %v1829_v31 }
 0x278   :  { %v1831_v35 = vmul.f32 %v3004_v28, %v1830_v33 }
 0x27a   :  { %v1835_v46 = vsel %vm1834_vm3, %v3004_v28, %v1831_v35 }
 0x27b   :  { %v1836_v47 = vmul.f32 %v1835_v46, %v1811_v40  ;;  %v1837_v48 = vmul.f32 %v1835_v46, %v1812_v14  ;;  %v1838_v49 = vmul.f32 %v1835_v46, %v1813_v41  ;;  %v1839_v50 = vmul.f32 %v1835_v46, %v1814_v15 }
 0x27d   :  { %v1850_v52 = vmul.f32 %v1842_v36, %v1836_v47  ;;  %v1851_v21 = vmul.f32 %v1843_v38, %v1837_v48  ;;  %v1852_v53 = vmul.f32 %v1844_v39, %v1838_v49  ;;  %v1853_v4 = vmul.f32 %v1845_v42, %v1839_v50 }
 0x27f   :  { %v1864_v54 = vadd.f32 %v1856_v43, %v1850_v52  ;;  %v1865_v20 = vadd.f32 %v1857_v44, %v1851_v21  ;;  %v1866_v55 = vadd.f32 %v1858_v45, %v1852_v53  ;;  %v1867_v56 = vadd.f32 %v1859_v51, %v1853_v4 }
 0x281   :  { %3005 = vtanh.f32 %v1864_v54 }
 0x282   :  { %3007 = vtanh.f32 %v1865_v20 }
 0x283   :  { %3009 = vtanh.f32 %v1866_v55 }
 0x284   :  { %3011 = vtanh.f32 %v1867_v56 }
 0x287   :  { %v3006_v57 = vpop.eup %3005 }
 0x288   :  { %v3008_v58 = vpop.eup %3007  ;;  %1872 = vst [vmem:[%s4474_s5] sm:$0xff] %v3006_v57 }
 0x289   :  { %v3010_v59 = vpop.eup %3009  ;;  %1873 = vst [vmem:[%s4474_s5 + $0x8] sm:$0xff] %v3008_v58 }
 0x28a   :  { %v3012_v60 = vpop.eup %3011  ;;  %1874 = vst [vmem:[%s4474_s5 + $0x10] sm:$0xff] %v3010_v59 }
 0x28b   :  { %1875 = vst [vmem:[%s4474_s5 + $0x18] sm:$0xff] %v3012_v60 }

</bundles_post_ra>
